<compile_context>
chip_gen: v6e
topology: v6e:2x2x1
jax: 0.10.0
libtpu: 0.0.40
codegen_flags: <defaults>
</compile_context>

<pallas_src>
import numpy as np
import jax
import jax.numpy as jnp
from jax import lax
from jax.experimental import pallas as pl
from jax.experimental.pallas import tpu as pltpu

SMI_MAX_SIZE = 300
LN_EPS = 1e-5  # PyTorch nn.LayerNorm default


# ----------------------------- in-kernel helpers -----------------------------

def _layer_norm(x, w, b):
    mu = jnp.mean(x, axis=-1, keepdims=True)
    var = jnp.mean((x - mu) ** 2, axis=-1, keepdims=True)
    return (x - mu) * lax.rsqrt(var + LN_EPS) * w + b


def _erf(x):
    # Abramowitz & Stegun 7.1.26 rational approximation (max abs err ~1.5e-7).
    a1, a2, a3, a4, a5 = 0.254829592, -0.284496736, 1.421413741, -1.453152027, 1.061405429
    p = 0.3275911
    sgn = jnp.where(x >= 0.0, 1.0, -1.0)
    ax = jnp.abs(x)
    t = 1.0 / (1.0 + p * ax)
    poly = ((((a5 * t + a4) * t + a3) * t + a2) * t + a1) * t
    return sgn * (1.0 - poly * jnp.exp(-ax * ax))


def _gelu_exact(x):
    # PyTorch default F.gelu (approximate='none'): 0.5 * x * (1 + erf(x / sqrt(2)))
    return 0.5 * x * (1.0 + _erf(x * np.float32(1.0 / np.sqrt(2.0))))


def _softmax_lastdim(s):
    m = jnp.max(s, axis=-1, keepdims=True)
    e = jnp.exp(s - m)
    # approx reciprocal -> EUP slot (otherwise idle), off the VALU critical path
    return e * pl.reciprocal(jnp.sum(e, axis=-1, keepdims=True), approx=True)


# --------------------------------- the kernel --------------------------------

def make_decoder_kernel(n_layers, n_heads, d_model, b_tile, lp, vp):
    D = d_model
    hd = D // n_heads
    scale = np.float32(1.0 / np.sqrt(hd))
    R = b_tile * lp  # rows fed to every dense matmul

    def kernel(seq_ref, pe_ref, prop_ref,
               pw1_ref, pb1_ref, pw2_ref, pb2_ref,
               ln1w_ref, ln1b_ref, wqkv_ref, bqkv_ref, wo_ref, bo_ref,
               ln2w_ref, ln2b_ref, wff1_ref, bff1_ref, wff2_ref, bff2_ref,
               normw_ref, normb_ref, lnfw_ref, lnfb_ref, wc_ref, bc_ref,
               out_ref):
        # --- PropertyEncoder: Linear(P, D) -> Linear(D, D) ---
        # prop_ref carries the property vector in row 0 of every sequence (other
        # rows zero).  Running the tiny encoder over all LP rows keeps the matmul
        # wide; non-zero garbage on rows > 0 (bias terms) is masked out below.
        prop_in = prop_ref[...].reshape(R, prop_ref.shape[-1])                 # (R, P)
        ph = jnp.dot(prop_in, pw1_ref[...], preferred_element_type=jnp.float32) + pb1_ref[...]
        ptok = jnp.dot(ph, pw2_ref[...], preferred_element_type=jnp.float32) + pb2_ref[...]
        prop_enc3 = ptok.reshape(b_tile, lp, D)                                # (Bt, LP, D)

        # --- assemble sequence: row0 = property token, rows 1..S = emb + PE,
        #     rows >= L are zero padding (never read back) ---
        row = lax.broadcasted_iota(jnp.int32, (b_tile, lp, D), 1)
        x3 = seq_ref[...] + pe_ref[...] + jnp.where(row == 0, prop_enc3, jnp.float32(0.0))
        x = x3.reshape(R, D)                                                   # (R, D)

        # causal mask over the (padded) sequence; padded key columns are above the
        # diagonal for every real query row, so they are always masked out.
        qpos = lax.broadcasted_iota(jnp.int32, (lp, lp), 0)
        kpos = lax.broadcasted_iota(jnp.int32, (lp, lp), 1)
        causal = kpos <= qpos

        for l in range(n_layers):
            # --- self-attention block (norm_first=True) ---
            hn = _layer_norm(x, ln1w_ref[l], ln1b_ref[l])
            qkv = jnp.dot(hn, wqkv_ref[l], preferred_element_type=jnp.float32) + bqkv_ref[l]
            qkv3 = qkv.reshape(b_tile, lp, 3 * D)
            heads = []
            for hh in range(n_heads):
                lo = hh * hd
                qh = qkv3[:, :, lo:lo + hd]
                kh = qkv3[:, :, D + lo:D + lo + hd]
                vh = qkv3[:, :, 2 * D + lo:2 * D + lo + hd]
                s = jnp.einsum('bqd,bkd->bqk', qh, kh,
                               preferred_element_type=jnp.float32) * scale
                s = jnp.where(causal, s, np.float32(-1e30))
                p = _softmax_lastdim(s)
                heads.append(jnp.einsum('bqk,bkd->bqd', p, vh,
                                        preferred_element_type=jnp.float32))
            attn3 = jnp.concatenate(heads, axis=-1)                            # (Bt, LP, D)
            attn = jnp.dot(attn3.reshape(R, D), wo_ref[l],
                           preferred_element_type=jnp.float32) + bo_ref[l]
            x = x + attn

            # --- feed-forward block (norm_first=True, gelu) ---
            hn = _layer_norm(x, ln2w_ref[l], ln2b_ref[l])
            f = jnp.dot(hn, wff1_ref[l], preferred_element_type=jnp.float32) + bff1_ref[l]
            f = _gelu_exact(f)
            f = jnp.dot(f, wff2_ref[l], preferred_element_type=jnp.float32) + bff2_ref[l]
            x = x + f

        x = _layer_norm(x, normw_ref[...], normb_ref[...])   # TransformerEncoder final norm
        x = _layer_norm(x, lnfw_ref[...], lnfb_ref[...])     # ln_f
        logits = jnp.dot(x, wc_ref[...], preferred_element_type=jnp.float32) + bc_ref[...]
        out_ref[...] = logits.reshape(b_tile, lp, vp)        # lane-dense, aligned store

    return kernel


# --------------------------------- wrapper ------------------------------------

def smile_decoder_forward(tokens, props, params, *, n_layers, n_heads, b_tile=None):
    B, S = tokens.shape
    V, D = params["embed"].shape
    P = props.shape[-1]
    L = S + 1
    LP = ((L + 7) // 8) * 8            # sublane-aligned padded sequence length
    VP = ((V + 127) // 128) * 128      # lane-dense padded vocab

    if b_tile is None:
        b_tile = max(1, 128 // LP)                 # aim for >=128 MXU rows per step
        if B >= 2:
            b_tile = min(b_tile, (B + 1) // 2)     # keep >=2 grid steps (v7x: 2 TCs)
        b_tile = max(1, min(b_tile, B))
    Bp = ((B + b_tile - 1) // b_tile) * b_tile

    # glue: embedding gather + layout padding stay in plain JAX
    emb = jnp.take(params["embed"], tokens, axis=0)                    # (B, S, D)
    seq = jnp.pad(emb, ((0, Bp - B), (1, LP - L), (0, 0)))             # (Bp, LP, D)
    pe = jnp.pad(params["pe"][:S], ((1, LP - L), (0, 0)))              # (LP, D)
    props_in = jnp.pad(jnp.pad(props, ((0, Bp - B), (0, 0)))[:, None, :],
                       ((0, 0), (0, LP - 1), (0, 0)))                  # (Bp, LP, P)

    # lane-dense classifier weights (padded columns are zero -> sliced away below)
    wc_p = jnp.pad(params["wc"], ((0, 0), (0, VP - V)))
    bc_p = jnp.pad(params["bc"], ((0, 0), (0, VP - V)))

    w = dict(params)
    w["wc"], w["bc"] = wc_p, bc_p
    weight_names = ("pw1", "pb1", "pw2", "pb2",
                    "ln1w", "ln1b", "wqkv", "bqkv", "wo", "bo",
                    "ln2w", "ln2b", "wff1", "bff1", "wff2", "bff2",
                    "normw", "normb", "lnfw", "lnfb", "wc", "bc")
    weight_args = [w[k] for k in weight_names]

    def full_spec(a):
        r = a.ndim
        return pl.BlockSpec(a.shape, lambda b, r=r: (0,) * r)

    in_specs = [
        pl.BlockSpec((b_tile, LP, D), lambda b: (b, 0, 0)),   # emb rows (shifted/padded)
        pl.BlockSpec((LP, D), lambda b: (0, 0)),              # positional encodings
        pl.BlockSpec((b_tile, LP, P), lambda b: (b, 0, 0)),   # property rows
    ] + [full_spec(a) for a in weight_args]

    out_spec = pl.BlockSpec((b_tile, LP, VP), lambda b: (b, 0, 0))

    # explicit VMEM budget: 2x-buffered weights + 2x-buffered I/O blocks + headroom
    H = params["wff1"].shape[-1]
    weight_bytes = sum(int(np.prod(a.shape)) * 4 for a in weight_args)
    io_block_bytes = 4 * (b_tile * LP * (D + P + VP) + LP * D)
    act_bytes = 4 * b_tile * LP * (4 * D + H + VP + 4 * LP)
    vmem_limit = int(min(2 * weight_bytes + 2 * io_block_bytes + 4 * act_bytes + (8 << 20),
                         64 << 20))

    kernel = make_decoder_kernel(n_layers, n_heads, D, b_tile, LP, VP)

    f = pl.pallas_call(
        kernel,
        out_shape=jax.ShapeDtypeStruct((Bp, LP, VP), jnp.float32),
        grid_spec=pltpu.PrefetchScalarGridSpec(
            num_scalar_prefetch=0,
            grid=(Bp // b_tile,),
            in_specs=in_specs,
            out_specs=out_spec,
        ),
        compiler_params=pltpu.CompilerParams(
            dimension_semantics=("parallel",),
            vmem_limit_bytes=vmem_limit),
    )
    out = f(seq, pe, props_in, *weight_args)
    return out[:B, :L, :V]


# ------------------------------ parameter setup -------------------------------

def make_positional_encodings(seq_len, d_model, n=10000):
    # Matches the reference PositionalEncodings exactly: angles use the raw dim
    # index (2*dim/d_model); cos at even indices, sin at odd indices.
    pos = np.arange(seq_len, dtype=np.float32).reshape(-1, 1)
    dim = np.arange(d_model, dtype=np.float32).reshape(1, -1)
    angles = pos / np.power(float(n), 2.0 * dim / d_model)
    enc = np.zeros((seq_len, d_model), dtype=np.float32)
    enc[:, 0::2] = np.cos(angles[:, 0::2])
    enc[:, 1::2] = np.sin(angles[:, 1::2])
    return enc


def init_params(key, *, vocab_size, d_model, n_heads, n_layers, n_properties, hidden_units):
    del n_heads
    ks = iter(jax.random.split(key, 64))

    def nrm(shape, scale=0.05):
        return (scale * jax.random.normal(next(ks), shape)).astype(jnp.float32)

    D, H, P, V, NL = d_model, hidden_units, n_properties, vocab_size, n_layers
    return dict(
        embed=nrm((V, D)),
        pe=jnp.asarray(make_positional_encodings(SMI_MAX_SIZE, D)),
        # PropertyEncoder (weights stored (in, out))
        pw1=nrm((P, D)), pb1=nrm((1, D)),
        pw2=nrm((D, D)), pb2=nrm((1, D)),
        # per-layer transformer params, stacked on leading axis
        ln1w=jnp.ones((NL, 1, D), jnp.float32), ln1b=jnp.zeros((NL, 1, D), jnp.float32),
        wqkv=nrm((NL, D, 3 * D)), bqkv=nrm((NL, 1, 3 * D)),
        wo=nrm((NL, D, D)), bo=nrm((NL, 1, D)),
        ln2w=jnp.ones((NL, 1, D), jnp.float32), ln2b=jnp.zeros((NL, 1, D), jnp.float32),
        wff1=nrm((NL, D, H)), bff1=nrm((NL, 1, H)),
        wff2=nrm((NL, H, D)), bff2=nrm((NL, 1, D)),
        # TransformerEncoder final norm + ln_f + classifier
        normw=jnp.ones((1, D), jnp.float32), normb=jnp.zeros((1, D), jnp.float32),
        lnfw=jnp.ones((1, D), jnp.float32), lnfb=jnp.zeros((1, D), jnp.float32),
        wc=nrm((D, V)), bc=nrm((1, V)),
    )


if __name__ == "__main__":
    # small shapes consistent with the module
    D_MODEL, N_HEADS, N_LAYERS = 32, 4, 2
    N_PROPERTIES, HIDDEN_UNITS = 5, 64
    VOCAB_SIZE = 40
    B, S = 4, 8

    key = jax.random.PRNGKey(0)
    k_param, k_tok, k_prop = jax.random.split(key, 3)

    params = init_params(k_param, vocab_size=VOCAB_SIZE, d_model=D_MODEL,
                         n_heads=N_HEADS, n_layers=N_LAYERS,
                         n_properties=N_PROPERTIES, hidden_units=HIDDEN_UNITS)

    tokens = jax.random.randint(k_tok, (B, S), 0, VOCAB_SIZE, dtype=jnp.int32)
    props = jax.random.normal(k_prop, (B, N_PROPERTIES), dtype=jnp.float32)

    # TODO(synk): dropout layers (p=0.1) are identity here (inference semantics).
    out = smile_decoder_forward(tokens, props, params,
                                n_layers=N_LAYERS, n_heads=N_HEADS)
    out = jax.block_until_ready(out)
    assert out.shape == (B, S + 1, VOCAB_SIZE) and out.dtype == jnp.float32
    assert bool(jnp.all(jnp.isfinite(out)))
    print("KERNEL_OK")
</pallas_src>

<mosaic_0001>
module attributes {stable_mosaic.version = 11 : i64} {
  func.func @kernel(%arg0: i32, %arg1: memref<2x16x32xf32, #tpu.memory_space<vmem>>, %arg2: memref<16x32xf32, #tpu.memory_space<vmem>>, %arg3: memref<2x16x5xf32, #tpu.memory_space<vmem>>, %arg4: memref<5x32xf32, #tpu.memory_space<vmem>>, %arg5: memref<1x32xf32, #tpu.memory_space<vmem>>, %arg6: memref<32x32xf32, #tpu.memory_space<vmem>>, %arg7: memref<1x32xf32, #tpu.memory_space<vmem>>, %arg8: memref<2x1x32xf32, #tpu.memory_space<vmem>>, %arg9: memref<2x1x32xf32, #tpu.memory_space<vmem>>, %arg10: memref<2x32x96xf32, #tpu.memory_space<vmem>>, %arg11: memref<2x1x96xf32, #tpu.memory_space<vmem>>, %arg12: memref<2x32x32xf32, #tpu.memory_space<vmem>>, %arg13: memref<2x1x32xf32, #tpu.memory_space<vmem>>, %arg14: memref<2x1x32xf32, #tpu.memory_space<vmem>>, %arg15: memref<2x1x32xf32, #tpu.memory_space<vmem>>, %arg16: memref<2x32x64xf32, #tpu.memory_space<vmem>>, %arg17: memref<2x1x64xf32, #tpu.memory_space<vmem>>, %arg18: memref<2x64x32xf32, #tpu.memory_space<vmem>>, %arg19: memref<2x1x32xf32, #tpu.memory_space<vmem>>, %arg20: memref<1x32xf32, #tpu.memory_space<vmem>>, %arg21: memref<1x32xf32, #tpu.memory_space<vmem>>, %arg22: memref<1x32xf32, #tpu.memory_space<vmem>>, %arg23: memref<1x32xf32, #tpu.memory_space<vmem>>, %arg24: memref<32x128xf32, #tpu.memory_space<vmem>>, %arg25: memref<1x128xf32, #tpu.memory_space<vmem>>, %arg26: memref<2x16x128xf32, #tpu.memory_space<vmem>>) attributes {dimension_semantics = [#tpu.dimension_semantics<parallel>], iteration_bounds = array<i64: 2>, scalar_prefetch = 0 : i64, scratch_operands = 0 : i64, tpu.core_type = #tpu.core_type<tc>, window_params = [{transform_indices = @transform_0, window_bounds = array<i64: 2, 16, 32>}, {pipeline_mode = #tpu.pipeline_mode<synchronous>, transform_indices = @transform_1, window_bounds = array<i64: 16, 32>}, {transform_indices = @transform_2, window_bounds = array<i64: 2, 16, 5>}, {pipeline_mode = #tpu.pipeline_mode<synchronous>, transform_indices = @transform_3, window_bounds = array<i64: 5, 32>}, {pipeline_mode = #tpu.pipeline_mode<synchronous>, transform_indices = @transform_4, window_bounds = array<i64: 1, 32>}, {pipeline_mode = #tpu.pipeline_mode<synchronous>, transform_indices = @transform_5, window_bounds = array<i64: 32, 32>}, {pipeline_mode = #tpu.pipeline_mode<synchronous>, transform_indices = @transform_6, window_bounds = array<i64: 1, 32>}, {pipeline_mode = #tpu.pipeline_mode<synchronous>, transform_indices = @transform_7, window_bounds = array<i64: 2, 1, 32>}, {pipeline_mode = #tpu.pipeline_mode<synchronous>, transform_indices = @transform_8, window_bounds = array<i64: 2, 1, 32>}, {pipeline_mode = #tpu.pipeline_mode<synchronous>, transform_indices = @transform_9, window_bounds = array<i64: 2, 32, 96>}, {pipeline_mode = #tpu.pipeline_mode<synchronous>, transform_indices = @transform_10, window_bounds = array<i64: 2, 1, 96>}, {pipeline_mode = #tpu.pipeline_mode<synchronous>, transform_indices = @transform_11, window_bounds = array<i64: 2, 32, 32>}, {pipeline_mode = #tpu.pipeline_mode<synchronous>, transform_indices = @transform_12, window_bounds = array<i64: 2, 1, 32>}, {pipeline_mode = #tpu.pipeline_mode<synchronous>, transform_indices = @transform_13, window_bounds = array<i64: 2, 1, 32>}, {pipeline_mode = #tpu.pipeline_mode<synchronous>, transform_indices = @transform_14, window_bounds = array<i64: 2, 1, 32>}, {pipeline_mode = #tpu.pipeline_mode<synchronous>, transform_indices = @transform_15, window_bounds = array<i64: 2, 32, 64>}, {pipeline_mode = #tpu.pipeline_mode<synchronous>, transform_indices = @transform_16, window_bounds = array<i64: 2, 1, 64>}, {pipeline_mode = #tpu.pipeline_mode<synchronous>, transform_indices = @transform_17, window_bounds = array<i64: 2, 64, 32>}, {pipeline_mode = #tpu.pipeline_mode<synchronous>, transform_indices = @transform_18, window_bounds = array<i64: 2, 1, 32>}, {pipeline_mode = #tpu.pipeline_mode<synchronous>, transform_indices = @transform_19, window_bounds = array<i64: 1, 32>}, {pipeline_mode = #tpu.pipeline_mode<synchronous>, transform_indices = @transform_20, window_bounds = array<i64: 1, 32>}, {pipeline_mode = #tpu.pipeline_mode<synchronous>, transform_indices = @transform_21, window_bounds = array<i64: 1, 32>}, {pipeline_mode = #tpu.pipeline_mode<synchronous>, transform_indices = @transform_22, window_bounds = array<i64: 1, 32>}, {pipeline_mode = #tpu.pipeline_mode<synchronous>, transform_indices = @transform_23, window_bounds = array<i64: 32, 128>}, {pipeline_mode = #tpu.pipeline_mode<synchronous>, transform_indices = @transform_24, window_bounds = array<i64: 1, 128>}, {transform_indices = @transform_25, window_bounds = array<i64: 2, 16, 128>}]} {
    %c0 = arith.constant 0 : index
    %c0_0 = arith.constant 0 : index
    %c0_1 = arith.constant 0 : index
    %0 = vector.load %arg3[%c0, %c0_0, %c0_1] : memref<2x16x5xf32, #tpu.memory_space<vmem>>, vector<2x16x5xf32>
    %1 = vector.shape_cast %0 : vector<2x16x5xf32> to vector<32x5xf32>
    %c0_2 = arith.constant 0 : index
    %c0_3 = arith.constant 0 : index
    %2 = vector.load %arg4[%c0_2, %c0_3] : memref<5x32xf32, #tpu.memory_space<vmem>>, vector<5x32xf32>
    %cst = arith.constant dense<0.000000e+00> : vector<32x32xf32>
    %3 = tpu.matmul %1, %2, %cst {dimension_numbers = #tpu.dot_dimension_numbers<[1], [0], [0], [1], [0, 0, 1, 1], [], []>} : vector<32x5xf32>, vector<5x32xf32>, vector<32x32xf32> -> vector<32x32xf32>
    %c0_4 = arith.constant 0 : index
    %c0_5 = arith.constant 0 : index
    %4 = vector.load %arg5[%c0_4, %c0_5] : memref<1x32xf32, #tpu.memory_space<vmem>>, vector<1x32xf32>
    %5 = vector.broadcast %4 : vector<1x32xf32> to vector<32x32xf32>
    %6 = arith.addf %3, %5 : vector<32x32xf32>
    %c0_6 = arith.constant 0 : index
    %c0_7 = arith.constant 0 : index
    %7 = vector.load %arg6[%c0_6, %c0_7] : memref<32x32xf32, #tpu.memory_space<vmem>>, vector<32x32xf32>
    %cst_8 = arith.constant dense<0.000000e+00> : vector<32x32xf32>
    %8 = tpu.matmul %6, %7, %cst_8 {dimension_numbers = #tpu.dot_dimension_numbers<[1], [0], [0], [1], [0, 0, 1, 1], [], []>} : vector<32x32xf32>, vector<32x32xf32>, vector<32x32xf32> -> vector<32x32xf32>
    %c0_9 = arith.constant 0 : index
    %c0_10 = arith.constant 0 : index
    %9 = vector.load %arg7[%c0_9, %c0_10] : memref<1x32xf32, #tpu.memory_space<vmem>>, vector<1x32xf32>
    %10 = vector.broadcast %9 : vector<1x32xf32> to vector<32x32xf32>
    %11 = arith.addf %8, %10 : vector<32x32xf32>
    %12 = vector.shape_cast %11 : vector<32x32xf32> to vector<2x16x32xf32>
    %13 = tpu.iota {dimensions = array<i32: 1>} : vector<2x16x32xi32>
    %c0_11 = arith.constant 0 : index
    %c0_12 = arith.constant 0 : index
    %c0_13 = arith.constant 0 : index
    %14 = vector.load %arg1[%c0_11, %c0_12, %c0_13] : memref<2x16x32xf32, #tpu.memory_space<vmem>>, vector<2x16x32xf32>
    %c0_14 = arith.constant 0 : index
    %c0_15 = arith.constant 0 : index
    %15 = vector.load %arg2[%c0_14, %c0_15] : memref<16x32xf32, #tpu.memory_space<vmem>>, vector<16x32xf32>
    %16 = vector.shape_cast %15 : vector<16x32xf32> to vector<1x16x32xf32>
    %17 = vector.broadcast %16 : vector<1x16x32xf32> to vector<2x16x32xf32>
    %18 = arith.addf %14, %17 : vector<2x16x32xf32>
    %c0_i32 = arith.constant 0 : i32
    %19 = vector.broadcast %c0_i32 : i32 to vector<2x16x32xi32>
    %20 = arith.cmpi eq, %13, %19 : vector<2x16x32xi32>
    %cst_16 = arith.constant 0.000000e+00 : f32
    %21 = vector.broadcast %cst_16 : f32 to vector<2x16x32xf32>
    %22 = arith.select %20, %12, %21 : vector<2x16x32xi1>, vector<2x16x32xf32>
    %23 = arith.addf %18, %22 : vector<2x16x32xf32>
    %24 = vector.shape_cast %23 : vector<2x16x32xf32> to vector<32x32xf32>
    %25 = tpu.iota {dimensions = array<i32: 0>} : vector<16x16xi32>
    %26 = tpu.iota {dimensions = array<i32: 1>} : vector<16x16xi32>
    %27 = arith.cmpi sle, %26, %25 : vector<16x16xi32>
    %c0_17 = arith.constant 0 : index
    %c0_18 = arith.constant 0 : index
    %c0_19 = arith.constant 0 : index
    %28 = vector.load %arg8[%c0_17, %c0_18, %c0_19] : memref<2x1x32xf32, #tpu.memory_space<vmem>>, vector<1x1x32xf32>
    %29 = vector.shape_cast %28 : vector<1x1x32xf32> to vector<1x32xf32>
    %c0_20 = arith.constant 0 : index
    %c0_21 = arith.constant 0 : index
    %c0_22 = arith.constant 0 : index
    %30 = vector.load %arg9[%c0_20, %c0_21, %c0_22] : memref<2x1x32xf32, #tpu.memory_space<vmem>>, vector<1x1x32xf32>
    %31 = vector.shape_cast %30 : vector<1x1x32xf32> to vector<1x32xf32>
    %cst_23 = arith.constant dense<0.000000e+00> : vector<32xf32>
    %32 = vector.multi_reduction <add>, %24, %cst_23 [1] : vector<32x32xf32> to vector<32xf32>
    %33 = vector.shape_cast %32 : vector<32xf32> to vector<32x1xf32>
    %cst_24 = arith.constant 3.200000e+01 : f32
    %34 = vector.broadcast %cst_24 : f32 to vector<32x1xf32>
    %35 = arith.divf %33, %34 : vector<32x1xf32>
    %36 = vector.broadcast %35 : vector<32x1xf32> to vector<32x32xf32>
    %37 = arith.subf %24, %36 : vector<32x32xf32>
    %38 = arith.mulf %37, %37 : vector<32x32xf32>
    %cst_25 = arith.constant dense<0.000000e+00> : vector<32xf32>
    %39 = vector.multi_reduction <add>, %38, %cst_25 [1] : vector<32x32xf32> to vector<32xf32>
    %40 = vector.shape_cast %39 : vector<32xf32> to vector<32x1xf32>
    %cst_26 = arith.constant 3.200000e+01 : f32
    %41 = vector.broadcast %cst_26 : f32 to vector<32x1xf32>
    %42 = arith.divf %40, %41 : vector<32x1xf32>
    %43 = vector.broadcast %35 : vector<32x1xf32> to vector<32x32xf32>
    %44 = arith.subf %24, %43 : vector<32x32xf32>
    %cst_27 = arith.constant 9.99999974E-6 : f32
    %45 = vector.broadcast %cst_27 : f32 to vector<32x1xf32>
    %46 = arith.addf %42, %45 : vector<32x1xf32>
    %47 = math.rsqrt %46 : vector<32x1xf32>
    %48 = vector.broadcast %47 : vector<32x1xf32> to vector<32x32xf32>
    %49 = arith.mulf %44, %48 : vector<32x32xf32>
    %50 = vector.broadcast %29 : vector<1x32xf32> to vector<32x32xf32>
    %51 = arith.mulf %49, %50 : vector<32x32xf32>
    %52 = vector.broadcast %31 : vector<1x32xf32> to vector<32x32xf32>
    %53 = arith.addf %51, %52 : vector<32x32xf32>
    %c0_28 = arith.constant 0 : index
    %c0_29 = arith.constant 0 : index
    %c0_30 = arith.constant 0 : index
    %54 = vector.load %arg10[%c0_28, %c0_29, %c0_30] : memref<2x32x96xf32, #tpu.memory_space<vmem>>, vector<1x32x96xf32>
    %55 = vector.shape_cast %54 : vector<1x32x96xf32> to vector<32x96xf32>
    %cst_31 = arith.constant dense<0.000000e+00> : vector<32x96xf32>
    %56 = tpu.matmul %53, %55, %cst_31 {dimension_numbers = #tpu.dot_dimension_numbers<[1], [0], [0], [1], [0, 0, 1, 1], [], []>} : vector<32x32xf32>, vector<32x96xf32>, vector<32x96xf32> -> vector<32x96xf32>
    %c0_32 = arith.constant 0 : index
    %c0_33 = arith.constant 0 : index
    %c0_34 = arith.constant 0 : index
    %57 = vector.load %arg11[%c0_32, %c0_33, %c0_34] : memref<2x1x96xf32, #tpu.memory_space<vmem>>, vector<1x1x96xf32>
    %58 = vector.shape_cast %57 : vector<1x1x96xf32> to vector<1x96xf32>
    %59 = vector.broadcast %58 : vector<1x96xf32> to vector<32x96xf32>
    %60 = arith.addf %56, %59 : vector<32x96xf32>
    %61 = vector.shape_cast %60 : vector<32x96xf32> to vector<2x16x96xf32>
    %62 = vector.extract_strided_slice %61 {offsets = [0, 0, 0], sizes = [2, 16, 8], strides = [1, 1, 1]} : vector<2x16x96xf32> to vector<2x16x8xf32>
    %63 = vector.extract_strided_slice %61 {offsets = [0, 0, 32], sizes = [2, 16, 8], strides = [1, 1, 1]} : vector<2x16x96xf32> to vector<2x16x8xf32>
    %64 = vector.extract_strided_slice %61 {offsets = [0, 0, 64], sizes = [2, 16, 8], strides = [1, 1, 1]} : vector<2x16x96xf32> to vector<2x16x8xf32>
    "tpu.trace_start"() <{level = 10 : i32, message = "bqd,bkd->bqk"}> : () -> ()
    %cst_35 = arith.constant dense<0.000000e+00> : vector<2x16x16xf32>
    %65 = tpu.matmul %62, %63, %cst_35 {dimension_numbers = #tpu.dot_dimension_numbers<[2], [2], [1], [1], [0, 0, 0, 1, 1, 1], [0], [0]>} : vector<2x16x8xf32>, vector<2x16x8xf32>, vector<2x16x16xf32> -> vector<2x16x16xf32>
    "tpu.trace_stop"() : () -> ()
    %cst_36 = arith.constant 0.353553385 : f32
    %66 = vector.broadcast %cst_36 : f32 to vector<2x16x16xf32>
    %67 = arith.mulf %65, %66 : vector<2x16x16xf32>
    %cst_37 = arith.constant -1.000000e+30 : f32
    %68 = vector.shape_cast %27 : vector<16x16xi1> to vector<1x16x16xi1>
    %69 = vector.broadcast %68 : vector<1x16x16xi1> to vector<2x16x16xi1>
    %70 = vector.broadcast %cst_37 : f32 to vector<2x16x16xf32>
    %71 = arith.select %69, %67, %70 : vector<2x16x16xi1>, vector<2x16x16xf32>
    %cst_38 = arith.constant dense<0xFF800000> : vector<2x16xf32>
    %72 = vector.multi_reduction <maximumf>, %71, %cst_38 [2] : vector<2x16x16xf32> to vector<2x16xf32>
    %73 = vector.shape_cast %72 : vector<2x16xf32> to vector<2x16x1xf32>
    %74 = vector.broadcast %73 : vector<2x16x1xf32> to vector<2x16x16xf32>
    %75 = arith.subf %71, %74 : vector<2x16x16xf32>
    %76 = math.exp %75 : vector<2x16x16xf32>
    %cst_39 = arith.constant dense<0.000000e+00> : vector<2x16xf32>
    %77 = vector.multi_reduction <add>, %76, %cst_39 [2] : vector<2x16x16xf32> to vector<2x16xf32>
    %78 = vector.shape_cast %77 : vector<2x16xf32> to vector<2x16x1xf32>
    %79 = tpu.reciprocal %78 {approx = true} : vector<2x16x1xf32> -> vector<2x16x1xf32>
    %80 = vector.broadcast %79 : vector<2x16x1xf32> to vector<2x16x16xf32>
    %81 = arith.mulf %76, %80 : vector<2x16x16xf32>
    "tpu.trace_start"() <{level = 10 : i32, message = "bqk,bkd->bqd"}> : () -> ()
    %cst_40 = arith.constant dense<0.000000e+00> : vector<2x16x8xf32>
    %82 = tpu.matmul %81, %64, %cst_40 {dimension_numbers = #tpu.dot_dimension_numbers<[2], [1], [1], [2], [0, 0, 0, 1, 1, 2], [0], [0]>} : vector<2x16x16xf32>, vector<2x16x8xf32>, vector<2x16x8xf32> -> vector<2x16x8xf32>
    "tpu.trace_stop"() : () -> ()
    %83 = vector.extract_strided_slice %61 {offsets = [0, 0, 8], sizes = [2, 16, 8], strides = [1, 1, 1]} : vector<2x16x96xf32> to vector<2x16x8xf32>
    %84 = vector.extract_strided_slice %61 {offsets = [0, 0, 40], sizes = [2, 16, 8], strides = [1, 1, 1]} : vector<2x16x96xf32> to vector<2x16x8xf32>
    %85 = vector.extract_strided_slice %61 {offsets = [0, 0, 72], sizes = [2, 16, 8], strides = [1, 1, 1]} : vector<2x16x96xf32> to vector<2x16x8xf32>
    "tpu.trace_start"() <{level = 10 : i32, message = "bqd,bkd->bqk"}> : () -> ()
    %cst_41 = arith.constant dense<0.000000e+00> : vector<2x16x16xf32>
    %86 = tpu.matmul %83, %84, %cst_41 {dimension_numbers = #tpu.dot_dimension_numbers<[2], [2], [1], [1], [0, 0, 0, 1, 1, 1], [0], [0]>} : vector<2x16x8xf32>, vector<2x16x8xf32>, vector<2x16x16xf32> -> vector<2x16x16xf32>
    "tpu.trace_stop"() : () -> ()
    %cst_42 = arith.constant 0.353553385 : f32
    %87 = vector.broadcast %cst_42 : f32 to vector<2x16x16xf32>
    %88 = arith.mulf %86, %87 : vector<2x16x16xf32>
    %cst_43 = arith.constant -1.000000e+30 : f32
    %89 = vector.shape_cast %27 : vector<16x16xi1> to vector<1x16x16xi1>
    %90 = vector.broadcast %89 : vector<1x16x16xi1> to vector<2x16x16xi1>
    %91 = vector.broadcast %cst_43 : f32 to vector<2x16x16xf32>
    %92 = arith.select %90, %88, %91 : vector<2x16x16xi1>, vector<2x16x16xf32>
    %cst_44 = arith.constant dense<0xFF800000> : vector<2x16xf32>
    %93 = vector.multi_reduction <maximumf>, %92, %cst_44 [2] : vector<2x16x16xf32> to vector<2x16xf32>
    %94 = vector.shape_cast %93 : vector<2x16xf32> to vector<2x16x1xf32>
    %95 = vector.broadcast %94 : vector<2x16x1xf32> to vector<2x16x16xf32>
    %96 = arith.subf %92, %95 : vector<2x16x16xf32>
    %97 = math.exp %96 : vector<2x16x16xf32>
    %cst_45 = arith.constant dense<0.000000e+00> : vector<2x16xf32>
    %98 = vector.multi_reduction <add>, %97, %cst_45 [2] : vector<2x16x16xf32> to vector<2x16xf32>
    %99 = vector.shape_cast %98 : vector<2x16xf32> to vector<2x16x1xf32>
    %100 = tpu.reciprocal %99 {approx = true} : vector<2x16x1xf32> -> vector<2x16x1xf32>
    %101 = vector.broadcast %100 : vector<2x16x1xf32> to vector<2x16x16xf32>
    %102 = arith.mulf %97, %101 : vector<2x16x16xf32>
    "tpu.trace_start"() <{level = 10 : i32, message = "bqk,bkd->bqd"}> : () -> ()
    %cst_46 = arith.constant dense<0.000000e+00> : vector<2x16x8xf32>
    %103 = tpu.matmul %102, %85, %cst_46 {dimension_numbers = #tpu.dot_dimension_numbers<[2], [1], [1], [2], [0, 0, 0, 1, 1, 2], [0], [0]>} : vector<2x16x16xf32>, vector<2x16x8xf32>, vector<2x16x8xf32> -> vector<2x16x8xf32>
    "tpu.trace_stop"() : () -> ()
    %104 = vector.extract_strided_slice %61 {offsets = [0, 0, 16], sizes = [2, 16, 8], strides = [1, 1, 1]} : vector<2x16x96xf32> to vector<2x16x8xf32>
    %105 = vector.extract_strided_slice %61 {offsets = [0, 0, 48], sizes = [2, 16, 8], strides = [1, 1, 1]} : vector<2x16x96xf32> to vector<2x16x8xf32>
    %106 = vector.extract_strided_slice %61 {offsets = [0, 0, 80], sizes = [2, 16, 8], strides = [1, 1, 1]} : vector<2x16x96xf32> to vector<2x16x8xf32>
    "tpu.trace_start"() <{level = 10 : i32, message = "bqd,bkd->bqk"}> : () -> ()
    %cst_47 = arith.constant dense<0.000000e+00> : vector<2x16x16xf32>
    %107 = tpu.matmul %104, %105, %cst_47 {dimension_numbers = #tpu.dot_dimension_numbers<[2], [2], [1], [1], [0, 0, 0, 1, 1, 1], [0], [0]>} : vector<2x16x8xf32>, vector<2x16x8xf32>, vector<2x16x16xf32> -> vector<2x16x16xf32>
    "tpu.trace_stop"() : () -> ()
    %cst_48 = arith.constant 0.353553385 : f32
    %108 = vector.broadcast %cst_48 : f32 to vector<2x16x16xf32>
    %109 = arith.mulf %107, %108 : vector<2x16x16xf32>
    %cst_49 = arith.constant -1.000000e+30 : f32
    %110 = vector.shape_cast %27 : vector<16x16xi1> to vector<1x16x16xi1>
    %111 = vector.broadcast %110 : vector<1x16x16xi1> to vector<2x16x16xi1>
    %112 = vector.broadcast %cst_49 : f32 to vector<2x16x16xf32>
    %113 = arith.select %111, %109, %112 : vector<2x16x16xi1>, vector<2x16x16xf32>
    %cst_50 = arith.constant dense<0xFF800000> : vector<2x16xf32>
    %114 = vector.multi_reduction <maximumf>, %113, %cst_50 [2] : vector<2x16x16xf32> to vector<2x16xf32>
    %115 = vector.shape_cast %114 : vector<2x16xf32> to vector<2x16x1xf32>
    %116 = vector.broadcast %115 : vector<2x16x1xf32> to vector<2x16x16xf32>
    %117 = arith.subf %113, %116 : vector<2x16x16xf32>
    %118 = math.exp %117 : vector<2x16x16xf32>
    %cst_51 = arith.constant dense<0.000000e+00> : vector<2x16xf32>
    %119 = vector.multi_reduction <add>, %118, %cst_51 [2] : vector<2x16x16xf32> to vector<2x16xf32>
    %120 = vector.shape_cast %119 : vector<2x16xf32> to vector<2x16x1xf32>
    %121 = tpu.reciprocal %120 {approx = true} : vector<2x16x1xf32> -> vector<2x16x1xf32>
    %122 = vector.broadcast %121 : vector<2x16x1xf32> to vector<2x16x16xf32>
    %123 = arith.mulf %118, %122 : vector<2x16x16xf32>
    "tpu.trace_start"() <{level = 10 : i32, message = "bqk,bkd->bqd"}> : () -> ()
    %cst_52 = arith.constant dense<0.000000e+00> : vector<2x16x8xf32>
    %124 = tpu.matmul %123, %106, %cst_52 {dimension_numbers = #tpu.dot_dimension_numbers<[2], [1], [1], [2], [0, 0, 0, 1, 1, 2], [0], [0]>} : vector<2x16x16xf32>, vector<2x16x8xf32>, vector<2x16x8xf32> -> vector<2x16x8xf32>
    "tpu.trace_stop"() : () -> ()
    %125 = vector.extract_strided_slice %61 {offsets = [0, 0, 24], sizes = [2, 16, 8], strides = [1, 1, 1]} : vector<2x16x96xf32> to vector<2x16x8xf32>
    %126 = vector.extract_strided_slice %61 {offsets = [0, 0, 56], sizes = [2, 16, 8], strides = [1, 1, 1]} : vector<2x16x96xf32> to vector<2x16x8xf32>
    %127 = vector.extract_strided_slice %61 {offsets = [0, 0, 88], sizes = [2, 16, 8], strides = [1, 1, 1]} : vector<2x16x96xf32> to vector<2x16x8xf32>
    "tpu.trace_start"() <{level = 10 : i32, message = "bqd,bkd->bqk"}> : () -> ()
    %cst_53 = arith.constant dense<0.000000e+00> : vector<2x16x16xf32>
    %128 = tpu.matmul %125, %126, %cst_53 {dimension_numbers = #tpu.dot_dimension_numbers<[2], [2], [1], [1], [0, 0, 0, 1, 1, 1], [0], [0]>} : vector<2x16x8xf32>, vector<2x16x8xf32>, vector<2x16x16xf32> -> vector<2x16x16xf32>
    "tpu.trace_stop"() : () -> ()
    %cst_54 = arith.constant 0.353553385 : f32
    %129 = vector.broadcast %cst_54 : f32 to vector<2x16x16xf32>
    %130 = arith.mulf %128, %129 : vector<2x16x16xf32>
    %cst_55 = arith.constant -1.000000e+30 : f32
    %131 = vector.shape_cast %27 : vector<16x16xi1> to vector<1x16x16xi1>
    %132 = vector.broadcast %131 : vector<1x16x16xi1> to vector<2x16x16xi1>
    %133 = vector.broadcast %cst_55 : f32 to vector<2x16x16xf32>
    %134 = arith.select %132, %130, %133 : vector<2x16x16xi1>, vector<2x16x16xf32>
    %cst_56 = arith.constant dense<0xFF800000> : vector<2x16xf32>
    %135 = vector.multi_reduction <maximumf>, %134, %cst_56 [2] : vector<2x16x16xf32> to vector<2x16xf32>
    %136 = vector.shape_cast %135 : vector<2x16xf32> to vector<2x16x1xf32>
    %137 = vector.broadcast %136 : vector<2x16x1xf32> to vector<2x16x16xf32>
    %138 = arith.subf %134, %137 : vector<2x16x16xf32>
    %139 = math.exp %138 : vector<2x16x16xf32>
    %cst_57 = arith.constant dense<0.000000e+00> : vector<2x16xf32>
    %140 = vector.multi_reduction <add>, %139, %cst_57 [2] : vector<2x16x16xf32> to vector<2x16xf32>
    %141 = vector.shape_cast %140 : vector<2x16xf32> to vector<2x16x1xf32>
    %142 = tpu.reciprocal %141 {approx = true} : vector<2x16x1xf32> -> vector<2x16x1xf32>
    %143 = vector.broadcast %142 : vector<2x16x1xf32> to vector<2x16x16xf32>
    %144 = arith.mulf %139, %143 : vector<2x16x16xf32>
    "tpu.trace_start"() <{level = 10 : i32, message = "bqk,bkd->bqd"}> : () -> ()
    %cst_58 = arith.constant dense<0.000000e+00> : vector<2x16x8xf32>
    %145 = tpu.matmul %144, %127, %cst_58 {dimension_numbers = #tpu.dot_dimension_numbers<[2], [1], [1], [2], [0, 0, 0, 1, 1, 2], [0], [0]>} : vector<2x16x16xf32>, vector<2x16x8xf32>, vector<2x16x8xf32> -> vector<2x16x8xf32>
    "tpu.trace_stop"() : () -> ()
    %146 = tpu.concatenate %82, %103, %124, %145 in 2 : vector<2x16x8xf32>, vector<2x16x8xf32>, vector<2x16x8xf32>, vector<2x16x8xf32> -> vector<2x16x32xf32>
    %147 = vector.shape_cast %146 : vector<2x16x32xf32> to vector<32x32xf32>
    %c0_59 = arith.constant 0 : index
    %c0_60 = arith.constant 0 : index
    %c0_61 = arith.constant 0 : index
    %148 = vector.load %arg12[%c0_59, %c0_60, %c0_61] : memref<2x32x32xf32, #tpu.memory_space<vmem>>, vector<1x32x32xf32>
    %149 = vector.shape_cast %148 : vector<1x32x32xf32> to vector<32x32xf32>
    %cst_62 = arith.constant dense<0.000000e+00> : vector<32x32xf32>
    %150 = tpu.matmul %147, %149, %cst_62 {dimension_numbers = #tpu.dot_dimension_numbers<[1], [0], [0], [1], [0, 0, 1, 1], [], []>} : vector<32x32xf32>, vector<32x32xf32>, vector<32x32xf32> -> vector<32x32xf32>
    %c0_63 = arith.constant 0 : index
    %c0_64 = arith.constant 0 : index
    %c0_65 = arith.constant 0 : index
    %151 = vector.load %arg13[%c0_63, %c0_64, %c0_65] : memref<2x1x32xf32, #tpu.memory_space<vmem>>, vector<1x1x32xf32>
    %152 = vector.shape_cast %151 : vector<1x1x32xf32> to vector<1x32xf32>
    %153 = vector.broadcast %152 : vector<1x32xf32> to vector<32x32xf32>
    %154 = arith.addf %150, %153 : vector<32x32xf32>
    %155 = arith.addf %24, %154 : vector<32x32xf32>
    %c0_66 = arith.constant 0 : index
    %c0_67 = arith.constant 0 : index
    %c0_68 = arith.constant 0 : index
    %156 = vector.load %arg14[%c0_66, %c0_67, %c0_68] : memref<2x1x32xf32, #tpu.memory_space<vmem>>, vector<1x1x32xf32>
    %157 = vector.shape_cast %156 : vector<1x1x32xf32> to vector<1x32xf32>
    %c0_69 = arith.constant 0 : index
    %c0_70 = arith.constant 0 : index
    %c0_71 = arith.constant 0 : index
    %158 = vector.load %arg15[%c0_69, %c0_70, %c0_71] : memref<2x1x32xf32, #tpu.memory_space<vmem>>, vector<1x1x32xf32>
    %159 = vector.shape_cast %158 : vector<1x1x32xf32> to vector<1x32xf32>
    %cst_72 = arith.constant dense<0.000000e+00> : vector<32xf32>
    %160 = vector.multi_reduction <add>, %155, %cst_72 [1] : vector<32x32xf32> to vector<32xf32>
    %161 = vector.shape_cast %160 : vector<32xf32> to vector<32x1xf32>
    %cst_73 = arith.constant 3.200000e+01 : f32
    %162 = vector.broadcast %cst_73 : f32 to vector<32x1xf32>
    %163 = arith.divf %161, %162 : vector<32x1xf32>
    %164 = vector.broadcast %163 : vector<32x1xf32> to vector<32x32xf32>
    %165 = arith.subf %155, %164 : vector<32x32xf32>
    %166 = arith.mulf %165, %165 : vector<32x32xf32>
    %cst_74 = arith.constant dense<0.000000e+00> : vector<32xf32>
    %167 = vector.multi_reduction <add>, %166, %cst_74 [1] : vector<32x32xf32> to vector<32xf32>
    %168 = vector.shape_cast %167 : vector<32xf32> to vector<32x1xf32>
    %cst_75 = arith.constant 3.200000e+01 : f32
    %169 = vector.broadcast %cst_75 : f32 to vector<32x1xf32>
    %170 = arith.divf %168, %169 : vector<32x1xf32>
    %171 = vector.broadcast %163 : vector<32x1xf32> to vector<32x32xf32>
    %172 = arith.subf %155, %171 : vector<32x32xf32>
    %cst_76 = arith.constant 9.99999974E-6 : f32
    %173 = vector.broadcast %cst_76 : f32 to vector<32x1xf32>
    %174 = arith.addf %170, %173 : vector<32x1xf32>
    %175 = math.rsqrt %174 : vector<32x1xf32>
    %176 = vector.broadcast %175 : vector<32x1xf32> to vector<32x32xf32>
    %177 = arith.mulf %172, %176 : vector<32x32xf32>
    %178 = vector.broadcast %157 : vector<1x32xf32> to vector<32x32xf32>
    %179 = arith.mulf %177, %178 : vector<32x32xf32>
    %180 = vector.broadcast %159 : vector<1x32xf32> to vector<32x32xf32>
    %181 = arith.addf %179, %180 : vector<32x32xf32>
    %c0_77 = arith.constant 0 : index
    %c0_78 = arith.constant 0 : index
    %c0_79 = arith.constant 0 : index
    %182 = vector.load %arg16[%c0_77, %c0_78, %c0_79] : memref<2x32x64xf32, #tpu.memory_space<vmem>>, vector<1x32x64xf32>
    %183 = vector.shape_cast %182 : vector<1x32x64xf32> to vector<32x64xf32>
    %cst_80 = arith.constant dense<0.000000e+00> : vector<32x64xf32>
    %184 = tpu.matmul %181, %183, %cst_80 {dimension_numbers = #tpu.dot_dimension_numbers<[1], [0], [0], [1], [0, 0, 1, 1], [], []>} : vector<32x32xf32>, vector<32x64xf32>, vector<32x64xf32> -> vector<32x64xf32>
    %c0_81 = arith.constant 0 : index
    %c0_82 = arith.constant 0 : index
    %c0_83 = arith.constant 0 : index
    %185 = vector.load %arg17[%c0_81, %c0_82, %c0_83] : memref<2x1x64xf32, #tpu.memory_space<vmem>>, vector<1x1x64xf32>
    %186 = vector.shape_cast %185 : vector<1x1x64xf32> to vector<1x64xf32>
    %187 = vector.broadcast %186 : vector<1x64xf32> to vector<32x64xf32>
    %188 = arith.addf %184, %187 : vector<32x64xf32>
    %cst_84 = arith.constant 5.000000e-01 : f32
    %189 = vector.broadcast %cst_84 : f32 to vector<32x64xf32>
    %190 = arith.mulf %189, %188 : vector<32x64xf32>
    %cst_85 = arith.constant 0.707106769 : f32
    %191 = vector.broadcast %cst_85 : f32 to vector<32x64xf32>
    %192 = arith.mulf %188, %191 : vector<32x64xf32>
    %cst_86 = arith.constant 0.000000e+00 : f32
    %193 = vector.broadcast %cst_86 : f32 to vector<32x64xf32>
    %194 = arith.cmpf oge, %192, %193 : vector<32x64xf32>
    %cst_87 = arith.constant 1.000000e+00 : f32
    %cst_88 = arith.constant -1.000000e+00 : f32
    %195 = vector.broadcast %cst_87 : f32 to vector<32x64xf32>
    %196 = vector.broadcast %cst_88 : f32 to vector<32x64xf32>
    %197 = arith.select %194, %195, %196 : vector<32x64xi1>, vector<32x64xf32>
    %198 = math.absf %192 : vector<32x64xf32>
    %cst_89 = arith.constant 0.327591091 : f32
    %199 = vector.broadcast %cst_89 : f32 to vector<32x64xf32>
    %200 = arith.mulf %199, %198 : vector<32x64xf32>
    %cst_90 = arith.constant 1.000000e+00 : f32
    %201 = vector.broadcast %cst_90 : f32 to vector<32x64xf32>
    %202 = arith.addf %201, %200 : vector<32x64xf32>
    %cst_91 = arith.constant 1.000000e+00 : f32
    %203 = vector.broadcast %cst_91 : f32 to vector<32x64xf32>
    %204 = arith.divf %203, %202 : vector<32x64xf32>
    %cst_92 = arith.constant 1.06140542 : f32
    %205 = vector.broadcast %cst_92 : f32 to vector<32x64xf32>
    %206 = arith.mulf %205, %204 : vector<32x64xf32>
    %cst_93 = arith.constant -1.45315206 : f32
    %207 = vector.broadcast %cst_93 : f32 to vector<32x64xf32>
    %208 = arith.addf %206, %207 : vector<32x64xf32>
    %209 = arith.mulf %208, %204 : vector<32x64xf32>
    %cst_94 = arith.constant 1.42141378 : f32
    %210 = vector.broadcast %cst_94 : f32 to vector<32x64xf32>
    %211 = arith.addf %209, %210 : vector<32x64xf32>
    %212 = arith.mulf %211, %204 : vector<32x64xf32>
    %cst_95 = arith.constant -0.284496725 : f32
    %213 = vector.broadcast %cst_95 : f32 to vector<32x64xf32>
    %214 = arith.addf %212, %213 : vector<32x64xf32>
    %215 = arith.mulf %214, %204 : vector<32x64xf32>
    %cst_96 = arith.constant 0.254829586 : f32
    %216 = vector.broadcast %cst_96 : f32 to vector<32x64xf32>
    %217 = arith.addf %215, %216 : vector<32x64xf32>
    %218 = arith.mulf %217, %204 : vector<32x64xf32>
    %cst_97 = arith.constant 0.000000e+00 : f32
    %219 = vector.broadcast %cst_97 : f32 to vector<32x64xf32>
    %220 = arith.subf %219, %198 : vector<32x64xf32>
    %221 = arith.mulf %220, %198 : vector<32x64xf32>
    %222 = math.exp %221 : vector<32x64xf32>
    %223 = arith.mulf %218, %222 : vector<32x64xf32>
    %cst_98 = arith.constant 1.000000e+00 : f32
    %224 = vector.broadcast %cst_98 : f32 to vector<32x64xf32>
    %225 = arith.subf %224, %223 : vector<32x64xf32>
    %226 = arith.mulf %197, %225 : vector<32x64xf32>
    %cst_99 = arith.constant 1.000000e+00 : f32
    %227 = vector.broadcast %cst_99 : f32 to vector<32x64xf32>
    %228 = arith.addf %227, %226 : vector<32x64xf32>
    %229 = arith.mulf %190, %228 : vector<32x64xf32>
    %c0_100 = arith.constant 0 : index
    %c0_101 = arith.constant 0 : index
    %c0_102 = arith.constant 0 : index
    %230 = vector.load %arg18[%c0_100, %c0_101, %c0_102] : memref<2x64x32xf32, #tpu.memory_space<vmem>>, vector<1x64x32xf32>
    %231 = vector.shape_cast %230 : vector<1x64x32xf32> to vector<64x32xf32>
    %cst_103 = arith.constant dense<0.000000e+00> : vector<32x32xf32>
    %232 = tpu.matmul %229, %231, %cst_103 {dimension_numbers = #tpu.dot_dimension_numbers<[1], [0], [0], [1], [0, 0, 1, 1], [], []>} : vector<32x64xf32>, vector<64x32xf32>, vector<32x32xf32> -> vector<32x32xf32>
    %c0_104 = arith.constant 0 : index
    %c0_105 = arith.constant 0 : index
    %c0_106 = arith.constant 0 : index
    %233 = vector.load %arg19[%c0_104, %c0_105, %c0_106] : memref<2x1x32xf32, #tpu.memory_space<vmem>>, vector<1x1x32xf32>
    %234 = vector.shape_cast %233 : vector<1x1x32xf32> to vector<1x32xf32>
    %235 = vector.broadcast %234 : vector<1x32xf32> to vector<32x32xf32>
    %236 = arith.addf %232, %235 : vector<32x32xf32>
    %237 = arith.addf %155, %236 : vector<32x32xf32>
    %c1 = arith.constant 1 : index
    %c0_107 = arith.constant 0 : index
    %c0_108 = arith.constant 0 : index
    %238 = vector.load %arg8[%c1, %c0_107, %c0_108] : memref<2x1x32xf32, #tpu.memory_space<vmem>>, vector<1x1x32xf32>
    %239 = vector.shape_cast %238 : vector<1x1x32xf32> to vector<1x32xf32>
    %c1_109 = arith.constant 1 : index
    %c0_110 = arith.constant 0 : index
    %c0_111 = arith.constant 0 : index
    %240 = vector.load %arg9[%c1_109, %c0_110, %c0_111] : memref<2x1x32xf32, #tpu.memory_space<vmem>>, vector<1x1x32xf32>
    %241 = vector.shape_cast %240 : vector<1x1x32xf32> to vector<1x32xf32>
    %cst_112 = arith.constant dense<0.000000e+00> : vector<32xf32>
    %242 = vector.multi_reduction <add>, %237, %cst_112 [1] : vector<32x32xf32> to vector<32xf32>
    %243 = vector.shape_cast %242 : vector<32xf32> to vector<32x1xf32>
    %cst_113 = arith.constant 3.200000e+01 : f32
    %244 = vector.broadcast %cst_113 : f32 to vector<32x1xf32>
    %245 = arith.divf %243, %244 : vector<32x1xf32>
    %246 = vector.broadcast %245 : vector<32x1xf32> to vector<32x32xf32>
    %247 = arith.subf %237, %246 : vector<32x32xf32>
    %248 = arith.mulf %247, %247 : vector<32x32xf32>
    %cst_114 = arith.constant dense<0.000000e+00> : vector<32xf32>
    %249 = vector.multi_reduction <add>, %248, %cst_114 [1] : vector<32x32xf32> to vector<32xf32>
    %250 = vector.shape_cast %249 : vector<32xf32> to vector<32x1xf32>
    %cst_115 = arith.constant 3.200000e+01 : f32
    %251 = vector.broadcast %cst_115 : f32 to vector<32x1xf32>
    %252 = arith.divf %250, %251 : vector<32x1xf32>
    %253 = vector.broadcast %245 : vector<32x1xf32> to vector<32x32xf32>
    %254 = arith.subf %237, %253 : vector<32x32xf32>
    %cst_116 = arith.constant 9.99999974E-6 : f32
    %255 = vector.broadcast %cst_116 : f32 to vector<32x1xf32>
    %256 = arith.addf %252, %255 : vector<32x1xf32>
    %257 = math.rsqrt %256 : vector<32x1xf32>
    %258 = vector.broadcast %257 : vector<32x1xf32> to vector<32x32xf32>
    %259 = arith.mulf %254, %258 : vector<32x32xf32>
    %260 = vector.broadcast %239 : vector<1x32xf32> to vector<32x32xf32>
    %261 = arith.mulf %259, %260 : vector<32x32xf32>
    %262 = vector.broadcast %241 : vector<1x32xf32> to vector<32x32xf32>
    %263 = arith.addf %261, %262 : vector<32x32xf32>
    %c1_117 = arith.constant 1 : index
    %c0_118 = arith.constant 0 : index
    %c0_119 = arith.constant 0 : index
    %264 = vector.load %arg10[%c1_117, %c0_118, %c0_119] : memref<2x32x96xf32, #tpu.memory_space<vmem>>, vector<1x32x96xf32>
    %265 = vector.shape_cast %264 : vector<1x32x96xf32> to vector<32x96xf32>
    %cst_120 = arith.constant dense<0.000000e+00> : vector<32x96xf32>
    %266 = tpu.matmul %263, %265, %cst_120 {dimension_numbers = #tpu.dot_dimension_numbers<[1], [0], [0], [1], [0, 0, 1, 1], [], []>} : vector<32x32xf32>, vector<32x96xf32>, vector<32x96xf32> -> vector<32x96xf32>
    %c1_121 = arith.constant 1 : index
    %c0_122 = arith.constant 0 : index
    %c0_123 = arith.constant 0 : index
    %267 = vector.load %arg11[%c1_121, %c0_122, %c0_123] : memref<2x1x96xf32, #tpu.memory_space<vmem>>, vector<1x1x96xf32>
    %268 = vector.shape_cast %267 : vector<1x1x96xf32> to vector<1x96xf32>
    %269 = vector.broadcast %268 : vector<1x96xf32> to vector<32x96xf32>
    %270 = arith.addf %266, %269 : vector<32x96xf32>
    %271 = vector.shape_cast %270 : vector<32x96xf32> to vector<2x16x96xf32>
    %272 = vector.extract_strided_slice %271 {offsets = [0, 0, 0], sizes = [2, 16, 8], strides = [1, 1, 1]} : vector<2x16x96xf32> to vector<2x16x8xf32>
    %273 = vector.extract_strided_slice %271 {offsets = [0, 0, 32], sizes = [2, 16, 8], strides = [1, 1, 1]} : vector<2x16x96xf32> to vector<2x16x8xf32>
    %274 = vector.extract_strided_slice %271 {offsets = [0, 0, 64], sizes = [2, 16, 8], strides = [1, 1, 1]} : vector<2x16x96xf32> to vector<2x16x8xf32>
    "tpu.trace_start"() <{level = 10 : i32, message = "bqd,bkd->bqk"}> : () -> ()
    %cst_124 = arith.constant dense<0.000000e+00> : vector<2x16x16xf32>
    %275 = tpu.matmul %272, %273, %cst_124 {dimension_numbers = #tpu.dot_dimension_numbers<[2], [2], [1], [1], [0, 0, 0, 1, 1, 1], [0], [0]>} : vector<2x16x8xf32>, vector<2x16x8xf32>, vector<2x16x16xf32> -> vector<2x16x16xf32>
    "tpu.trace_stop"() : () -> ()
    %cst_125 = arith.constant 0.353553385 : f32
    %276 = vector.broadcast %cst_125 : f32 to vector<2x16x16xf32>
    %277 = arith.mulf %275, %276 : vector<2x16x16xf32>
    %cst_126 = arith.constant -1.000000e+30 : f32
    %278 = vector.shape_cast %27 : vector<16x16xi1> to vector<1x16x16xi1>
    %279 = vector.broadcast %278 : vector<1x16x16xi1> to vector<2x16x16xi1>
    %280 = vector.broadcast %cst_126 : f32 to vector<2x16x16xf32>
    %281 = arith.select %279, %277, %280 : vector<2x16x16xi1>, vector<2x16x16xf32>
    %cst_127 = arith.constant dense<0xFF800000> : vector<2x16xf32>
    %282 = vector.multi_reduction <maximumf>, %281, %cst_127 [2] : vector<2x16x16xf32> to vector<2x16xf32>
    %283 = vector.shape_cast %282 : vector<2x16xf32> to vector<2x16x1xf32>
    %284 = vector.broadcast %283 : vector<2x16x1xf32> to vector<2x16x16xf32>
    %285 = arith.subf %281, %284 : vector<2x16x16xf32>
    %286 = math.exp %285 : vector<2x16x16xf32>
    %cst_128 = arith.constant dense<0.000000e+00> : vector<2x16xf32>
    %287 = vector.multi_reduction <add>, %286, %cst_128 [2] : vector<2x16x16xf32> to vector<2x16xf32>
    %288 = vector.shape_cast %287 : vector<2x16xf32> to vector<2x16x1xf32>
    %289 = tpu.reciprocal %288 {approx = true} : vector<2x16x1xf32> -> vector<2x16x1xf32>
    %290 = vector.broadcast %289 : vector<2x16x1xf32> to vector<2x16x16xf32>
    %291 = arith.mulf %286, %290 : vector<2x16x16xf32>
    "tpu.trace_start"() <{level = 10 : i32, message = "bqk,bkd->bqd"}> : () -> ()
    %cst_129 = arith.constant dense<0.000000e+00> : vector<2x16x8xf32>
    %292 = tpu.matmul %291, %274, %cst_129 {dimension_numbers = #tpu.dot_dimension_numbers<[2], [1], [1], [2], [0, 0, 0, 1, 1, 2], [0], [0]>} : vector<2x16x16xf32>, vector<2x16x8xf32>, vector<2x16x8xf32> -> vector<2x16x8xf32>
    "tpu.trace_stop"() : () -> ()
    %293 = vector.extract_strided_slice %271 {offsets = [0, 0, 8], sizes = [2, 16, 8], strides = [1, 1, 1]} : vector<2x16x96xf32> to vector<2x16x8xf32>
    %294 = vector.extract_strided_slice %271 {offsets = [0, 0, 40], sizes = [2, 16, 8], strides = [1, 1, 1]} : vector<2x16x96xf32> to vector<2x16x8xf32>
    %295 = vector.extract_strided_slice %271 {offsets = [0, 0, 72], sizes = [2, 16, 8], strides = [1, 1, 1]} : vector<2x16x96xf32> to vector<2x16x8xf32>
    "tpu.trace_start"() <{level = 10 : i32, message = "bqd,bkd->bqk"}> : () -> ()
    %cst_130 = arith.constant dense<0.000000e+00> : vector<2x16x16xf32>
    %296 = tpu.matmul %293, %294, %cst_130 {dimension_numbers = #tpu.dot_dimension_numbers<[2], [2], [1], [1], [0, 0, 0, 1, 1, 1], [0], [0]>} : vector<2x16x8xf32>, vector<2x16x8xf32>, vector<2x16x16xf32> -> vector<2x16x16xf32>
    "tpu.trace_stop"() : () -> ()
    %cst_131 = arith.constant 0.353553385 : f32
    %297 = vector.broadcast %cst_131 : f32 to vector<2x16x16xf32>
    %298 = arith.mulf %296, %297 : vector<2x16x16xf32>
    %cst_132 = arith.constant -1.000000e+30 : f32
    %299 = vector.shape_cast %27 : vector<16x16xi1> to vector<1x16x16xi1>
    %300 = vector.broadcast %299 : vector<1x16x16xi1> to vector<2x16x16xi1>
    %301 = vector.broadcast %cst_132 : f32 to vector<2x16x16xf32>
    %302 = arith.select %300, %298, %301 : vector<2x16x16xi1>, vector<2x16x16xf32>
    %cst_133 = arith.constant dense<0xFF800000> : vector<2x16xf32>
    %303 = vector.multi_reduction <maximumf>, %302, %cst_133 [2] : vector<2x16x16xf32> to vector<2x16xf32>
    %304 = vector.shape_cast %303 : vector<2x16xf32> to vector<2x16x1xf32>
    %305 = vector.broadcast %304 : vector<2x16x1xf32> to vector<2x16x16xf32>
    %306 = arith.subf %302, %305 : vector<2x16x16xf32>
    %307 = math.exp %306 : vector<2x16x16xf32>
    %cst_134 = arith.constant dense<0.000000e+00> : vector<2x16xf32>
    %308 = vector.multi_reduction <add>, %307, %cst_134 [2] : vector<2x16x16xf32> to vector<2x16xf32>
    %309 = vector.shape_cast %308 : vector<2x16xf32> to vector<2x16x1xf32>
    %310 = tpu.reciprocal %309 {approx = true} : vector<2x16x1xf32> -> vector<2x16x1xf32>
    %311 = vector.broadcast %310 : vector<2x16x1xf32> to vector<2x16x16xf32>
    %312 = arith.mulf %307, %311 : vector<2x16x16xf32>
    "tpu.trace_start"() <{level = 10 : i32, message = "bqk,bkd->bqd"}> : () -> ()
    %cst_135 = arith.constant dense<0.000000e+00> : vector<2x16x8xf32>
    %313 = tpu.matmul %312, %295, %cst_135 {dimension_numbers = #tpu.dot_dimension_numbers<[2], [1], [1], [2], [0, 0, 0, 1, 1, 2], [0], [0]>} : vector<2x16x16xf32>, vector<2x16x8xf32>, vector<2x16x8xf32> -> vector<2x16x8xf32>
    "tpu.trace_stop"() : () -> ()
    %314 = vector.extract_strided_slice %271 {offsets = [0, 0, 16], sizes = [2, 16, 8], strides = [1, 1, 1]} : vector<2x16x96xf32> to vector<2x16x8xf32>
    %315 = vector.extract_strided_slice %271 {offsets = [0, 0, 48], sizes = [2, 16, 8], strides = [1, 1, 1]} : vector<2x16x96xf32> to vector<2x16x8xf32>
    %316 = vector.extract_strided_slice %271 {offsets = [0, 0, 80], sizes = [2, 16, 8], strides = [1, 1, 1]} : vector<2x16x96xf32> to vector<2x16x8xf32>
    "tpu.trace_start"() <{level = 10 : i32, message = "bqd,bkd->bqk"}> : () -> ()
    %cst_136 = arith.constant dense<0.000000e+00> : vector<2x16x16xf32>
    %317 = tpu.matmul %314, %315, %cst_136 {dimension_numbers = #tpu.dot_dimension_numbers<[2], [2], [1], [1], [0, 0, 0, 1, 1, 1], [0], [0]>} : vector<2x16x8xf32>, vector<2x16x8xf32>, vector<2x16x16xf32> -> vector<2x16x16xf32>
    "tpu.trace_stop"() : () -> ()
    %cst_137 = arith.constant 0.353553385 : f32
    %318 = vector.broadcast %cst_137 : f32 to vector<2x16x16xf32>
    %319 = arith.mulf %317, %318 : vector<2x16x16xf32>
    %cst_138 = arith.constant -1.000000e+30 : f32
    %320 = vector.shape_cast %27 : vector<16x16xi1> to vector<1x16x16xi1>
    %321 = vector.broadcast %320 : vector<1x16x16xi1> to vector<2x16x16xi1>
    %322 = vector.broadcast %cst_138 : f32 to vector<2x16x16xf32>
    %323 = arith.select %321, %319, %322 : vector<2x16x16xi1>, vector<2x16x16xf32>
    %cst_139 = arith.constant dense<0xFF800000> : vector<2x16xf32>
    %324 = vector.multi_reduction <maximumf>, %323, %cst_139 [2] : vector<2x16x16xf32> to vector<2x16xf32>
    %325 = vector.shape_cast %324 : vector<2x16xf32> to vector<2x16x1xf32>
    %326 = vector.broadcast %325 : vector<2x16x1xf32> to vector<2x16x16xf32>
    %327 = arith.subf %323, %326 : vector<2x16x16xf32>
    %328 = math.exp %327 : vector<2x16x16xf32>
    %cst_140 = arith.constant dense<0.000000e+00> : vector<2x16xf32>
    %329 = vector.multi_reduction <add>, %328, %cst_140 [2] : vector<2x16x16xf32> to vector<2x16xf32>
    %330 = vector.shape_cast %329 : vector<2x16xf32> to vector<2x16x1xf32>
    %331 = tpu.reciprocal %330 {approx = true} : vector<2x16x1xf32> -> vector<2x16x1xf32>
    %332 = vector.broadcast %331 : vector<2x16x1xf32> to vector<2x16x16xf32>
    %333 = arith.mulf %328, %332 : vector<2x16x16xf32>
    "tpu.trace_start"() <{level = 10 : i32, message = "bqk,bkd->bqd"}> : () -> ()
    %cst_141 = arith.constant dense<0.000000e+00> : vector<2x16x8xf32>
    %334 = tpu.matmul %333, %316, %cst_141 {dimension_numbers = #tpu.dot_dimension_numbers<[2], [1], [1], [2], [0, 0, 0, 1, 1, 2], [0], [0]>} : vector<2x16x16xf32>, vector<2x16x8xf32>, vector<2x16x8xf32> -> vector<2x16x8xf32>
    "tpu.trace_stop"() : () -> ()
    %335 = vector.extract_strided_slice %271 {offsets = [0, 0, 24], sizes = [2, 16, 8], strides = [1, 1, 1]} : vector<2x16x96xf32> to vector<2x16x8xf32>
    %336 = vector.extract_strided_slice %271 {offsets = [0, 0, 56], sizes = [2, 16, 8], strides = [1, 1, 1]} : vector<2x16x96xf32> to vector<2x16x8xf32>
    %337 = vector.extract_strided_slice %271 {offsets = [0, 0, 88], sizes = [2, 16, 8], strides = [1, 1, 1]} : vector<2x16x96xf32> to vector<2x16x8xf32>
    "tpu.trace_start"() <{level = 10 : i32, message = "bqd,bkd->bqk"}> : () -> ()
    %cst_142 = arith.constant dense<0.000000e+00> : vector<2x16x16xf32>
    %338 = tpu.matmul %335, %336, %cst_142 {dimension_numbers = #tpu.dot_dimension_numbers<[2], [2], [1], [1], [0, 0, 0, 1, 1, 1], [0], [0]>} : vector<2x16x8xf32>, vector<2x16x8xf32>, vector<2x16x16xf32> -> vector<2x16x16xf32>
    "tpu.trace_stop"() : () -> ()
    %cst_143 = arith.constant 0.353553385 : f32
    %339 = vector.broadcast %cst_143 : f32 to vector<2x16x16xf32>
    %340 = arith.mulf %338, %339 : vector<2x16x16xf32>
    %cst_144 = arith.constant -1.000000e+30 : f32
    %341 = vector.shape_cast %27 : vector<16x16xi1> to vector<1x16x16xi1>
    %342 = vector.broadcast %341 : vector<1x16x16xi1> to vector<2x16x16xi1>
    %343 = vector.broadcast %cst_144 : f32 to vector<2x16x16xf32>
    %344 = arith.select %342, %340, %343 : vector<2x16x16xi1>, vector<2x16x16xf32>
    %cst_145 = arith.constant dense<0xFF800000> : vector<2x16xf32>
    %345 = vector.multi_reduction <maximumf>, %344, %cst_145 [2] : vector<2x16x16xf32> to vector<2x16xf32>
    %346 = vector.shape_cast %345 : vector<2x16xf32> to vector<2x16x1xf32>
    %347 = vector.broadcast %346 : vector<2x16x1xf32> to vector<2x16x16xf32>
    %348 = arith.subf %344, %347 : vector<2x16x16xf32>
    %349 = math.exp %348 : vector<2x16x16xf32>
    %cst_146 = arith.constant dense<0.000000e+00> : vector<2x16xf32>
    %350 = vector.multi_reduction <add>, %349, %cst_146 [2] : vector<2x16x16xf32> to vector<2x16xf32>
    %351 = vector.shape_cast %350 : vector<2x16xf32> to vector<2x16x1xf32>
    %352 = tpu.reciprocal %351 {approx = true} : vector<2x16x1xf32> -> vector<2x16x1xf32>
    %353 = vector.broadcast %352 : vector<2x16x1xf32> to vector<2x16x16xf32>
    %354 = arith.mulf %349, %353 : vector<2x16x16xf32>
    "tpu.trace_start"() <{level = 10 : i32, message = "bqk,bkd->bqd"}> : () -> ()
    %cst_147 = arith.constant dense<0.000000e+00> : vector<2x16x8xf32>
    %355 = tpu.matmul %354, %337, %cst_147 {dimension_numbers = #tpu.dot_dimension_numbers<[2], [1], [1], [2], [0, 0, 0, 1, 1, 2], [0], [0]>} : vector<2x16x16xf32>, vector<2x16x8xf32>, vector<2x16x8xf32> -> vector<2x16x8xf32>
    "tpu.trace_stop"() : () -> ()
    %356 = tpu.concatenate %292, %313, %334, %355 in 2 : vector<2x16x8xf32>, vector<2x16x8xf32>, vector<2x16x8xf32>, vector<2x16x8xf32> -> vector<2x16x32xf32>
    %357 = vector.shape_cast %356 : vector<2x16x32xf32> to vector<32x32xf32>
    %c1_148 = arith.constant 1 : index
    %c0_149 = arith.constant 0 : index
    %c0_150 = arith.constant 0 : index
    %358 = vector.load %arg12[%c1_148, %c0_149, %c0_150] : memref<2x32x32xf32, #tpu.memory_space<vmem>>, vector<1x32x32xf32>
    %359 = vector.shape_cast %358 : vector<1x32x32xf32> to vector<32x32xf32>
    %cst_151 = arith.constant dense<0.000000e+00> : vector<32x32xf32>
    %360 = tpu.matmul %357, %359, %cst_151 {dimension_numbers = #tpu.dot_dimension_numbers<[1], [0], [0], [1], [0, 0, 1, 1], [], []>} : vector<32x32xf32>, vector<32x32xf32>, vector<32x32xf32> -> vector<32x32xf32>
    %c1_152 = arith.constant 1 : index
    %c0_153 = arith.constant 0 : index
    %c0_154 = arith.constant 0 : index
    %361 = vector.load %arg13[%c1_152, %c0_153, %c0_154] : memref<2x1x32xf32, #tpu.memory_space<vmem>>, vector<1x1x32xf32>
    %362 = vector.shape_cast %361 : vector<1x1x32xf32> to vector<1x32xf32>
    %363 = vector.broadcast %362 : vector<1x32xf32> to vector<32x32xf32>
    %364 = arith.addf %360, %363 : vector<32x32xf32>
    %365 = arith.addf %237, %364 : vector<32x32xf32>
    %c1_155 = arith.constant 1 : index
    %c0_156 = arith.constant 0 : index
    %c0_157 = arith.constant 0 : index
    %366 = vector.load %arg14[%c1_155, %c0_156, %c0_157] : memref<2x1x32xf32, #tpu.memory_space<vmem>>, vector<1x1x32xf32>
    %367 = vector.shape_cast %366 : vector<1x1x32xf32> to vector<1x32xf32>
    %c1_158 = arith.constant 1 : index
    %c0_159 = arith.constant 0 : index
    %c0_160 = arith.constant 0 : index
    %368 = vector.load %arg15[%c1_158, %c0_159, %c0_160] : memref<2x1x32xf32, #tpu.memory_space<vmem>>, vector<1x1x32xf32>
    %369 = vector.shape_cast %368 : vector<1x1x32xf32> to vector<1x32xf32>
    %cst_161 = arith.constant dense<0.000000e+00> : vector<32xf32>
    %370 = vector.multi_reduction <add>, %365, %cst_161 [1] : vector<32x32xf32> to vector<32xf32>
    %371 = vector.shape_cast %370 : vector<32xf32> to vector<32x1xf32>
    %cst_162 = arith.constant 3.200000e+01 : f32
    %372 = vector.broadcast %cst_162 : f32 to vector<32x1xf32>
    %373 = arith.divf %371, %372 : vector<32x1xf32>
    %374 = vector.broadcast %373 : vector<32x1xf32> to vector<32x32xf32>
    %375 = arith.subf %365, %374 : vector<32x32xf32>
    %376 = arith.mulf %375, %375 : vector<32x32xf32>
    %cst_163 = arith.constant dense<0.000000e+00> : vector<32xf32>
    %377 = vector.multi_reduction <add>, %376, %cst_163 [1] : vector<32x32xf32> to vector<32xf32>
    %378 = vector.shape_cast %377 : vector<32xf32> to vector<32x1xf32>
    %cst_164 = arith.constant 3.200000e+01 : f32
    %379 = vector.broadcast %cst_164 : f32 to vector<32x1xf32>
    %380 = arith.divf %378, %379 : vector<32x1xf32>
    %381 = vector.broadcast %373 : vector<32x1xf32> to vector<32x32xf32>
    %382 = arith.subf %365, %381 : vector<32x32xf32>
    %cst_165 = arith.constant 9.99999974E-6 : f32
    %383 = vector.broadcast %cst_165 : f32 to vector<32x1xf32>
    %384 = arith.addf %380, %383 : vector<32x1xf32>
    %385 = math.rsqrt %384 : vector<32x1xf32>
    %386 = vector.broadcast %385 : vector<32x1xf32> to vector<32x32xf32>
    %387 = arith.mulf %382, %386 : vector<32x32xf32>
    %388 = vector.broadcast %367 : vector<1x32xf32> to vector<32x32xf32>
    %389 = arith.mulf %387, %388 : vector<32x32xf32>
    %390 = vector.broadcast %369 : vector<1x32xf32> to vector<32x32xf32>
    %391 = arith.addf %389, %390 : vector<32x32xf32>
    %c1_166 = arith.constant 1 : index
    %c0_167 = arith.constant 0 : index
    %c0_168 = arith.constant 0 : index
    %392 = vector.load %arg16[%c1_166, %c0_167, %c0_168] : memref<2x32x64xf32, #tpu.memory_space<vmem>>, vector<1x32x64xf32>
    %393 = vector.shape_cast %392 : vector<1x32x64xf32> to vector<32x64xf32>
    %cst_169 = arith.constant dense<0.000000e+00> : vector<32x64xf32>
    %394 = tpu.matmul %391, %393, %cst_169 {dimension_numbers = #tpu.dot_dimension_numbers<[1], [0], [0], [1], [0, 0, 1, 1], [], []>} : vector<32x32xf32>, vector<32x64xf32>, vector<32x64xf32> -> vector<32x64xf32>
    %c1_170 = arith.constant 1 : index
    %c0_171 = arith.constant 0 : index
    %c0_172 = arith.constant 0 : index
    %395 = vector.load %arg17[%c1_170, %c0_171, %c0_172] : memref<2x1x64xf32, #tpu.memory_space<vmem>>, vector<1x1x64xf32>
    %396 = vector.shape_cast %395 : vector<1x1x64xf32> to vector<1x64xf32>
    %397 = vector.broadcast %396 : vector<1x64xf32> to vector<32x64xf32>
    %398 = arith.addf %394, %397 : vector<32x64xf32>
    %cst_173 = arith.constant 5.000000e-01 : f32
    %399 = vector.broadcast %cst_173 : f32 to vector<32x64xf32>
    %400 = arith.mulf %399, %398 : vector<32x64xf32>
    %cst_174 = arith.constant 0.707106769 : f32
    %401 = vector.broadcast %cst_174 : f32 to vector<32x64xf32>
    %402 = arith.mulf %398, %401 : vector<32x64xf32>
    %cst_175 = arith.constant 0.000000e+00 : f32
    %403 = vector.broadcast %cst_175 : f32 to vector<32x64xf32>
    %404 = arith.cmpf oge, %402, %403 : vector<32x64xf32>
    %cst_176 = arith.constant 1.000000e+00 : f32
    %cst_177 = arith.constant -1.000000e+00 : f32
    %405 = vector.broadcast %cst_176 : f32 to vector<32x64xf32>
    %406 = vector.broadcast %cst_177 : f32 to vector<32x64xf32>
    %407 = arith.select %404, %405, %406 : vector<32x64xi1>, vector<32x64xf32>
    %408 = math.absf %402 : vector<32x64xf32>
    %cst_178 = arith.constant 0.327591091 : f32
    %409 = vector.broadcast %cst_178 : f32 to vector<32x64xf32>
    %410 = arith.mulf %409, %408 : vector<32x64xf32>
    %cst_179 = arith.constant 1.000000e+00 : f32
    %411 = vector.broadcast %cst_179 : f32 to vector<32x64xf32>
    %412 = arith.addf %411, %410 : vector<32x64xf32>
    %cst_180 = arith.constant 1.000000e+00 : f32
    %413 = vector.broadcast %cst_180 : f32 to vector<32x64xf32>
    %414 = arith.divf %413, %412 : vector<32x64xf32>
    %cst_181 = arith.constant 1.06140542 : f32
    %415 = vector.broadcast %cst_181 : f32 to vector<32x64xf32>
    %416 = arith.mulf %415, %414 : vector<32x64xf32>
    %cst_182 = arith.constant -1.45315206 : f32
    %417 = vector.broadcast %cst_182 : f32 to vector<32x64xf32>
    %418 = arith.addf %416, %417 : vector<32x64xf32>
    %419 = arith.mulf %418, %414 : vector<32x64xf32>
    %cst_183 = arith.constant 1.42141378 : f32
    %420 = vector.broadcast %cst_183 : f32 to vector<32x64xf32>
    %421 = arith.addf %419, %420 : vector<32x64xf32>
    %422 = arith.mulf %421, %414 : vector<32x64xf32>
    %cst_184 = arith.constant -0.284496725 : f32
    %423 = vector.broadcast %cst_184 : f32 to vector<32x64xf32>
    %424 = arith.addf %422, %423 : vector<32x64xf32>
    %425 = arith.mulf %424, %414 : vector<32x64xf32>
    %cst_185 = arith.constant 0.254829586 : f32
    %426 = vector.broadcast %cst_185 : f32 to vector<32x64xf32>
    %427 = arith.addf %425, %426 : vector<32x64xf32>
    %428 = arith.mulf %427, %414 : vector<32x64xf32>
    %cst_186 = arith.constant 0.000000e+00 : f32
    %429 = vector.broadcast %cst_186 : f32 to vector<32x64xf32>
    %430 = arith.subf %429, %408 : vector<32x64xf32>
    %431 = arith.mulf %430, %408 : vector<32x64xf32>
    %432 = math.exp %431 : vector<32x64xf32>
    %433 = arith.mulf %428, %432 : vector<32x64xf32>
    %cst_187 = arith.constant 1.000000e+00 : f32
    %434 = vector.broadcast %cst_187 : f32 to vector<32x64xf32>
    %435 = arith.subf %434, %433 : vector<32x64xf32>
    %436 = arith.mulf %407, %435 : vector<32x64xf32>
    %cst_188 = arith.constant 1.000000e+00 : f32
    %437 = vector.broadcast %cst_188 : f32 to vector<32x64xf32>
    %438 = arith.addf %437, %436 : vector<32x64xf32>
    %439 = arith.mulf %400, %438 : vector<32x64xf32>
    %c1_189 = arith.constant 1 : index
    %c0_190 = arith.constant 0 : index
    %c0_191 = arith.constant 0 : index
    %440 = vector.load %arg18[%c1_189, %c0_190, %c0_191] : memref<2x64x32xf32, #tpu.memory_space<vmem>>, vector<1x64x32xf32>
    %441 = vector.shape_cast %440 : vector<1x64x32xf32> to vector<64x32xf32>
    %cst_192 = arith.constant dense<0.000000e+00> : vector<32x32xf32>
    %442 = tpu.matmul %439, %441, %cst_192 {dimension_numbers = #tpu.dot_dimension_numbers<[1], [0], [0], [1], [0, 0, 1, 1], [], []>} : vector<32x64xf32>, vector<64x32xf32>, vector<32x32xf32> -> vector<32x32xf32>
    %c1_193 = arith.constant 1 : index
    %c0_194 = arith.constant 0 : index
    %c0_195 = arith.constant 0 : index
    %443 = vector.load %arg19[%c1_193, %c0_194, %c0_195] : memref<2x1x32xf32, #tpu.memory_space<vmem>>, vector<1x1x32xf32>
    %444 = vector.shape_cast %443 : vector<1x1x32xf32> to vector<1x32xf32>
    %445 = vector.broadcast %444 : vector<1x32xf32> to vector<32x32xf32>
    %446 = arith.addf %442, %445 : vector<32x32xf32>
    %447 = arith.addf %365, %446 : vector<32x32xf32>
    %c0_196 = arith.constant 0 : index
    %c0_197 = arith.constant 0 : index
    %448 = vector.load %arg20[%c0_196, %c0_197] : memref<1x32xf32, #tpu.memory_space<vmem>>, vector<1x32xf32>
    %c0_198 = arith.constant 0 : index
    %c0_199 = arith.constant 0 : index
    %449 = vector.load %arg21[%c0_198, %c0_199] : memref<1x32xf32, #tpu.memory_space<vmem>>, vector<1x32xf32>
    %cst_200 = arith.constant dense<0.000000e+00> : vector<32xf32>
    %450 = vector.multi_reduction <add>, %447, %cst_200 [1] : vector<32x32xf32> to vector<32xf32>
    %451 = vector.shape_cast %450 : vector<32xf32> to vector<32x1xf32>
    %cst_201 = arith.constant 3.200000e+01 : f32
    %452 = vector.broadcast %cst_201 : f32 to vector<32x1xf32>
    %453 = arith.divf %451, %452 : vector<32x1xf32>
    %454 = vector.broadcast %453 : vector<32x1xf32> to vector<32x32xf32>
    %455 = arith.subf %447, %454 : vector<32x32xf32>
    %456 = arith.mulf %455, %455 : vector<32x32xf32>
    %cst_202 = arith.constant dense<0.000000e+00> : vector<32xf32>
    %457 = vector.multi_reduction <add>, %456, %cst_202 [1] : vector<32x32xf32> to vector<32xf32>
    %458 = vector.shape_cast %457 : vector<32xf32> to vector<32x1xf32>
    %cst_203 = arith.constant 3.200000e+01 : f32
    %459 = vector.broadcast %cst_203 : f32 to vector<32x1xf32>
    %460 = arith.divf %458, %459 : vector<32x1xf32>
    %461 = vector.broadcast %453 : vector<32x1xf32> to vector<32x32xf32>
    %462 = arith.subf %447, %461 : vector<32x32xf32>
    %cst_204 = arith.constant 9.99999974E-6 : f32
    %463 = vector.broadcast %cst_204 : f32 to vector<32x1xf32>
    %464 = arith.addf %460, %463 : vector<32x1xf32>
    %465 = math.rsqrt %464 : vector<32x1xf32>
    %466 = vector.broadcast %465 : vector<32x1xf32> to vector<32x32xf32>
    %467 = arith.mulf %462, %466 : vector<32x32xf32>
    %468 = vector.broadcast %448 : vector<1x32xf32> to vector<32x32xf32>
    %469 = arith.mulf %467, %468 : vector<32x32xf32>
    %470 = vector.broadcast %449 : vector<1x32xf32> to vector<32x32xf32>
    %471 = arith.addf %469, %470 : vector<32x32xf32>
    %c0_205 = arith.constant 0 : index
    %c0_206 = arith.constant 0 : index
    %472 = vector.load %arg22[%c0_205, %c0_206] : memref<1x32xf32, #tpu.memory_space<vmem>>, vector<1x32xf32>
    %c0_207 = arith.constant 0 : index
    %c0_208 = arith.constant 0 : index
    %473 = vector.load %arg23[%c0_207, %c0_208] : memref<1x32xf32, #tpu.memory_space<vmem>>, vector<1x32xf32>
    %cst_209 = arith.constant dense<0.000000e+00> : vector<32xf32>
    %474 = vector.multi_reduction <add>, %471, %cst_209 [1] : vector<32x32xf32> to vector<32xf32>
    %475 = vector.shape_cast %474 : vector<32xf32> to vector<32x1xf32>
    %cst_210 = arith.constant 3.200000e+01 : f32
    %476 = vector.broadcast %cst_210 : f32 to vector<32x1xf32>
    %477 = arith.divf %475, %476 : vector<32x1xf32>
    %478 = vector.broadcast %477 : vector<32x1xf32> to vector<32x32xf32>
    %479 = arith.subf %471, %478 : vector<32x32xf32>
    %480 = arith.mulf %479, %479 : vector<32x32xf32>
    %cst_211 = arith.constant dense<0.000000e+00> : vector<32xf32>
    %481 = vector.multi_reduction <add>, %480, %cst_211 [1] : vector<32x32xf32> to vector<32xf32>
    %482 = vector.shape_cast %481 : vector<32xf32> to vector<32x1xf32>
    %cst_212 = arith.constant 3.200000e+01 : f32
    %483 = vector.broadcast %cst_212 : f32 to vector<32x1xf32>
    %484 = arith.divf %482, %483 : vector<32x1xf32>
    %485 = vector.broadcast %477 : vector<32x1xf32> to vector<32x32xf32>
    %486 = arith.subf %471, %485 : vector<32x32xf32>
    %cst_213 = arith.constant 9.99999974E-6 : f32
    %487 = vector.broadcast %cst_213 : f32 to vector<32x1xf32>
    %488 = arith.addf %484, %487 : vector<32x1xf32>
    %489 = math.rsqrt %488 : vector<32x1xf32>
    %490 = vector.broadcast %489 : vector<32x1xf32> to vector<32x32xf32>
    %491 = arith.mulf %486, %490 : vector<32x32xf32>
    %492 = vector.broadcast %472 : vector<1x32xf32> to vector<32x32xf32>
    %493 = arith.mulf %491, %492 : vector<32x32xf32>
    %494 = vector.broadcast %473 : vector<1x32xf32> to vector<32x32xf32>
    %495 = arith.addf %493, %494 : vector<32x32xf32>
    %c0_214 = arith.constant 0 : index
    %c0_215 = arith.constant 0 : index
    %496 = vector.load %arg24[%c0_214, %c0_215] : memref<32x128xf32, #tpu.memory_space<vmem>>, vector<32x128xf32>
    %cst_216 = arith.constant dense<0.000000e+00> : vector<32x128xf32>
    %497 = tpu.matmul %495, %496, %cst_216 {dimension_numbers = #tpu.dot_dimension_numbers<[1], [0], [0], [1], [0, 0, 1, 1], [], []>} : vector<32x32xf32>, vector<32x128xf32>, vector<32x128xf32> -> vector<32x128xf32>
    %c0_217 = arith.constant 0 : index
    %c0_218 = arith.constant 0 : index
    %498 = vector.load %arg25[%c0_217, %c0_218] : memref<1x128xf32, #tpu.memory_space<vmem>>, vector<1x128xf32>
    %499 = vector.broadcast %498 : vector<1x128xf32> to vector<32x128xf32>
    %500 = arith.addf %497, %499 : vector<32x128xf32>
    %501 = vector.shape_cast %500 : vector<32x128xf32> to vector<2x16x128xf32>
    %c0_219 = arith.constant 0 : index
    %c0_220 = arith.constant 0 : index
    %c0_221 = arith.constant 0 : index
    %502 = vector.load %arg26[%c0_219, %c0_220, %c0_221] : memref<2x16x128xf32, #tpu.memory_space<vmem>>, vector<2x16x128xf32>
    tpu.vector_store %arg26[%c0_219, %c0_220, %c0_221], %501 {strides = array<i32>} : memref<2x16x128xf32, #tpu.memory_space<vmem>>, vector<2x16x128xf32>,
    return
  }
  func.func @transform_0(%arg0: i32) -> (i32, i32, i32) {
    %c0_i32 = arith.constant 0 : i32
    %c0_i32_0 = arith.constant 0 : i32
    %c0_i32_1 = arith.constant 0 : i32
    return %arg0, %c0_i32, %c0_i32_0 : i32, i32, i32
  }
  func.func @transform_1(%arg0: i32) -> (i32, i32) {
    %c0_i32 = arith.constant 0 : i32
    %c0_i32_0 = arith.constant 0 : i32
    %c0_i32_1 = arith.constant 0 : i32
    return %c0_i32, %c0_i32_0 : i32, i32
  }
  func.func @transform_2(%arg0: i32) -> (i32, i32, i32) {
    %c0_i32 = arith.constant 0 : i32
    %c0_i32_0 = arith.constant 0 : i32
    %c0_i32_1 = arith.constant 0 : i32
    return %arg0, %c0_i32, %c0_i32_0 : i32, i32, i32
  }
  func.func @transform_3(%arg0: i32) -> (i32, i32) {
    %c0_i32 = arith.constant 0 : i32
    %c0_i32_0 = arith.constant 0 : i32
    %c0_i32_1 = arith.constant 0 : i32
    return %c0_i32, %c0_i32_0 : i32, i32
  }
  func.func @transform_4(%arg0: i32) -> (i32, i32) {
    %c0_i32 = arith.constant 0 : i32
    %c0_i32_0 = arith.constant 0 : i32
    %c0_i32_1 = arith.constant 0 : i32
    return %c0_i32, %c0_i32_0 : i32, i32
  }
  func.func @transform_5(%arg0: i32) -> (i32, i32) {
    %c0_i32 = arith.constant 0 : i32
    %c0_i32_0 = arith.constant 0 : i32
    %c0_i32_1 = arith.constant 0 : i32
    return %c0_i32, %c0_i32_0 : i32, i32
  }
  func.func @transform_6(%arg0: i32) -> (i32, i32) {
    %c0_i32 = arith.constant 0 : i32
    %c0_i32_0 = arith.constant 0 : i32
    %c0_i32_1 = arith.constant 0 : i32
    return %c0_i32, %c0_i32_0 : i32, i32
  }
  func.func @transform_7(%arg0: i32) -> (i32, i32, i32) {
    %c0_i32 = arith.constant 0 : i32
    %c0_i32_0 = arith.constant 0 : i32
    %c0_i32_1 = arith.constant 0 : i32
    %c0_i32_2 = arith.constant 0 : i32
    return %c0_i32, %c0_i32_0, %c0_i32_1 : i32, i32, i32
  }
  func.func @transform_8(%arg0: i32) -> (i32, i32, i32) {
    %c0_i32 = arith.constant 0 : i32
    %c0_i32_0 = arith.constant 0 : i32
    %c0_i32_1 = arith.constant 0 : i32
    %c0_i32_2 = arith.constant 0 : i32
    return %c0_i32, %c0_i32_0, %c0_i32_1 : i32, i32, i32
  }
  func.func @transform_9(%arg0: i32) -> (i32, i32, i32) {
    %c0_i32 = arith.constant 0 : i32
    %c0_i32_0 = arith.constant 0 : i32
    %c0_i32_1 = arith.constant 0 : i32
    %c0_i32_2 = arith.constant 0 : i32
    return %c0_i32, %c0_i32_0, %c0_i32_1 : i32, i32, i32
  }
  func.func @transform_10(%arg0: i32) -> (i32, i32, i32) {
    %c0_i32 = arith.constant 0 : i32
    %c0_i32_0 = arith.constant 0 : i32
    %c0_i32_1 = arith.constant 0 : i32
    %c0_i32_2 = arith.constant 0 : i32
    return %c0_i32, %c0_i32_0, %c0_i32_1 : i32, i32, i32
  }
  func.func @transform_11(%arg0: i32) -> (i32, i32, i32) {
    %c0_i32 = arith.constant 0 : i32
    %c0_i32_0 = arith.constant 0 : i32
    %c0_i32_1 = arith.constant 0 : i32
    %c0_i32_2 = arith.constant 0 : i32
    return %c0_i32, %c0_i32_0, %c0_i32_1 : i32, i32, i32
  }
  func.func @transform_12(%arg0: i32) -> (i32, i32, i32) {
    %c0_i32 = arith.constant 0 : i32
    %c0_i32_0 = arith.constant 0 : i32
    %c0_i32_1 = arith.constant 0 : i32
    %c0_i32_2 = arith.constant 0 : i32
    return %c0_i32, %c0_i32_0, %c0_i32_1 : i32, i32, i32
  }
  func.func @transform_13(%arg0: i32) -> (i32, i32, i32) {
    %c0_i32 = arith.constant 0 : i32
    %c0_i32_0 = arith.constant 0 : i32
    %c0_i32_1 = arith.constant 0 : i32
    %c0_i32_2 = arith.constant 0 : i32
    return %c0_i32, %c0_i32_0, %c0_i32_1 : i32, i32, i32
  }
  func.func @transform_14(%arg0: i32) -> (i32, i32, i32) {
    %c0_i32 = arith.constant 0 : i32
    %c0_i32_0 = arith.constant 0 : i32
    %c0_i32_1 = arith.constant 0 : i32
    %c0_i32_2 = arith.constant 0 : i32
    return %c0_i32, %c0_i32_0, %c0_i32_1 : i32, i32, i32
  }
  func.func @transform_15(%arg0: i32) -> (i32, i32, i32) {
    %c0_i32 = arith.constant 0 : i32
    %c0_i32_0 = arith.constant 0 : i32
    %c0_i32_1 = arith.constant 0 : i32
    %c0_i32_2 = arith.constant 0 : i32
    return %c0_i32, %c0_i32_0, %c0_i32_1 : i32, i32, i32
  }
  func.func @transform_16(%arg0: i32) -> (i32, i32, i32) {
    %c0_i32 = arith.constant 0 : i32
    %c0_i32_0 = arith.constant 0 : i32
    %c0_i32_1 = arith.constant 0 : i32
    %c0_i32_2 = arith.constant 0 : i32
    return %c0_i32, %c0_i32_0, %c0_i32_1 : i32, i32, i32
  }
  func.func @transform_17(%arg0: i32) -> (i32, i32, i32) {
    %c0_i32 = arith.constant 0 : i32
    %c0_i32_0 = arith.constant 0 : i32
    %c0_i32_1 = arith.constant 0 : i32
    %c0_i32_2 = arith.constant 0 : i32
    return %c0_i32, %c0_i32_0, %c0_i32_1 : i32, i32, i32
  }
  func.func @transform_18(%arg0: i32) -> (i32, i32, i32) {
    %c0_i32 = arith.constant 0 : i32
    %c0_i32_0 = arith.constant 0 : i32
    %c0_i32_1 = arith.constant 0 : i32
    %c0_i32_2 = arith.constant 0 : i32
    return %c0_i32, %c0_i32_0, %c0_i32_1 : i32, i32, i32
  }
  func.func @transform_19(%arg0: i32) -> (i32, i32) {
    %c0_i32 = arith.constant 0 : i32
    %c0_i32_0 = arith.constant 0 : i32
    %c0_i32_1 = arith.constant 0 : i32
    return %c0_i32, %c0_i32_0 : i32, i32
  }
  func.func @transform_20(%arg0: i32) -> (i32, i32) {
    %c0_i32 = arith.constant 0 : i32
    %c0_i32_0 = arith.constant 0 : i32
    %c0_i32_1 = arith.constant 0 : i32
    return %c0_i32, %c0_i32_0 : i32, i32
  }
  func.func @transform_21(%arg0: i32) -> (i32, i32) {
    %c0_i32 = arith.constant 0 : i32
    %c0_i32_0 = arith.constant 0 : i32
    %c0_i32_1 = arith.constant 0 : i32
    return %c0_i32, %c0_i32_0 : i32, i32
  }
  func.func @transform_22(%arg0: i32) -> (i32, i32) {
    %c0_i32 = arith.constant 0 : i32
    %c0_i32_0 = arith.constant 0 : i32
    %c0_i32_1 = arith.constant 0 : i32
    return %c0_i32, %c0_i32_0 : i32, i32
  }
  func.func @transform_23(%arg0: i32) -> (i32, i32) {
    %c0_i32 = arith.constant 0 : i32
    %c0_i32_0 = arith.constant 0 : i32
    %c0_i32_1 = arith.constant 0 : i32
    return %c0_i32, %c0_i32_0 : i32, i32
  }
  func.func @transform_24(%arg0: i32) -> (i32, i32) {
    %c0_i32 = arith.constant 0 : i32
    %c0_i32_0 = arith.constant 0 : i32
    %c0_i32_1 = arith.constant 0 : i32
    return %c0_i32, %c0_i32_0 : i32, i32
  }
  func.func @transform_25(%arg0: i32) -> (i32, i32, i32) {
    %c0_i32 = arith.constant 0 : i32
    %c0_i32_0 = arith.constant 0 : i32
    %c0_i32_1 = arith.constant 0 : i32
    return %arg0, %c0_i32, %c0_i32_0 : i32, i32, i32
  }
}

</mosaic_0001>

<bundles_post_ra>
// kernel: tpu_custom_call.1
= control target key start
LH: loop header
LB: loop body
LE: loop exit
PB: predicated region body
PF: predicated region fallthrough
CT: control target
= control target key end

     0   :  { %s9489_s0 = inlined_call_operand.vmem [shape: f32[4,16,32], index: 0, kind: input, shape index: {}]   ;;  %s9490_s1 = inlined_call_operand.vmem [shape: f32[16,32], index: 1, kind: input, shape index: {}]   ;;  %s9491_s2 = inlined_call_operand.vmem [shape: f32[4,16,5], index: 2, kind: input, shape index: {}]   ;;  %s9492_s3 = inlined_call_operand.hbm [shape: f32[5,32], index: 3, kind: input, shape index: {}]   ;;  %s9493_s4 = inlined_call_operand.hbm [shape: f32[1,32], index: 4, kind: input, shape index: {}]   ;;  %s9494_s5 = inlined_call_operand.vmem [shape: f32[32,32], index: 5, kind: input, shape index: {}]   ;;  %s9495_s6 = inlined_call_operand.hbm [shape: f32[1,32], index: 6, kind: input, shape index: {}]   ;;  %s9496_s7 = inlined_call_operand.vmem [shape: f32[2,1,32], index: 7, kind: input, shape index: {}]   ;;  %s9497_s8 = inlined_call_operand.hbm [shape: f32[2,1,32], index: 8, kind: input, shape index: {}]   ;;  %s9498_s9 = inlined_call_operand.vmem [shape: f32[2,32,96], index: 9, kind: input, shape index: {}]   ;;  %s9499_s10 = inlined_call_operand.hbm [shape: f32[2,1,96], index: 10, kind: input, shape index: {}]   ;;  %s9500_s11 = inlined_call_operand.vmem [shape: f32[2,32,32], index: 11, kind: input, shape index: {}]   ;;  %s9501_s12 = inlined_call_operand.hbm [shape: f32[2,1,32], index: 12, kind: input, shape index: {}]   ;;  %s9502_s13 = inlined_call_operand.hbm [shape: f32[2,1,32], index: 13, kind: input, shape index: {}]   ;;  %s9503_s14 = inlined_call_operand.hbm [shape: f32[2,1,32], index: 14, kind: input, shape index: {}]   ;;  %s9504_s15 = inlined_call_operand.hbm [shape: f32[2,32,64], index: 15, kind: input, shape index: {}]   ;;  %s9505_s16 = inlined_call_operand.hbm [shape: f32[2,1,64], index: 16, kind: input, shape index: {}]   ;;  %s9506_s17 = inlined_call_operand.vmem [shape: f32[2,64,32], index: 17, kind: input, shape index: {}]   ;;  %s9507_s18 = inlined_call_operand.vmem [shape: f32[2,1,32], index: 18, kind: input, shape index: {}]   ;;  %s9508_s19 = inlined_call_operand.hbm [shape: f32[1,32], index: 19, kind: input, shape index: {}]   ;;  %s9509_s20 = inlined_call_operand.vmem [shape: f32[1,32], index: 20, kind: input, shape index: {}]   ;;  %s9510_s21 = inlined_call_operand.vmem [shape: f32[1,32], index: 21, kind: input, shape index: {}]   ;;  %s9511_s22 = inlined_call_operand.vmem [shape: f32[1,32], index: 22, kind: input, shape index: {}]   ;;  %s9512_s23 = inlined_call_operand.hbm [shape: f32[32,128], index: 23, kind: input, shape index: {}]   ;;  %s9513_s24 = inlined_call_operand.vmem [shape: f32[1,128], index: 24, kind: input, shape index: {}]   ;;  %s9514_s25 = inlined_call_operand.hbm [shape: f32[4,16,128], index: 25, kind: output, shape index: {}]  }
   0x1   :  { %9563 = sst [smem:[#allocation38_spill]] %s9489_s0 }
   0x2   :  { %9564 = sst [smem:[#allocation39_spill]] %s9490_s1 }
   0x3   :  { %9565 = sst [smem:[#allocation40_spill]] %s9491_s2 }
   0x4   :  { %9566 = sst [smem:[#allocation41_spill]] %s9492_s3 }
   0x5   :  { %9567 = sst [smem:[#allocation42_spill]] %s9493_s4 }
   0x6   :  { %9568 = sst [smem:[#allocation43_spill]] %s9494_s5 }
   0x7   :  { %9569 = sst [smem:[#allocation44_spill]] %s9495_s6 }
   0x8   :  { %9570 = sst [smem:[#allocation45_spill]] %s9496_s7 }
   0x9   :  { %9571 = sst [smem:[#allocation46_spill]] %s9497_s8 }
   0xa   :  { %9572 = sst [smem:[#allocation47_spill]] %s9498_s9 }
   0xb   :  { %9573 = sst [smem:[#allocation48_spill]] %s9499_s10 }
   0xc   :  { %9574 = sst [smem:[#allocation49_spill]] %s9514_s25 }
   0xd   :  { %30 = vsyncpa [#allocation3], 0 }
   0xe   :  { %31 = vsyncpa [#allocation6], 0 }
   0xf   :  { %32 = vsyncpa [#allocation9], 0 }
  0x10   :  { %33 = vsyncpa [#allocation12], 0 }
  0x11   :  { %34 = vsyncpa [#allocation15], 0 }
  0x12   :  { %35 = vsyncpa [#allocation18], 0 }
  0x13   :  { %36 = vsyncpa [#allocation21], 0 }
  0x14   :  { %37 = vsyncpa [#allocation4], 0 }
  0x15   :  { %39 = vsyncpa [#allocation4 + $0x1], 0  ;;  %s8263_s29 = smov 0   ;;  %s8265_s2 = smov 0  }
  0x16   :  { %s8267_s6 = smov 0   ;;  %s8269_s30 = smov 0  }
  0x17 LB: > { %9575 = sst [smem:[#allocation31_spill]] %s8086_s29  ;;  %s8284_s7 = sadd.s32 4294967295, %s8098_s30   ;;  %s8098_s30 = sphi %s8269_s30, %s9640_s30   ;;  %s8094_s6 = sphi %s8267_s6, %s9642_s6   ;;  %s8090_s2 = sphi %s8265_s2, %s9644_s2   ;;  %s8086_s29 = sphi %s8263_s29, %s9643_s29  }
  0x18   : > { %9576 = sst [smem:[#allocation32_spill]] %s8094_s6  ;;  %s6474_s3 = sadd.s32 4294967294, %s8098_s30  }
  0x19   : > { %9577 = sst [smem:[#allocation33_spill]] %s8098_s30  ;;  %s8288_s26 = sadd.s32 1, %s8098_s30  }
  0x1a   : > { %9578 = sst [smem:[#allocation34_spill]] %s8288_s26  ;;  %s587_s1 = sadd.s32 1, %s8094_s6 }
  0x1b   : > { %s584_s8 = ssub.s32 %s8098_s30, %s8288_s26  ;;  %p597_p0 = scmp.ne.s32.totalorder %s8094_s6, %s8090_s2 }
  0x1c   : > { %p585_p1 = scmp.eq.s32.totalorder %s584_s8, 0  ;;  %p598_p2 = scmp.eq.s32.totalorder %s8284_s7, 1 }
  0x1d   : > { %p603_p3 = scmp.ne.s32.totalorder %s8090_s2, %s8086_s29  ;;  %p604_p4 = scmp.eq.s32.totalorder %s6474_s3, 1 }
  0x1e   : > { %s8299_s27 = scalar_select %p585_p1, %s8094_s6, %s587_s1  }
  0x1f   : > { %p8301_p5 = por %p598_p2, %p597_p0  ;;  %p8305_p6 = por %p604_p4, %p603_p3 }
  0x20   : > { %9579 = sst [smem:[#allocation35_spill]] %s8299_s27  ;;  %p6475_p7 = scmp.ge.s32.totalorder %s8098_s30, 1 }
  0x21   : > { %s9580_s4 = scalar_select %p8301_p5, 1, 0 }
  0x22   : > { %s9582_s28 = scalar_select %p8305_p6, 1, 0 }
  0x23   : > { %9581 = sst [smem:[#allocation36_spill]] %s9580_s4  ;;  %p611_p8 = scmp.lt.s32.totalorder %s8098_s30, 3 }
  0x24   : > { %9583 = sst [smem:[#allocation37_spill]] %s9582_s28  ;;  %p9525_p9 = scmp.eq.s32.totalorder %s8284_s7, 0 }
  0x25   : > { %p8312_p10 = pnand %p6475_p7, %p611_p8  ;;  %s8100_s5 = smov [#allocation5]  }
  0x26   : > { %s638_s0 = sshll.u32 %s8100_s5, 4  ;;  %s8101_s3 = smov [#allocation8]   ;;  %s639_s0 = int_to_ptr.vmem [resolvable:$true] %s638_s0 }
  0x27   : > { %s9584_s9 = scalar_select %p8312_p10, 1, 0 }
  0x28   : > { %p7360_p11 = pneg %p8312_p10  ;;  %s665_s1 = sshll.u32 %s8101_s3, 4  ;;  %s8324_s1 = int_to_ptr.vmem [resolvable:$true] %s665_s1 }
  0x29   : > { %s8102_s27 = smov [#allocation11]   ;;  %s7709_s5 = scalar_lea.vmem %s639_s0, 16 }
  0x2a   : > { %p8320_p12 = pnand %p9525_p9, %p7360_p11  ;;  %s697_s6 = sshll.u32 %s8102_s27, 4  ;;  %s698_s6 = int_to_ptr.vmem [resolvable:$true] %s697_s6 }
  0x2b   : > { %p7710_p0 = scmp.ne.s32.totalorder %s639_s0, %s7709_s5  ;;  %s7716_s3 = scalar_lea.vmem %s639_s0, 32 }
  0x2c   : > { %p8328_p13 = pneg %p8320_p12  ;;  %p7717_p3 = scmp.lt.s32.totalorder %s639_s0, %s639_s0 }
  0x2d   : > { %p7718_p4 = scmp.lt.s32.totalorder %s7716_s3, %s7709_s5 }
  0x2e   : > { %p7712_p1 = pnand %p7710_p0, %p8328_p13 }
  0x2f   : > { %p7719_p7 = por %p7718_p4, %p7717_p3 }
  0x30   : > { %p7713_p2 = pneg %p7712_p1 }
  0x32   : > { %p7720_p8 = pnand %p7719_p7, %p7713_p2 }
  0x34   : > { %7723 = shalt.err (!%p7720_p8)
}
  0x35   : > { %s9587_s29 = sld [smem:[#allocation42_spill]]  ;;  %s7735_s30 = scalar_lea.vmem %s8324_s1, 32 }
  0x36   : > { %p7736_p11 = scmp.ne.s32.totalorder %s8324_s1, %s7735_s30  ;;  %p7743_p9 = scmp.lt.s32.totalorder %s8324_s1, %s8324_s1 }
  0x37   : > { %p7744_p3 = scmp.lt.s32.totalorder %s7735_s30, %s7735_s30 }
  0x38   : > { %p7738_p0 = pnand %p7736_p11, %p8328_p13 }
  0x39   : > { %p7745_p2 = por %p7744_p3, %p7743_p9 }
  0x3a   : > { %p7739_p1 = pneg %p7738_p0 }
  0x3b   : > { %7366 = dma.hbm_to_vmem [thread:$0]  (!%p8320_p12), %s9587_s29, 16, %s639_s0, [#allocation6]  }
  0x3c   : > { %p7746_p4 = pnand %p7745_p2, %p7739_p1 }
  0x3e   : > { %7749 = shalt.err (!%p7746_p4)
}
  0x3f   : > { %s9530_s5 = smov 16   ;;  %s9532_s28 = smov 1  }
  0x40   : > { %s9588_s3 = sld [smem:[#allocation46_spill]]  ;;  %s7761_s27 = scalar_lea.vmem %s698_s6, 32 }
  0x41   : > { %p7762_p7 = scmp.ne.s32.totalorder %s698_s6, %s7761_s27  ;;  %p7769_p11 = scmp.lt.s32.totalorder %s698_s6, %s698_s6 }
  0x42   : > { %p7770_p0 = scmp.lt.s32.totalorder %s7761_s27, %s7761_s27 }
  0x43   : > { %p7764_p9 = pnand %p7762_p7, %p8328_p13 }
  0x44   : > { %p7771_p1 = por %p7770_p0, %p7769_p11 }
  0x45   : > { %p7765_p8 = pneg %p7764_p9 }
  0x46   : > { %7372 = dma.hbm_to_vmem [thread:$0]  (!%p8320_p12), %s9588_s3, 32, %s8324_s1, [#allocation9], %s9530_s5, %s9530_s5, %s9532_s28  }
  0x47   : > { %p7772_p3 = pnand %p7771_p1, %p7765_p8 }
  0x49   : > { %7775 = shalt.err (!%p7772_p3)
}
  0x4a   : > { %7378 = dma.hbm_to_vmem [thread:$0]  (!%p8320_p12), %s9501_s12, 32, %s698_s6, [#allocation12], %s9530_s5, %s9530_s5, %s9532_s28  }
  0x4b   : > { %s8105_s1 = smov [#allocation14]   ;;  %s8106_s0 = smov [#allocation17]  }
  0x4c   : > { %s723_s29 = sshll.u32 %s8105_s1, 4  ;;  %s749_s3 = sshll.u32 %s8106_s0, 4  ;;  %s724_s29 = int_to_ptr.vmem [resolvable:$true] %s723_s29  ;;  %s750_s3 = int_to_ptr.vmem [resolvable:$true] %s749_s3 }
  0x4d   : > { %s7787_s4 = scalar_lea.vmem %s724_s29, 32  ;;  %p7795_p9 = scmp.lt.s32.totalorder %s724_s29, %s724_s29 }
  0x4e   : > { %p7788_p2 = scmp.ne.s32.totalorder %s724_s29, %s7787_s4  ;;  %p7796_p8 = scmp.lt.s32.totalorder %s7787_s4, %s7787_s4 }
  0x50   : > { %p7790_p4 = pnand %p7788_p2, %p8328_p13  ;;  %p7797_p11 = por %p7796_p8, %p7795_p9 }
  0x52   : > { %p7791_p7 = pneg %p7790_p4 }
  0x54   : > { %p7798_p0 = pnand %p7797_p11, %p7791_p7 }
  0x56   : > { %7801 = shalt.err (!%p7798_p0)
}
  0x57   : > { %7384 = dma.hbm_to_vmem [thread:$0]  (!%p8320_p12), %s9503_s14, 32, %s724_s29, [#allocation15], %s9530_s5, %s9530_s5, %s9532_s28  }
  0x58   : > { %s7813_s27 = scalar_lea.vmem %s750_s3, 32  ;;  %p7821_p4 = scmp.lt.s32.totalorder %s750_s3, %s750_s3 }
  0x59   : > { %p7814_p1 = scmp.ne.s32.totalorder %s750_s3, %s7813_s27  ;;  %p7822_p9 = scmp.lt.s32.totalorder %s7813_s27, %s7813_s27 }
  0x5b   : > { %p7816_p3 = pnand %p7814_p1, %p8328_p13  ;;  %p7823_p7 = por %p7822_p9, %p7821_p4 }
  0x5d   : > { %p7817_p2 = pneg %p7816_p3 }
  0x5f   : > { %p7824_p8 = pnand %p7823_p7, %p7817_p2 }
  0x61   : > { %7827 = shalt.err (!%p7824_p8)
}
  0x62   : > { %7390 = dma.hbm_to_vmem [thread:$0]  (!%p8320_p12), %s9505_s16, 32, %s750_s3, [#allocation18], %s9530_s5, %s9530_s5, %s9532_s28  }
  0x63   : > { %s8107_s1 = smov [#allocation2]   ;;  %s8108_s0 = smov [#allocation7]  }
  0x64   : > { %s627_s29 = sshll.u32 %s8107_s1, 4  ;;  %s652_s25 = sshll.u32 %s8108_s0, 4  ;;  %s628_s29 = int_to_ptr.vmem [resolvable:$true] %s627_s29  ;;  %s653_s25 = int_to_ptr.vmem [resolvable:$true] %s652_s25 }
  0x65   : > { %s7839_s6 = scalar_lea.vmem %s628_s29, 128  ;;  %p7847_p3 = scmp.lt.s32.totalorder %s628_s29, %s628_s29 }
  0x66   : > { %p7840_p11 = scmp.ne.s32.totalorder %s628_s29, %s7839_s6  ;;  %p7848_p2 = scmp.lt.s32.totalorder %s7839_s6, %s7839_s6 }
  0x68   : > { %p7842_p0 = pnand %p7840_p11, %p8328_p13  ;;  %p7849_p4 = por %p7848_p2, %p7847_p3 }
  0x6a   : > { %p7843_p1 = pneg %p7842_p0 }
  0x6c   : > { %p7850_p9 = pnand %p7849_p4, %p7843_p1 }
  0x6e   : > { %7853 = shalt.err (!%p7850_p9)
}
  0x6f   : > { %s9589_s3 = sld [smem:[#allocation41_spill]]  ;;  %s7865_s30 = scalar_lea.vmem %s653_s25, 16 }
  0x70   : > { %p7866_p7 = scmp.ne.s32.totalorder %s653_s25, %s7865_s30  ;;  %s7872_s1 = scalar_lea.vmem %s653_s25, 32 }
  0x71   : > { %p7873_p11 = scmp.lt.s32.totalorder %s653_s25, %s653_s25  ;;  %p7874_p0 = scmp.lt.s32.totalorder %s7872_s1, %s7865_s30 }
  0x72   : > { %p7868_p8 = pnand %p7866_p7, %p8328_p13 }
  0x73   : > { %p7875_p5 = por %p7874_p0, %p7873_p11 }
  0x74   : > { %p7869_p6 = pneg %p7868_p8 }
  0x75   : > { %7363 = dma.hbm_to_vmem [thread:$0]  (!%p8320_p12), %s9589_s3, 128, %s628_s29, [#allocation3]  }
  0x76   : > { %p7876_p3 = pnand %p7875_p5, %p7869_p6 }
  0x78   : > { %7879 = shalt.err (!%p7876_p3)
}
  0x79   : > { %s9590_s5 = sld [smem:[#allocation44_spill]]  ;;  %s8109_s29 = smov [#allocation10]  }
  0x7a   : > { %s681_s27 = sshll.u32 %s8109_s29, 4  ;;  %s8110_s4 = smov [#allocation13]   ;;  %s682_s27 = int_to_ptr.vmem [resolvable:$true] %s681_s27 }
  0x7b   : > { %s710_s3 = sshll.u32 %s8110_s4, 4  ;;  %s7891_s28 = scalar_lea.vmem %s682_s27, 32  ;;  %s711_s3 = int_to_ptr.vmem [resolvable:$true] %s710_s3 }
  0x7c   : > { %p7892_p1 = scmp.ne.s32.totalorder %s682_s27, %s7891_s28  ;;  %p7899_p9 = scmp.lt.s32.totalorder %s682_s27, %s682_s27 }
  0x7d   : > { %p7900_p5 = scmp.lt.s32.totalorder %s7891_s28, %s7891_s28 }
  0x7e   : > { %p7894_p2 = pnand %p7892_p1, %p8328_p13 }
  0x7f   : > { %7369 = dma.hbm_to_vmem [thread:$0]  (!%p8320_p12), %s9590_s5, 16, %s653_s25, [#allocation6]  }
  0x80   : > { %p7895_p4 = pneg %p7894_p2  ;;  %p7901_p6 = por %p7900_p5, %p7899_p9 }
  0x82   : > { %p7902_p7 = pnand %p7901_p6, %p7895_p4 }
  0x84   : > { %7905 = shalt.err (!%p7902_p7)
}
  0x85   : > { %s9591_s30 = smov 1   ;;  %s9592_s1 = smov 16  }
  0x86   : > { %s9593_s10 = sld [smem:[#allocation48_spill]]  ;;  %s7917_s0 = scalar_lea.vmem %s711_s3, 32 }
  0x87   : > { %p7918_p8 = scmp.ne.s32.totalorder %s711_s3, %s7917_s0  ;;  %p7925_p3 = scmp.lt.s32.totalorder %s711_s3, %s711_s3 }
  0x88   : > { %p7926_p1 = scmp.lt.s32.totalorder %s7917_s0, %s7917_s0 }
  0x89   : > { %p7920_p11 = pnand %p7918_p8, %p8328_p13 }
  0x8a   : > { %p7927_p2 = por %p7926_p1, %p7925_p3 }
  0x8b   : > { %p7921_p0 = pneg %p7920_p11 }
  0x8c   : > { %7375 = dma.hbm_to_vmem [thread:$0]  (!%p8320_p12), %s9593_s10, 32, %s682_s27, [#allocation9], %s9592_s1, %s9592_s1, %s9591_s30  }
  0x8d   : > { %p7928_p4 = pnand %p7927_p2, %p7921_p0 }
  0x8f   : > { %7931 = shalt.err (!%p7928_p4)
}
  0x90   : > { %7381 = dma.hbm_to_vmem [thread:$0]  (!%p8320_p12), %s9502_s13, 32, %s711_s3, [#allocation12], %s9592_s1, %s9592_s1, %s9591_s30  }
  0x91   : > { %s8111_s29 = smov [#allocation16]  }
  0x92   : > { %s736_s27 = sshll.u32 %s8111_s29, 4  ;;  %s737_s27 = int_to_ptr.vmem [resolvable:$true] %s736_s27 }
  0x93   : > { %s7943_s4 = scalar_lea.vmem %s737_s27, 1024  ;;  %p7951_p7 = scmp.lt.s32.totalorder %s737_s27, %s737_s27 }
  0x94   : > { %p7944_p9 = scmp.ne.s32.totalorder %s737_s27, %s7943_s4  ;;  %p7952_p8 = scmp.lt.s32.totalorder %s7943_s4, %s7943_s4 }
  0x96   : > { %p7946_p5 = pnand %p7944_p9, %p8328_p13  ;;  %p7953_p11 = por %p7952_p8, %p7951_p7 }
  0x98   : > { %p7947_p6 = pneg %p7946_p5 }
  0x9a   : > { %p7954_p0 = pnand %p7953_p11, %p7947_p6 }
  0x9c   : > { %7957 = shalt.err (!%p7954_p0)
}
  0x9d   : > { %s8112_s5 = smov 128   ;;  %s8113_s25 = smov 8  }
  0x9e   : > { %7387 = dma.hbm_to_vmem [thread:$0]  (!%p8320_p12), %s9504_s15, 1024, %s737_s27, [#allocation15], %s8112_s5, %s8112_s5, %s8113_s25  }
  0x9f   : > { %s8114_s1 = smov [#allocation19]   ;;  %s8115_s28 = smov [#allocation20]  }
  0xa0   : > { %s769_s0 = sshll.u32 %s8114_s1, 4  ;;  %s788_s6 = sshll.u32 %s8115_s28, 4  ;;  %s770_s0 = int_to_ptr.vmem [resolvable:$true] %s769_s0  ;;  %s789_s6 = int_to_ptr.vmem [resolvable:$true] %s788_s6 }
  0xa1   : > { %s7969_s29 = scalar_lea.vmem %s770_s0, 16  ;;  %s7976_s4 = scalar_lea.vmem %s770_s0, 32 }
  0xa2   : > { %p7970_p3 = scmp.ne.s32.totalorder %s770_s0, %s7969_s29  ;;  %p7977_p4 = scmp.lt.s32.totalorder %s770_s0, %s770_s0 }
  0xa3   : > { %p7978_p9 = scmp.lt.s32.totalorder %s7976_s4, %s7969_s29 }
  0xa4   : > { %p7972_p1 = pnand %p7970_p3, %p8328_p13 }
  0xa5   : > { %p7979_p5 = por %p7978_p9, %p7977_p4 }
  0xa6   : > { %p7973_p2 = pneg %p7972_p1 }
  0xa8   : > { %p7980_p6 = pnand %p7979_p5, %p7973_p2 }
  0xaa   : > { %7983 = shalt.err (!%p7980_p6)
}
  0xab   : > { %7393 = dma.hbm_to_vmem [thread:$0]  (!%p8320_p12), %s9508_s19, 16, %s770_s0, [#allocation18]  }
  0xac   : > { %s7995_s30 = scalar_lea.vmem %s789_s6, 512  ;;  %p8003_p0 = scmp.lt.s32.totalorder %s789_s6, %s789_s6 }
  0xad   : > { %p7996_p7 = scmp.ne.s32.totalorder %s789_s6, %s7995_s30  ;;  %p8004_p3 = scmp.lt.s32.totalorder %s7995_s30, %s7995_s30 }
  0xaf   : > { %p7998_p8 = pnand %p7996_p7, %p8328_p13  ;;  %p8005_p1 = por %p8004_p3, %p8003_p0 }
  0xb1   : > { %p7999_p11 = pneg %p7998_p8 }
  0xb3   : > { %p8006_p10 = pnand %p8005_p1, %p7999_p11 }
  0xb5   : > { %8009 = shalt.err (!%p8006_p10)
}
  0xb6   : > { %7396 = dma.hbm_to_vmem [thread:$0]  (!%p8320_p12), %s9512_s23, 512, %s789_s6, [#allocation21], %s8112_s5, %s8112_s5, %s8113_s25  }
  0xb7   : > { %p9594_p2 = scmp.ne.s32.totalorder %s9584_s9, 0 }
  0xb8   : > { %p9595_p13 = scmp.eq.s32.totalorder (!%p9594_p2), %s8284_s7, 0 }
  0xb9   : > { %827 = sbr.rel (%p9594_p2) target bundleno = 9610 (0x258a), region = 120 }
  0xbe   : > { %8053 = dma.done.wait (%p9595_p13), [#allocation3], 128   ;;  %p9596_p4 = pmov %p9595_p13 }
  0xc0   : > { %8055 = vsyncadd (%p9596_p4), [#allocation3], 4294967168  ;;  %p9597_p10 = pmov %p9596_p4 }
  0xc1   : > { %p9598_p9 = pmov %p9596_p4 }
  0xc2   : > { %8057 = dma.done.wait (%p9597_p10), [#allocation6], 32  }
  0xc3   : > { %8059 = vsyncadd (%p9598_p9), [#allocation6], 4294967264  ;;  %p9599_p5 = pmov %p9596_p4 }
  0xc4   : > { %p9600_p12 = pmov %p9596_p4 }
  0xc5   : > { %8061 = dma.done.wait (%p9599_p5), [#allocation9], 64  }
  0xc6   : > { %8063 = vsyncadd (%p9600_p12), [#allocation9], 4294967232  ;;  %p9601_p6 = pmov %p9596_p4 }
  0xc7   : > { %p9602_p7 = pmov %p9596_p4 }
  0xc8   : > { %8065 = dma.done.wait (%p9601_p6), [#allocation12], 64  }
  0xc9   : > { %8067 = vsyncadd (%p9602_p7), [#allocation12], 4294967232  ;;  %p9603_p8 = pmov %p9596_p4 }
  0xca   : > { %p9604_p11 = pmov %p9596_p4 }
  0xcb   : > { %8069 = dma.done.wait (%p9603_p8), [#allocation15], 1056  }
  0xcc   : > { %8071 = vsyncadd (%p9604_p11), [#allocation15], 4294966240  ;;  %p9605_p0 = pmov %p9596_p4 }
  0xce   : > { %8073 = dma.done.wait (%p9605_p0), [#allocation18], 48   ;;  %p9606_p3 = pmov %p9605_p0 }
  0xcf   : > { %p9607_p1 = pmov %p9605_p0 }
  0xd0   : > { %8075 = vsyncadd (%p9606_p3), [#allocation18], 4294967248 }
  0xd1   : > { %8077 = dma.done.wait (%p9607_p1), [#allocation21], 512   ;;  %p9608_p2 = pmov %p9605_p0 }
  0xd2   : > { %s6503_s26 = sshll.u32 %s8284_s7, 1  ;;  %vm986_vm0 = vcmask 1044480   ;;  %vm973_vm1 = vcmask 39936   ;;  %s9609_s25 = sld [smem:[#allocation40_spill]]  ;;  %v965_v0 = vld [vmem:[#allocation2] sm:$0x1f]  ;;  %v1184_v18 = vlaneseq }
  0xd3   : > { %8079 = vsyncadd (%p9608_p2), [#allocation21], 4294966784  ;;  %p947_p13 = scmp.lt.s32.totalorder %s6503_s26, 3  ;;  %6922 = vmatprep.subr.msk.mxu0 %vm986_vm0, %v965_v0  ;;  %s9610_s4 = sld [smem:[#allocation43_spill]]  ;;  %v6509_v10 = vld [vmem:[#allocation5] ss:$0 sm:$0xff] }
  0xd4   : > { %6923 = vmatpush3.msk.msra.mxu0 %vm986_vm0, %v965_v0  ;;  %vm1086_vm2 = vcmask 261120   ;;  %v1185_v19 = vshrl.u32 %v1184_v18, 7  ;;  %v1208_v21 = vand.u32 127, %v1184_v18  ;;  %s9616_s3 = sld [smem:[#allocation39_spill]]  ;;  %v6515_v27 = vld [vmem:[#allocation7] ss:$0 sm:$0xff] }
  0xd5   : > { %s9646_s26 = smov (!%p947_p13, %s6503_s26), 3  ;;  %s9617_s28 = sld [smem:[#allocation47_spill]]  ;;  %vm1400_vm6 = vcmask 64512   ;;  %vm1585_vm7 = vcmask 130048   ;;  %vm3084_vm8 = vcmask 195584   ;;  %vm3506_vm11 = vcmask 523264  }
  0xd6   : > { %s6697_s9 = sshll.u32 %s9646_s26, 4  ;;  %v1186_v20 = vadd.s32 8, %v1185_v19  ;;  %vm8500_vm3 = vcmp.le.s32.totalorder %v1208_v21, %v1185_v19  ;;  %vm1197_vm5 = vcmp.eq.s32.totalorder %v1185_v19, 0  ;;  %s9618_s1 = sld [smem:[#allocation45_spill]] }
  0xd7   : > { %s9555_s26 = smov 96   ;;  %s9551_s8 = smov 88  }
  0xd8   : > { %s958_s0 = scalar_lea.vmem %s9609_s25, %s6697_s9  ;;  %vm8504_vm4 = vcmp.le.s32.totalorder %v1208_v21, %v1186_v20  ;;  %s9549_s5 = smov 120  }
  0xd9   : > { %v961_v1 = vld [vmem:[%s958_s0] sm:$0xff]  ;;  %v962_v2 = vld [vmem:[%s958_s0 + $0x8] sm:$0xff]  ;;  %v963_v3 = vld [vmem:[%s958_s0 + $0x10] sm:$0xff]  ;;  %s9547_s25 = smov 56   ;;  %s9539_s29 = smov 48  }
  0xda   : > { %6924 = vmatprep.mubr.msk.f32.mxu0 %vm973_vm1, %v961_v1  ;;  %v1078_v4 = vld [vmem:[%s9610_s4 + $0x18] sm:$0xff]  ;;  %v1077_v6 = vld [vmem:[%s9610_s4 + $0x10] sm:$0xff]  ;;  %v1076_v7 = vld [vmem:[%s9610_s4 + $0x8] sm:$0xff]  ;;  %s9537_s27 = smov 72   ;;  %s9535_s30 = smov 104  }
  0xdb   : > { %6930 = vmatprep.subr.mxu1 %v1078_v4  ;;  %6925 = vmatmul.mubr.msk.f32.vlgmr.msra.gmra.mxu0 %vm973_vm1, %v962_v2  ;;  %v964_v5 = vld [vmem:[%s958_s0 + $0x18] sm:$0xff]  ;;  %v1075_v8 = vld [vmem:[%s9610_s4] sm:$0xff]  ;;  %s9615_s0 = sld [smem:[#allocation38_spill]]  ;;  %v1192_v33 = vld [vmem:[%s9616_s3 + $0x8] sm:$0xff] }
  0xdc   : > { %6931 = vmatpush3.msra.mxu1 %v1078_v4  ;;  %6927 = vmatprep.mubr.msk.f32.mxu0 %vm973_vm1, %v963_v3  ;;  %v1191_v25 = vld [vmem:[%s9616_s3] sm:$0xff] }
  0xdd   : > { %6932 = vmatprep.subr.mxu1 %v1077_v6 }
  0xde   : > { %6933 = vmatpush3.msra.mxu1 %v1077_v6  ;;  %v1288_v6 = vld [vmem:[%s9617_s28 + $0x10] sm:$0xff] }
  0xdf   : > { %6928 = vmatmul.mubr.msk.f32.gmra.mxu0 %vm973_vm1, %v964_v5  ;;  %6934 = vmatprep.subr.mxu1 %v1076_v7  ;;  %v1289_v5 = vld [vmem:[%s9617_s28 + $0x18] sm:$0xff] }
  0xe0   : > { %6935 = vmatpush3.msra.mxu1 %v1076_v7  ;;  %6944 = vmatprep.subr.mxu0 %v1289_v5  ;;  %v1287_v7 = vld [vmem:[%s9617_s28 + $0x8] sm:$0xff] }
  0xe1   : > { %6936 = vmatprep.subr.mxu1 %v1075_v8  ;;  %s951_s6 = scalar_lea.vmem %s9615_s0, %s6697_s9  ;;  %6945 = vmatpush3.msra.mxu0 %v1289_v5  ;;  %s9553_s9 = smov 64  }
  0xe2   : > { %6937 = vmatpush3.msra.mxu1 %v1075_v8  ;;  %v1187_v24 = vld [vmem:[%s951_s6] sm:$0xff]  ;;  %v1189_v31 = vld [vmem:[%s951_s6 + $0x10] sm:$0xff]  ;;  %v1188_v32 = vld [vmem:[%s951_s6 + $0x8] sm:$0xff]  ;;  %6946 = vmatprep.subr.mxu0 %v1288_v6  ;;  %s9545_s0 = smov 80  }
  0xe3   : > { %v1193_v29 = vadd.f32 %v1191_v25, %v1187_v24  ;;  %v1195_v38 = vadd.f32 %v1191_v25, %v1189_v31  ;;  %v8521_v39 = vadd.f32 %v1192_v33, %v1188_v32  ;;  %v1190_v41 = vld [vmem:[%s951_s6 + $0x18] sm:$0xff]  ;;  %6947 = vmatpush3.msra.mxu0 %v1288_v6  ;;  %v1286_v8 = vld [vmem:[%s9617_s28] sm:$0xff]  ;;  %s9543_s6 = smov 112  }
  0xe4   : > { %v8529_v46 = vadd.f32 %v1192_v33, %v1190_v41  ;;  %6948 = vmatprep.subr.mxu0 %v1287_v7  ;;  %v6520_v24 = vld [vmem:[%s9618_s1] ss:$0 sm:$0xff] }
  0xe5   : > { %v1216_v45 = vsel %vm1086_vm2, %v8521_v39, 0.0  ;;  %6949 = vmatpush3.msra.mxu0 %v1287_v7 }
  0xe6   : > { %v1222_v48 = vsel %vm1086_vm2, %v8529_v46, 0.0  ;;  %6950 = vmatprep.subr.mxu0 %v1286_v8 }
  0xe7   : > { %6951 = vmatpush3.msra.mxu0 %v1286_v8 }
 0x19b   : > { %v6926_v9 = vpop.f32.mrf.mxu0 }
 0x19c   : > { %v1062_v13 = vadd.f32 %v6926_v9, %v6509_v10 }
 0x19d   : > { %v1056_v11 = vpop.f32.mrf.mxu0 }
 0x19e   : > { %v1057_v12 = vadd.f32 %v6509_v10, %v1056_v11 }
 0x19f   : > { %v6929_v14 = vpop.f32.mrf.mxu0 }
 0x1a0   : > { %6938 = vmatprep.mubr.msk.f32.mxu1 %vm1086_vm2, %v1057_v12  ;;  %v1072_v15 = vadd.f32 %v6929_v14, %v6509_v10 }
 0x1a1   : > { %v1066_v16 = vpop.f32.mrf.mxu0  ;;  %6939 = vmatmul.mubr.msk.f32.vlgmr.msra.gmra.mxu1 %vm1086_vm2, %v1062_v13 }
 0x1a2   : > { %v1067_v17 = vadd.f32 %v6509_v10, %v1066_v16 }
 0x1a4   : > { %6941 = vmatprep.mubr.msk.f32.mxu1 %vm1086_vm2, %v1067_v17 }
 0x1a5   : > { %6942 = vmatmul.mubr.msk.f32.gmra.mxu1 %vm1086_vm2, %v1072_v15 }
 0x261   : > { %v6940_v26 = vpop.f32.mrf.mxu1 }
 0x262   : > { %v6521_v26 = vld [vmem:[#allocation8] ss:$0 sm:$0xff] }
 0x263   : > { %v1165_v28 = vpop.f32.mrf.mxu1 }
 0x264   : > { %v1166_v30 = vadd.f32 %v6515_v27, %v1165_v28 }
 0x265   : > { %v6943_v34 = vpop.f32.mrf.mxu1 }
 0x266   : > { %v1199_v35 = vsel %vm1197_vm5, %v1166_v30, 0.0 }
 0x267   : > { %v8519_v36 = vadd.f32 %v1199_v35, %v1193_v29  ;;  %v1175_v37 = vpop.f32.mrf.mxu1 }
 0x268   : > { %v1176_v40 = vadd.f32 %v6515_v27, %v1175_v37 }
 0x269   : > { %v1213_v42 = vsel %vm1086_vm2, %v8519_v36, 0.0 }
 0x26a   : > { %v1201_v43 = vsel %vm1197_vm5, %v1176_v40, 0.0  ;;  %1214 = vadd.xlane.f32.xlu0 %v1213_v42 }
 0x26b   : > { %v8525_v44 = vadd.f32 %v1201_v43, %v1195_v38  ;;  %v6522_v43 = vld [vmem:[#allocation10] ss:$0 sm:$0xff] }
 0x26d   : > { %v1219_v47 = vsel %vm1086_vm2, %v8525_v44, 0.0 }
 0x26e   : > { %1220 = vadd.xlane.f32.xlu1 %v1219_v47  ;;  %1217 = vadd.xlane.f32.xlu0 %v1216_v45 }
 0x272   : > { %1223 = vadd.xlane.f32.xlu1 %v1222_v48 }
 0x2f3   : > { %v1215_v49 = vpop.xlane.xlu0 %1214 }
 0x2f4   : > { %v1226_v50 = vmul.f32 0.03125, %v1215_v49 }
 0x2f6   : > { %v1230_v51 = vsub.f32 %v8519_v36, %v1226_v50 }
 0x2f7   : > { %v1221_v52 = vpop.xlane.xlu1 %1220  ;;  %v1218_v53 = vpop.xlane.xlu0 %1217 }
 0x2f8   : > { %v1228_v54 = vmul.f32 0.03125, %v1221_v52  ;;  %v1227_v55 = vmul.f32 0.03125, %v1218_v53  ;;  %v1234_v56 = vmul.f32 %v1230_v51, %v1230_v51 }
 0x2fa   : > { %v1232_v57 = vsub.f32 %v8525_v44, %v1228_v54  ;;  %v1231_v58 = vsub.f32 %v8521_v39, %v1227_v55  ;;  %v1238_v59 = vsel %vm1086_vm2, %v1234_v56, 0.0 }
 0x2fb   : > { %v1224_v60 = vpop.xlane.xlu1 %1223  ;;  %1239 = vadd.xlane.f32.xlu0 %v1238_v59 }
 0x2fc   : > { %v1229_v61 = vmul.f32 0.03125, %v1224_v60  ;;  %v1236_v62 = vmul.f32 %v1232_v57, %v1232_v57  ;;  %v1235_v63 = vmul.f32 %v1231_v58, %v1231_v58 }
 0x2fe   : > { %v1233_v0 = vsub.f32 %v8529_v46, %v1229_v61  ;;  %v1244_v1 = vsel %vm1086_vm2, %v1236_v62, 0.0  ;;  %v1241_v2 = vsel %vm1086_vm2, %v1235_v63, 0.0 }
 0x2ff   : > { %1245 = vadd.xlane.f32.xlu0 %v1244_v1  ;;  %1242 = vadd.xlane.f32.xlu1 %v1241_v2 }
 0x300   : > { %v1237_v3 = vmul.f32 %v1233_v0, %v1233_v0 }
 0x302   : > { %v1247_v4 = vsel %vm1086_vm2, %v1237_v3, 0.0 }
 0x303   : > { %1248 = vadd.xlane.f32.xlu1 %v1247_v4 }
 0x384   : > { %v1240_v9 = vpop.xlane.xlu0 %1239 }
 0x385   : > { %v1250_v10 = vmul.f32 0.03125, %v1240_v9 }
 0x387   : > { %v1254_v11 = vadd.f32 1e-05, %v1250_v10 }
 0x388   : > { %v1243_v12 = vpop.xlane.xlu1 %1242  ;;  %v1246_v13 = vpop.xlane.xlu0 %1245 }
 0x389   : > { %7490 = vrsqrt.f32 %v1254_v11  ;;  %v1251_v14 = vmul.f32 0.03125, %v1243_v12  ;;  %v1252_v15 = vmul.f32 0.03125, %v1246_v13 }
 0x38b   : > { %v1255_v16 = vadd.f32 1e-05, %v1251_v14  ;;  %v1256_v17 = vadd.f32 1e-05, %v1252_v15 }
 0x38c   : > { %v1249_v18 = vpop.xlane.xlu1 %1248 }
 0x38d   : > { %7492 = vrsqrt.f32 %v1255_v16  ;;  %v1253_v19 = vmul.f32 0.03125, %v1249_v18 }
 0x38e   : > { %7494 = vrsqrt.f32 %v1256_v17 }
 0x38f   : > { %v1257_v20 = vadd.f32 1e-05, %v1253_v19 }
 0x391   : > { %7496 = vrsqrt.f32 %v1257_v20 }
 0x396   : > { %v7491_v21 = vpop.eup %7490 }
 0x397   : > { %v1262_v25 = vmul.f32 %v7491_v21, %v1230_v51 }
 0x399   : > { %v1272_v27 = vmul.f32 %v6520_v24, %v1262_v25 }
 0x39a   : > { %v7493_v28 = vpop.eup %7492 }
 0x39b   : > { %v7495_v29 = vpop.eup %7494  ;;  %v1263_v30 = vmul.f32 %v7493_v28, %v1231_v58  ;;  %v1282_v31 = vadd.f32 %v6521_v26, %v1272_v27 }
 0x39c   : > { %v1264_v32 = vmul.f32 %v7495_v29, %v1232_v57 }
 0x39d   : > { %v1273_v33 = vmul.f32 %v6520_v24, %v1263_v30  ;;  %6952 = vmatprep.mubr.msk.f32.mxu0 %vm1086_vm2, %v1282_v31 }
 0x39e   : > { %v7497_v34 = vpop.eup %7496  ;;  %v1274_v35 = vmul.f32 %v6520_v24, %v1264_v32 }
 0x39f   : > { %v1283_v37 = vadd.f32 %v6521_v26, %v1273_v33  ;;  %v1265_v38 = vmul.f32 %v7497_v34, %v1233_v0 }
 0x3a0   : > { %v1284_v40 = vadd.f32 %v6521_v26, %v1274_v35 }
 0x3a1   : > { %6953 = vmatmul.mubr.msk.f32.vlgmr.msra.gmra.mxu0 %vm1086_vm2, %v1283_v37  ;;  %v1275_v41 = vmul.f32 %v6520_v24, %v1265_v38 }
 0x3a2   : > { %6955 = vmatprep.mubr.msk.f32.mxu0 %vm1086_vm2, %v1284_v40 }
 0x3a3   : > { %v1285_v42 = vadd.f32 %v6521_v26, %v1275_v41 }
 0x3a5   : > { %6956 = vmatmul.mubr.msk.f32.gmra.mxu0 %vm1086_vm2, %v1285_v42 }
 0x461   : > { %v6954_v45 = vpop.f32.mrf.mxu0 }
 0x462   : > { %v8562_v47 = vadd.f32 %v6954_v45, %v6522_v43 }
 0x463   : > { %v1375_v48 = vpop.f32.mrf.mxu0 }
 0x464   : > { %v8564_v49 = vadd.f32 %v6522_v43, %v1375_v48  ;;  %1398 = vrot.lane.b32.xlu0 %v8562_v47, %s9555_s26 }
 0x465   : > { %v6957_v50 = vpop.f32.mrf.mxu0 }
 0x466   : > { %1396 = vrot.lane.b32.xlu1 %v8564_v49, %s9555_s26  ;;  %6962 = vmatprep.mubr.msk.f32.mxu1 %vm1400_vm6, %v8564_v49  ;;  %v8572_v52 = vadd.f32 %v6957_v50, %v6522_v43 }
 0x467   : > { %v1385_v51 = vpop.f32.mrf.mxu0 }
 0x468   : > { %v8574_v53 = vadd.f32 %v6522_v43, %v1385_v51 }
 0x46a   : > { %1488 = vrot.lane.b32.xlu1 %v8572_v52, %s9555_s26  ;;  %6969 = vmatprep.mubr.msk.f32.mxu0 %vm1400_vm6, %v8574_v53 }
 0x46e   : > { %1486 = vrot.lane.b32.xlu1 %v8574_v53, %s9555_s26  ;;  %s9623_s26 = smov 56  }
 0x4d6   : > { %v1399_v54 = vpop.permute.xlu0 %1398 }
 0x4d7   : > { %6958 = vmatprep.subr.msk.mxu1 %vm1400_vm6, %v1399_v54 }
 0x4d8   : > { %v1397_v55 = vpop.permute.xlu1 %1396  ;;  %6959 = vmatpush3.xpose.msk.msra.mxu1 %vm1400_vm6, %v1399_v54 }
 0x4d9   : > { %6960 = vmatprep.subr.msk.mxu1 %vm1400_vm6, %v1397_v55 }
 0x4dc   : > { %v1489_v56 = vpop.permute.xlu1 %1488  ;;  %6961 = vmatpush3.xpose.msk.msra.mxu1 %vm1400_vm6, %v1397_v55 }
 0x4dd   : > { %6965 = vmatprep.subr.msk.mxu0 %vm1400_vm6, %v1489_v56 }
 0x4de   : > { %6966 = vmatpush3.xpose.msk.msra.mxu0 %vm1400_vm6, %v1489_v56 }
 0x4df   : > { %6963 = vmatmul.mubr.msk.f32.vlgmr.msra.gmra.mxu1 %vm1400_vm6, %v8562_v47 }
 0x4e0   : > { %v1487_v57 = vpop.permute.xlu1 %1486 }
 0x4e1   : > { %6967 = vmatprep.subr.msk.mxu0 %vm1400_vm6, %v1487_v57 }
 0x4e2   : > { %6968 = vmatpush3.xpose.msk.msra.mxu0 %vm1400_vm6, %v1487_v57 }
 0x4e5   : > { %6970 = vmatmul.mubr.msk.f32.vlgmr.msra.gmra.mxu0 %vm1400_vm6, %v8572_v52 }
 0x59f   : > { %v6964_v58 = vpop.f32.mrf.mxu1 }
 0x5a0   : > { %v1574_v59 = vmul.f32 0.35355338, %v6964_v58 }
 0x5a1   : > { %v1475_v60 = vpop.f32.mrf.mxu1 }
 0x5a2   : > { %v1573_v61 = vmul.f32 0.35355338, %v1475_v60  ;;  %v1582_v62 = vsel %vm8504_vm4, %v1574_v59, -1e+30 }
 0x5a3   : > { %v1589_v63 = vsel %vm1585_vm7, %v1582_v62, -inf }
 0x5a4   : > { %1590 = vmax.xlane.f32.xlu1 %v1589_v63  ;;  %v1581_v0 = vsel %vm8500_vm3, %v1573_v61, -1e+30 }
 0x5a5   : > { %v6971_v1 = vpop.f32.mrf.mxu0  ;;  %v1586_v2 = vsel %vm1585_vm7, %v1581_v0, -inf }
 0x5a6   : > { %1587 = vmax.xlane.f32.xlu0 %v1586_v2  ;;  %v1576_v4 = vmul.f32 0.35355338, %v6971_v1 }
 0x5a7   : > { %v1564_v3 = vpop.f32.mrf.mxu0 }
 0x5a8   : > { %v1575_v5 = vmul.f32 0.35355338, %v1564_v3  ;;  %v1584_v8 = vsel %vm8504_vm4, %v1576_v4, -1e+30 }
 0x5a9   : > { %v1595_v9 = vsel %vm1585_vm7, %v1584_v8, -inf }
 0x5aa   : > { %v1583_v6 = vsel %vm8500_vm3, %v1575_v5, -1e+30 }
 0x5ab   : > { %v1592_v7 = vsel %vm1585_vm7, %v1583_v6, -inf }
 0x5ac   : > { %1593 = vmax.xlane.f32.xlu0 %v1592_v7 }
 0x5b0   : > { %1596 = vmax.xlane.f32.xlu0 %v1595_v9 }
 0x5b5   : > { %1630 = vrot.lane.b32.xlu1 %v8564_v49, %s9553_s9 }
 0x5b9   : > { %1719 = vrot.lane.b32.xlu1 %v8572_v52, %s9553_s9 }
 0x5bd   : > { %1810 = vrot.lane.b32.xlu1 %v8562_v47, %s9551_s8 }
 0x5c1   : > { %1808 = vrot.lane.b32.xlu1 %v8564_v49, %s9551_s8 }
 0x5c5   : > { %1804 = vrot.lane.b32.xlu1 %v8564_v49, %s9549_s5 }
 0x5c6   : > { %1632 = vrot.lane.b32.xlu0 %v8562_v47, %s9553_s9 }
 0x5ca   : > { %1717 = vrot.lane.b32.xlu0 %v8574_v53, %s9553_s9  ;;  %s9624_s9 = smov 80  }
 0x5ce   : > { %1901 = vrot.lane.b32.xlu0 %v8572_v52, %s9551_s8 }
 0x62d   : > { %v1591_v10 = vpop.xlane.xlu1 %1590 }
 0x62e   : > { %v1599_v11 = vsub.f32 %v1582_v62, %v1591_v10 }
 0x62f   : > { %v1588_v12 = vpop.xlane.xlu0 %1587 }
 0x630   : > { %v1604_v13 = vmul.f32 1.442695, %v1599_v11  ;;  %v1598_v14 = vsub.f32 %v1581_v0, %v1588_v12 }
 0x631   : > { %v1631_v15 = vpop.permute.xlu1 %1630 }
 0x632   : > { %7498 = vpow2.f32 %v1604_v13  ;;  %v1602_v16 = vmul.f32 1.442695, %v1598_v14 }
 0x634   : > { %7500 = vpow2.f32 %v1602_v16 }
 0x635   : > { %v1720_v17 = vpop.permute.xlu1 %1719  ;;  %v1594_v18 = vpop.xlane.xlu0 %1593 }
 0x636   : > { %v1600_v19 = vsub.f32 %v1583_v6, %v1594_v18 }
 0x638   : > { %v1606_v20 = vmul.f32 1.442695, %v1600_v19 }
 0x639   : > { %v1811_v21 = vpop.permute.xlu1 %1810  ;;  %v1597_v24 = vpop.xlane.xlu0 %1596 }
 0x63a   : > { %7502 = vpow2.f32 %v1606_v20  ;;  %v1601_v25 = vsub.f32 %v1584_v8, %v1597_v24  ;;  %6986 = vmatprep.subr.msk.mxu1 %vm1400_vm6, %v1811_v21 }
 0x63b   : > { %6987 = vmatpush3.xpose.msk.msra.mxu1 %vm1400_vm6, %v1811_v21 }
 0x63c   : > { %v1608_v26 = vmul.f32 1.442695, %v1601_v25 }
 0x63d   : > { %v1809_v27 = vpop.permute.xlu1 %1808  ;;  %v1633_v28 = vpop.permute.xlu0 %1632 }
 0x63e   : > { %7504 = vpow2.f32 %v1608_v26  ;;  %6972 = vmatprep.subr.mxu0 %v1633_v28  ;;  %6988 = vmatprep.subr.msk.mxu1 %vm1400_vm6, %v1809_v27 }
 0x63f   : > { %v7499_v29 = vpop.eup %7498  ;;  %6973 = vmatpush3.msra.mxu0 %v1633_v28  ;;  %6989 = vmatpush3.xpose.msk.msra.mxu1 %vm1400_vm6, %v1809_v27 }
 0x640   : > { %6974 = vmatprep.subr.mxu0 %v1631_v15  ;;  %v1613_v30 = vsel %vm1585_vm7, %v7499_v29, 0.0 }
 0x641   : > { %v7501_v31 = vpop.eup %7500  ;;  %1614 = vadd.xlane.f32.xlu1 %v1613_v30  ;;  %v1805_v32 = vpop.permute.xlu1 %1804  ;;  %6975 = vmatpush3.msra.mxu0 %v1631_v15 }
 0x642   : > { %6979 = vmatprep.subr.mxu0 %v1720_v17  ;;  %6990 = vmatprep.mubr.msk.f32.mxu1 %vm1400_vm6, %v1805_v32  ;;  %v1610_v33 = vsel %vm1585_vm7, %v7501_v31, 0.0  ;;  %v1718_v40 = vpop.permute.xlu0 %1717 }
 0x643   : > { %1611 = vadd.xlane.f32.xlu0 %v1610_v33 }
 0x646   : > { %v1902_v41 = vpop.permute.xlu0 %1901 }
 0x647   : > { %v7503_v34 = vpop.eup %7502 }
 0x648   : > { %v1616_v35 = vsel %vm1585_vm7, %v7503_v34, 0.0 }
 0x649   : > { %1617 = vadd.xlane.f32.xlu0 %v1616_v35 }
 0x64b   : > { %v7505_v37 = vpop.eup %7504 }
 0x64c   : > { %v1619_v38 = vsel %vm1585_vm7, %v7505_v37, 0.0 }
 0x64d   : > { %1620 = vadd.xlane.f32.xlu1 %v1619_v38 }
 0x65e   : > { %1899 = vrot.lane.b32.xlu1 %v8574_v53, %s9551_s8  ;;  %s9625_s8 = smov 112  }
 0x65f   : > { %1806 = vrot.lane.b32.xlu0 %v8562_v47, %s9549_s5 }
 0x662   : > { %1897 = vrot.lane.b32.xlu1 %v8572_v52, %s9549_s5 }
 0x663   : > { %1895 = vrot.lane.b32.xlu0 %v8574_v53, %s9549_s5  ;;  %s9626_s5 = smov 48  }
 0x6ca   : > { %v1615_v42 = vpop.xlane.xlu1 %1614 }
 0x6cb   : > { %7506 = vrcp.f32 %v1615_v42 }
 0x6cc   : > { %v1612_v43 = vpop.xlane.xlu0 %1611 }
 0x6cd   : > { %7508 = vrcp.f32 %v1612_v43 }
 0x6d2   : > { %v1618_v45 = vpop.xlane.xlu0 %1617 }
 0x6d3   : > { %7510 = vrcp.f32 %v1618_v45 }
 0x6d6   : > { %v1621_v48 = vpop.xlane.xlu1 %1620  ;;  %v1807_v50 = vpop.permute.xlu0 %1806 }
 0x6d7   : > { %7512 = vrcp.f32 %v1621_v48  ;;  %6991 = vmatmul.mubr.msk.f32.vlgmr.msra.gmra.mxu1 %vm1400_vm6, %v1807_v50 }
 0x6d8   : > { %v7507_v51 = vpop.eup %7506 }
 0x6d9   : > { %v1627_v56 = vmul.f32 %v7507_v51, %v7499_v29 }
 0x6da   : > { %v7509_v54 = vpop.eup %7508  ;;  %v1896_v61 = vpop.permute.xlu0 %1895 }
 0x6db   : > { %v1626_v55 = vmul.f32 %v7509_v54, %v7501_v31  ;;  %v1900_v62 = vpop.permute.xlu1 %1899 }
 0x6dd   : > { %6976 = vmatprep.mubr.msk.f32.mxu0 %vm1585_vm7, %v1626_v55 }
 0x6de   : > { %6977 = vmatmul.mubr.msk.f32.vlgmr.msra.gmra.mxu0 %vm1585_vm7, %v1627_v56 }
 0x6df   : > { %6980 = vmatpush3.msra.mxu0 %v1720_v17  ;;  %v1898_v63 = vpop.permute.xlu1 %1897 }
 0x6e0   : > { %v7511_v57 = vpop.eup %7510  ;;  %6981 = vmatprep.subr.mxu0 %v1718_v40 }
 0x6e1   : > { %6982 = vmatpush3.msra.mxu0 %v1718_v40  ;;  %v1628_v58 = vmul.f32 %v7511_v57, %v7503_v34 }
 0x6e2   : > { %6993 = vmatprep.subr.msk.mxu0 %vm1400_vm6, %v1902_v41 }
 0x6e3   : > { %6983 = vmatprep.mubr.msk.f32.mxu0 %vm1585_vm7, %v1628_v58 }
 0x6e4   : > { %v7513_v59 = vpop.eup %7512 }
 0x6e5   : > { %v1629_v60 = vmul.f32 %v7513_v59, %v7505_v37 }
 0x6e7   : > { %6984 = vmatmul.mubr.msk.f32.vlgmr.msra.gmra.mxu0 %vm1585_vm7, %v1629_v60 }
 0x6e8   : > { %6994 = vmatpush3.xpose.msk.msra.mxu0 %vm1400_vm6, %v1902_v41  ;;  %6997 = vmatprep.mubr.msk.f32.mxu0 %vm1400_vm6, %v1896_v61 }
 0x6e9   : > { %6995 = vmatprep.subr.msk.mxu0 %vm1400_vm6, %v1900_v62 }
 0x6ec   : > { %6996 = vmatpush3.xpose.msk.msra.mxu0 %vm1400_vm6, %v1900_v62 }
 0x6ef   : > { %6998 = vmatmul.mubr.msk.f32.vlgmr.msra.gmra.mxu0 %vm1400_vm6, %v1898_v63 }
 0x797   : > { %v6992_v0 = vpop.f32.mrf.mxu1 }
 0x798   : > { %v1987_v1 = vmul.f32 0.35355338, %v6992_v0 }
 0x799   : > { %v1886_v2 = vpop.f32.mrf.mxu1 }
 0x79a   : > { %v1986_v3 = vmul.f32 0.35355338, %v1886_v2  ;;  %v1991_v4 = vsel %vm8504_vm4, %v1987_v1, -1e+30 }
 0x79b   : > { %v1997_v5 = vsel %vm1585_vm7, %v1991_v4, -inf }
 0x79c   : > { %1998 = vmax.xlane.f32.xlu1 %v1997_v5  ;;  %v1990_v6 = vsel %vm8500_vm3, %v1986_v3, -1e+30 }
 0x79d   : > { %v1994_v7 = vsel %vm1585_vm7, %v1990_v6, -inf }
 0x79e   : > { %1995 = vmax.xlane.f32.xlu0 %v1994_v7  ;;  %v8656_v8 = vpop.f32.mrf.mxu0 }
 0x7a0   : > { %v8658_v9 = vpop.f32.mrf.mxu0 }
 0x7a7   : > { %v8660_v10 = vpop.f32.mrf.mxu0 }
 0x7a9   : > { %v8662_v11 = vpop.f32.mrf.mxu0 }
 0x7af   : > { %v6999_v12 = vpop.f32.mrf.mxu0 }
 0x7b0   : > { %v1989_v14 = vmul.f32 0.35355338, %v6999_v12 }
 0x7b1   : > { %v1977_v13 = vpop.f32.mrf.mxu0 }
 0x7b2   : > { %v1988_v15 = vmul.f32 0.35355338, %v1977_v13  ;;  %v1993_v18 = vsel %vm8504_vm4, %v1989_v14, -1e+30 }
 0x7b3   : > { %v2003_v19 = vsel %vm1585_vm7, %v1993_v18, -inf }
 0x7b4   : > { %v1992_v16 = vsel %vm8500_vm3, %v1988_v15, -1e+30 }
 0x7b5   : > { %v2000_v17 = vsel %vm1585_vm7, %v1992_v16, -inf }
 0x7b6   : > { %2001 = vmax.xlane.f32.xlu0 %v2000_v17 }
 0x7ba   : > { %2004 = vmax.xlane.f32.xlu0 %v2003_v19 }
 0x825   : > { %v1999_v20 = vpop.xlane.xlu1 %1998 }
 0x826   : > { %v2007_v21 = vsub.f32 %v1991_v4, %v1999_v20 }
 0x827   : > { %v1996_v24 = vpop.xlane.xlu0 %1995 }
 0x828   : > { %v2012_v25 = vmul.f32 1.442695, %v2007_v21  ;;  %v2006_v26 = vsub.f32 %v1990_v6, %v1996_v24 }
 0x82a   : > { %7514 = vpow2.f32 %v2012_v25  ;;  %v2010_v27 = vmul.f32 1.442695, %v2006_v26 }
 0x82c   : > { %7516 = vpow2.f32 %v2010_v27 }
 0x837   : > { %v7515_v28 = vpop.eup %7514 }
 0x838   : > { %v2021_v29 = vsel %vm1585_vm7, %v7515_v28, 0.0 }
 0x839   : > { %v7517_v30 = vpop.eup %7516  ;;  %2022 = vadd.xlane.f32.xlu1 %v2021_v29 }
 0x83a   : > { %v2018_v31 = vsel %vm1585_vm7, %v7517_v30, 0.0 }
 0x83b   : > { %2019 = vadd.xlane.f32.xlu0 %v2018_v31 }
 0x83f   : > { %v2002_v32 = vpop.xlane.xlu0 %2001 }
 0x840   : > { %v2008_v33 = vsub.f32 %v1992_v16, %v2002_v32 }
 0x842   : > { %v2014_v35 = vmul.f32 1.442695, %v2008_v33 }
 0x843   : > { %v2005_v34 = vpop.xlane.xlu0 %2004 }
 0x844   : > { %v2009_v37 = vsub.f32 %v1993_v18, %v2005_v34  ;;  %7518 = vpow2.f32 %v2014_v35 }
 0x846   : > { %v2016_v38 = vmul.f32 1.442695, %v2009_v37 }
 0x848   : > { %7520 = vpow2.f32 %v2016_v38 }
 0x84a   : > { %2038 = vrot.lane.b32.xlu1 %v8564_v49, %s9547_s25 }
 0x84e   : > { %2127 = vrot.lane.b32.xlu1 %v8572_v52, %s9547_s25 }
 0x851   : > { %2040 = vrot.lane.b32.xlu0 %v8562_v47, %s9547_s25  ;;  %v7519_v40 = vpop.eup %7518 }
 0x852   : > { %2218 = vrot.lane.b32.xlu1 %v8562_v47, %s9545_s0  ;;  %v2024_v41 = vsel %vm1585_vm7, %v7519_v40, 0.0 }
 0x855   : > { %2125 = vrot.lane.b32.xlu0 %v8574_v53, %s9547_s25  ;;  %v7521_v42 = vpop.eup %7520  ;;  %s9619_s25 = smov 96  }
 0x856   : > { %2216 = vrot.lane.b32.xlu1 %v8564_v49, %s9545_s0  ;;  %v2027_v43 = vsel %vm1585_vm7, %v7521_v42, 0.0 }
 0x859   : > { %2309 = vrot.lane.b32.xlu0 %v8572_v52, %s9545_s0 }
 0x85a   : > { %2212 = vrot.lane.b32.xlu1 %v8564_v49, %s9543_s6 }
 0x878   : > { %2025 = vadd.xlane.f32.xlu0 %v2024_v41 }
 0x87e   : > { %2028 = vadd.xlane.f32.xlu1 %v2027_v43 }
 0x88e   : > { %2214 = vrot.lane.b32.xlu0 %v8562_v47, %s9543_s6 }
 0x88f   : > { %2307 = vrot.lane.b32.xlu1 %v8574_v53, %s9545_s0  ;;  %s9620_s0 = smov 64  }
 0x892   : > { %2303 = vrot.lane.b32.xlu0 %v8574_v53, %s9543_s6 }
 0x893   : > { %2305 = vrot.lane.b32.xlu1 %v8572_v52, %s9543_s6  ;;  %s9557_s6 = smov 24  }
 0x8c2   : > { %v2023_v45 = vpop.xlane.xlu1 %2022 }
 0x8c3   : > { %7522 = vrcp.f32 %v2023_v45 }
 0x8c4   : > { %v2020_v48 = vpop.xlane.xlu0 %2019 }
 0x8c5   : > { %7524 = vrcp.f32 %v2020_v48 }
 0x8c6   : > { %v2039_v50 = vpop.permute.xlu1 %2038 }
 0x8c8   : > { %v2041_v51 = vpop.permute.xlu0 %2040 }
 0x8c9   : > { %7000 = vmatprep.subr.mxu1 %v2041_v51 }
 0x8ca   : > { %v2128_v54 = vpop.permute.xlu1 %2127  ;;  %7001 = vmatpush3.msra.mxu1 %v2041_v51 }
 0x8cb   : > { %7002 = vmatprep.subr.mxu1 %v2039_v50  ;;  %7007 = vmatprep.subr.mxu0 %v2128_v54 }
 0x8cc   : > { %7003 = vmatpush3.msra.mxu1 %v2039_v50  ;;  %7008 = vmatpush3.msra.mxu0 %v2128_v54  ;;  %v2126_v55 = vpop.permute.xlu0 %2125 }
 0x8cd   : > { %7009 = vmatprep.subr.mxu0 %v2126_v55 }
 0x8ce   : > { %v2219_v56 = vpop.permute.xlu1 %2218  ;;  %7010 = vmatpush3.msra.mxu0 %v2126_v55 }
 0x8cf   : > { %7014 = vmatprep.subr.msk.mxu1 %vm1400_vm6, %v2219_v56 }
 0x8d0   : > { %v2310_v57 = vpop.permute.xlu0 %2309  ;;  %v7523_v58 = vpop.eup %7522 }
 0x8d1   : > { %7021 = vmatprep.subr.msk.mxu0 %vm1400_vm6, %v2310_v57  ;;  %v2035_v62 = vmul.f32 %v7523_v58, %v7515_v28 }
 0x8d2   : > { %v7525_v59 = vpop.eup %7524  ;;  %v2217_v60 = vpop.permute.xlu1 %2216 }
 0x8d3   : > { %v2034_v61 = vmul.f32 %v7525_v59, %v7517_v30 }
 0x8d5   : > { %7004 = vmatprep.mubr.msk.f32.mxu1 %vm1585_vm7, %v2034_v61 }
 0x8d6   : > { %v2213_v63 = vpop.permute.xlu1 %2212  ;;  %7005 = vmatmul.mubr.msk.f32.vlgmr.msra.gmra.mxu1 %vm1585_vm7, %v2035_v62 }
 0x8d7   : > { %7015 = vmatpush3.xpose.msk.msra.mxu1 %vm1400_vm6, %v2219_v56  ;;  %7018 = vmatprep.mubr.msk.f32.mxu1 %vm1400_vm6, %v2213_v63 }
 0x8d8   : > { %7016 = vmatprep.subr.msk.mxu1 %vm1400_vm6, %v2217_v60 }
 0x8db   : > { %7017 = vmatpush3.xpose.msk.msra.mxu1 %vm1400_vm6, %v2217_v60 }
 0x901   : > { %v2026_v0 = vpop.xlane.xlu0 %2025 }
 0x902   : > { %7526 = vrcp.f32 %v2026_v0 }
 0x905   : > { %v2215_v1 = vpop.permute.xlu0 %2214 }
 0x906   : > { %7019 = vmatmul.mubr.msk.f32.vlgmr.msra.gmra.mxu1 %vm1400_vm6, %v2215_v1 }
 0x907   : > { %v2029_v2 = vpop.xlane.xlu1 %2028 }
 0x908   : > { %7528 = vrcp.f32 %v2029_v2 }
 0x909   : > { %v2304_v7 = vpop.permute.xlu0 %2303 }
 0x90b   : > { %v2308_v12 = vpop.permute.xlu1 %2307 }
 0x90f   : > { %v7527_v3 = vpop.eup %7526  ;;  %v2306_v13 = vpop.permute.xlu1 %2305 }
 0x910   : > { %v2036_v4 = vmul.f32 %v7527_v3, %v7519_v40 }
 0x912   : > { %7011 = vmatprep.mubr.msk.f32.mxu0 %vm1585_vm7, %v2036_v4 }
 0x915   : > { %v7529_v5 = vpop.eup %7528 }
 0x916   : > { %v2037_v6 = vmul.f32 %v7529_v5, %v7521_v42 }
 0x918   : > { %7012 = vmatmul.mubr.msk.f32.vlgmr.msra.gmra.mxu0 %vm1585_vm7, %v2037_v6 }
 0x919   : > { %7022 = vmatpush3.xpose.msk.msra.mxu0 %vm1400_vm6, %v2310_v57  ;;  %7025 = vmatprep.mubr.msk.f32.mxu0 %vm1400_vm6, %v2304_v7 }
 0x91a   : > { %7023 = vmatprep.subr.msk.mxu0 %vm1400_vm6, %v2308_v12 }
 0x91d   : > { %7024 = vmatpush3.xpose.msk.msra.mxu0 %vm1400_vm6, %v2308_v12 }
 0x920   : > { %7026 = vmatmul.mubr.msk.f32.vlgmr.msra.gmra.mxu0 %vm1400_vm6, %v2306_v13 }
 0x996   : > { %v8714_v14 = vpop.f32.mrf.mxu1 }
 0x998   : > { %v8716_v15 = vpop.f32.mrf.mxu1 }
 0x9c6   : > { %v7020_v16 = vpop.f32.mrf.mxu1 }
 0x9c7   : > { %v2395_v17 = vmul.f32 0.35355338, %v7020_v16 }
 0x9c8   : > { %v2294_v18 = vpop.f32.mrf.mxu1 }
 0x9c9   : > { %v2394_v19 = vmul.f32 0.35355338, %v2294_v18  ;;  %v2399_v20 = vsel %vm8504_vm4, %v2395_v17, -1e+30 }
 0x9ca   : > { %v2405_v21 = vsel %vm1585_vm7, %v2399_v20, -inf }
 0x9cb   : > { %2406 = vmax.xlane.f32.xlu1 %v2405_v21  ;;  %v2398_v24 = vsel %vm8500_vm3, %v2394_v19, -1e+30 }
 0x9cc   : > { %v2402_v25 = vsel %vm1585_vm7, %v2398_v24, -inf }
 0x9cd   : > { %2403 = vmax.xlane.f32.xlu0 %v2402_v25 }
 0x9d8   : > { %v8724_v26 = vpop.f32.mrf.mxu0 }
 0x9da   : > { %v8726_v27 = vpop.f32.mrf.mxu0 }
 0x9e0   : > { %v7027_v28 = vpop.f32.mrf.mxu0 }
 0x9e1   : > { %v2397_v30 = vmul.f32 0.35355338, %v7027_v28 }
 0x9e2   : > { %v2385_v29 = vpop.f32.mrf.mxu0 }
 0x9e3   : > { %v2396_v31 = vmul.f32 0.35355338, %v2385_v29  ;;  %v2401_v34 = vsel %vm8504_vm4, %v2397_v30, -1e+30 }
 0x9e4   : > { %v2411_v35 = vsel %vm1585_vm7, %v2401_v34, -inf }
 0x9e5   : > { %v2400_v32 = vsel %vm8500_vm3, %v2396_v31, -1e+30 }
 0x9e6   : > { %v2408_v33 = vsel %vm1585_vm7, %v2400_v32, -inf }
 0x9e7   : > { %2409 = vmax.xlane.f32.xlu0 %v2408_v33 }
 0x9eb   : > { %2412 = vmax.xlane.f32.xlu0 %v2411_v35 }
 0xa54   : > { %v2407_v37 = vpop.xlane.xlu1 %2406 }
 0xa55   : > { %v2415_v38 = vsub.f32 %v2399_v20, %v2407_v37 }
 0xa56   : > { %v2404_v40 = vpop.xlane.xlu0 %2403 }
 0xa57   : > { %v2420_v41 = vmul.f32 1.442695, %v2415_v38  ;;  %v2414_v42 = vsub.f32 %v2398_v24, %v2404_v40 }
 0xa59   : > { %7530 = vpow2.f32 %v2420_v41  ;;  %v2418_v43 = vmul.f32 1.442695, %v2414_v42 }
 0xa5b   : > { %7532 = vpow2.f32 %v2418_v43 }
 0xa66   : > { %v7531_v45 = vpop.eup %7530 }
 0xa67   : > { %v2429_v48 = vsel %vm1585_vm7, %v7531_v45, 0.0 }
 0xa68   : > { %v7533_v50 = vpop.eup %7532  ;;  %2430 = vadd.xlane.f32.xlu1 %v2429_v48 }
 0xa69   : > { %v2426_v51 = vsel %vm1585_vm7, %v7533_v50, 0.0 }
 0xa6a   : > { %2427 = vadd.xlane.f32.xlu0 %v2426_v51 }
 0xa70   : > { %v2410_v54 = vpop.xlane.xlu0 %2409 }
 0xa71   : > { %v2416_v55 = vsub.f32 %v2400_v32, %v2410_v54 }
 0xa73   : > { %v2422_v57 = vmul.f32 1.442695, %v2416_v55 }
 0xa74   : > { %v2413_v56 = vpop.xlane.xlu0 %2412 }
 0xa75   : > { %v2417_v58 = vsub.f32 %v2401_v34, %v2413_v56  ;;  %7534 = vpow2.f32 %v2422_v57 }
 0xa77   : > { %v2424_v59 = vmul.f32 1.442695, %v2417_v58 }
 0xa79   : > { %2446 = vrot.lane.b32.xlu1 %v8564_v49, %s9539_s29  ;;  %7536 = vpow2.f32 %v2424_v59 }
 0xa7d   : > { %2535 = vrot.lane.b32.xlu1 %v8572_v52, %s9539_s29 }
 0xa80   : > { %2448 = vrot.lane.b32.xlu0 %v8562_v47, %s9539_s29 }
 0xa81   : > { %2626 = vrot.lane.b32.xlu1 %v8562_v47, %s9537_s27 }
 0xa82   : > { %v7535_v60 = vpop.eup %7534 }
 0xa83   : > { %v2432_v61 = vsel %vm1585_vm7, %v7535_v60, 0.0 }
 0xa84   : > { %2533 = vrot.lane.b32.xlu0 %v8574_v53, %s9539_s29  ;;  %s8128_s29 = smov 16  }
 0xa85   : > { %2624 = vrot.lane.b32.xlu1 %v8564_v49, %s9537_s27 }
 0xa86   : > { %v7537_v62 = vpop.eup %7536 }
 0xa87   : > { %v2435_v63 = vsel %vm1585_vm7, %v7537_v62, 0.0 }
 0xa88   : > { %2717 = vrot.lane.b32.xlu0 %v8572_v52, %s9537_s27 }
 0xa89   : > { %2620 = vrot.lane.b32.xlu1 %v8564_v49, %s9535_s30 }
 0xaa7   : > { %2433 = vadd.xlane.f32.xlu0 %v2432_v61 }
 0xaad   : > { %2436 = vadd.xlane.f32.xlu1 %v2435_v63 }
 0xabd   : > { %2622 = vrot.lane.b32.xlu0 %v8562_v47, %s9535_s30 }
 0xabe   : > { %2715 = vrot.lane.b32.xlu1 %v8574_v53, %s9537_s27  ;;  %s9559_s27 = smov 8  }
 0xac1   : > { %2711 = vrot.lane.b32.xlu0 %v8574_v53, %s9535_s30 }
 0xac2   : > { %2713 = vrot.lane.b32.xlu1 %v8572_v52, %s9535_s30  ;;  %s9541_s30 = smov 40  }
 0xaf1   : > { %v2431_v0 = vpop.xlane.xlu1 %2430 }
 0xaf2   : > { %7538 = vrcp.f32 %v2431_v0 }
 0xaf3   : > { %v2428_v1 = vpop.xlane.xlu0 %2427 }
 0xaf4   : > { %7540 = vrcp.f32 %v2428_v1 }
 0xaf5   : > { %v2447_v2 = vpop.permute.xlu1 %2446 }
 0xaf7   : > { %v2449_v3 = vpop.permute.xlu0 %2448 }
 0xaf8   : > { %7028 = vmatprep.subr.mxu1 %v2449_v3 }
 0xaf9   : > { %v2536_v4 = vpop.permute.xlu1 %2535  ;;  %7029 = vmatpush3.msra.mxu1 %v2449_v3 }
 0xafa   : > { %7030 = vmatprep.subr.mxu1 %v2447_v2  ;;  %7035 = vmatprep.subr.mxu0 %v2536_v4 }
 0xafb   : > { %7031 = vmatpush3.msra.mxu1 %v2447_v2  ;;  %7036 = vmatpush3.msra.mxu0 %v2536_v4  ;;  %v2534_v5 = vpop.permute.xlu0 %2533 }
 0xafc   : > { %7037 = vmatprep.subr.mxu0 %v2534_v5 }
 0xafd   : > { %v2627_v6 = vpop.permute.xlu1 %2626  ;;  %7038 = vmatpush3.msra.mxu0 %v2534_v5 }
 0xafe   : > { %7042 = vmatprep.subr.msk.mxu1 %vm1400_vm6, %v2627_v6 }
 0xaff   : > { %v2718_v7 = vpop.permute.xlu0 %2717  ;;  %v7539_v12 = vpop.eup %7538 }
 0xb00   : > { %7049 = vmatprep.subr.msk.mxu0 %vm1400_vm6, %v2718_v7  ;;  %v2443_v18 = vmul.f32 %v7539_v12, %v7531_v45 }
 0xb01   : > { %v7541_v13 = vpop.eup %7540  ;;  %v2625_v16 = vpop.permute.xlu1 %2624 }
 0xb02   : > { %v2442_v17 = vmul.f32 %v7541_v13, %v7533_v50 }
 0xb04   : > { %7032 = vmatprep.mubr.msk.f32.mxu1 %vm1585_vm7, %v2442_v17 }
 0xb05   : > { %v2621_v19 = vpop.permute.xlu1 %2620  ;;  %7033 = vmatmul.mubr.msk.f32.vlgmr.msra.gmra.mxu1 %vm1585_vm7, %v2443_v18 }
 0xb06   : > { %7043 = vmatpush3.xpose.msk.msra.mxu1 %vm1400_vm6, %v2627_v6  ;;  %7046 = vmatprep.mubr.msk.f32.mxu1 %vm1400_vm6, %v2621_v19 }
 0xb07   : > { %7044 = vmatprep.subr.msk.mxu1 %vm1400_vm6, %v2625_v16 }
 0xb0a   : > { %7045 = vmatpush3.xpose.msk.msra.mxu1 %vm1400_vm6, %v2625_v16 }
 0xb30   : > { %v2434_v20 = vpop.xlane.xlu0 %2433 }
 0xb31   : > { %7542 = vrcp.f32 %v2434_v20 }
 0xb34   : > { %v2623_v21 = vpop.permute.xlu0 %2622 }
 0xb35   : > { %7047 = vmatmul.mubr.msk.f32.vlgmr.msra.gmra.mxu1 %vm1400_vm6, %v2623_v21 }
 0xb36   : > { %v2437_v24 = vpop.xlane.xlu1 %2436 }
 0xb37   : > { %7544 = vrcp.f32 %v2437_v24 }
 0xb38   : > { %v2712_v31 = vpop.permute.xlu0 %2711 }
 0xb3a   : > { %v2716_v32 = vpop.permute.xlu1 %2715 }
 0xb3e   : > { %v7543_v25 = vpop.eup %7542  ;;  %v2714_v33 = vpop.permute.xlu1 %2713 }
 0xb3f   : > { %v2444_v28 = vmul.f32 %v7543_v25, %v7535_v60 }
 0xb41   : > { %7039 = vmatprep.mubr.msk.f32.mxu0 %vm1585_vm7, %v2444_v28 }
 0xb44   : > { %v7545_v29 = vpop.eup %7544 }
 0xb45   : > { %v2445_v30 = vmul.f32 %v7545_v29, %v7537_v62 }
 0xb47   : > { %7040 = vmatmul.mubr.msk.f32.vlgmr.msra.gmra.mxu0 %vm1585_vm7, %v2445_v30 }
 0xb48   : > { %7050 = vmatpush3.xpose.msk.msra.mxu0 %vm1400_vm6, %v2718_v7  ;;  %7053 = vmatprep.mubr.msk.f32.mxu0 %vm1400_vm6, %v2712_v31 }
 0xb49   : > { %7051 = vmatprep.subr.msk.mxu0 %vm1400_vm6, %v2716_v32 }
 0xb4c   : > { %7052 = vmatpush3.xpose.msk.msra.mxu0 %vm1400_vm6, %v2716_v32 }
 0xb4f   : > { %7054 = vmatmul.mubr.msk.f32.vlgmr.msra.gmra.mxu0 %vm1400_vm6, %v2714_v33 }
 0xbc5   : > { %v7034_v34 = vpop.f32.mrf.mxu1 }
 0xbc7   : > { %v2524_v35 = vpop.f32.mrf.mxu1 }
 0xbf5   : > { %v7048_v37 = vpop.f32.mrf.mxu1 }
 0xbf6   : > { %v2803_v38 = vmul.f32 0.35355338, %v7048_v37 }
 0xbf7   : > { %v2702_v40 = vpop.f32.mrf.mxu1 }
 0xbf8   : > { %v2802_v41 = vmul.f32 0.35355338, %v2702_v40  ;;  %v2807_v42 = vsel %vm8504_vm4, %v2803_v38, -1e+30  ;;  %v3092_v40 = vld [vmem:[%s9500_s11 + $0x18] sm:$0xff] }
 0xbf9   : > { %v2813_v43 = vsel %vm1585_vm7, %v2807_v42, -inf }
 0xbfa   : > { %2814 = vmax.xlane.f32.xlu1 %v2813_v43  ;;  %v2806_v45 = vsel %vm8500_vm3, %v2802_v41, -1e+30  ;;  %v3091_v41 = vld [vmem:[%s9500_s11 + $0x10] sm:$0xff]  ;;  %v3089_v43 = vld [vmem:[%s9500_s11] sm:$0xff] }
 0xbfb   : > { %v2810_v48 = vsel %vm1585_vm7, %v2806_v45, -inf }
 0xbfc   : > { %2811 = vmax.xlane.f32.xlu0 %v2810_v48 }
 0xc07   : > { %v8784_v50 = vpop.f32.mrf.mxu0 }
 0xc09   : > { %v8786_v51 = vpop.f32.mrf.mxu0 }
 0xc0f   : > { %v7055_v54 = vpop.f32.mrf.mxu0 }
 0xc10   : > { %v2805_v56 = vmul.f32 0.35355338, %v7055_v54 }
 0xc11   : > { %v2793_v55 = vpop.f32.mrf.mxu0 }
 0xc12   : > { %v2804_v57 = vmul.f32 0.35355338, %v2793_v55  ;;  %v2809_v60 = vsel %vm8504_vm4, %v2805_v56, -1e+30 }
 0xc13   : > { %v2819_v61 = vsel %vm1585_vm7, %v2809_v60, -inf }
 0xc14   : > { %v2808_v58 = vsel %vm8500_vm3, %v2804_v57, -1e+30 }
 0xc15   : > { %v2816_v59 = vsel %vm1585_vm7, %v2808_v58, -inf }
 0xc16   : > { %2817 = vmax.xlane.f32.xlu0 %v2816_v59 }
 0xc1a   : > { %2820 = vmax.xlane.f32.xlu0 %v2819_v61 }
 0xc83   : > { %v2815_v62 = vpop.xlane.xlu1 %2814 }
 0xc84   : > { %v2823_v63 = vsub.f32 %v2807_v42, %v2815_v62  ;;  %v3090_v42 = vld [vmem:[%s9500_s11 + $0x8] sm:$0xff] }
 0xc85   : > { %v2812_v0 = vpop.xlane.xlu0 %2811 }
 0xc86   : > { %v2828_v1 = vmul.f32 1.442695, %v2823_v63  ;;  %v2822_v2 = vsub.f32 %v2806_v45, %v2812_v0 }
 0xc88   : > { %7546 = vpow2.f32 %v2828_v1  ;;  %v2826_v3 = vmul.f32 1.442695, %v2822_v2 }
 0xc8a   : > { %7548 = vpow2.f32 %v2826_v3 }
 0xc95   : > { %v7547_v4 = vpop.eup %7546 }
 0xc96   : > { %v2837_v5 = vsel %vm1585_vm7, %v7547_v4, 0.0 }
 0xc97   : > { %v7549_v6 = vpop.eup %7548  ;;  %2838 = vadd.xlane.f32.xlu1 %v2837_v5 }
 0xc98   : > { %v2834_v7 = vsel %vm1585_vm7, %v7549_v6, 0.0 }
 0xc99   : > { %2835 = vadd.xlane.f32.xlu0 %v2834_v7 }
 0xc9f   : > { %v2818_v12 = vpop.xlane.xlu0 %2817 }
 0xca0   : > { %v2824_v13 = vsub.f32 %v2808_v58, %v2818_v12 }
 0xca2   : > { %v2830_v16 = vmul.f32 1.442695, %v2824_v13 }
 0xca3   : > { %v2821_v17 = vpop.xlane.xlu0 %2820 }
 0xca4   : > { %7550 = vpow2.f32 %v2830_v16  ;;  %v2825_v18 = vsub.f32 %v2809_v60, %v2821_v17  ;;  %v6575_v16 = vld [vmem:[#allocation11] ss:$0 sm:$0xff] }
 0xca6   : > { %v2832_v19 = vmul.f32 1.442695, %v2825_v18 }
 0xca8   : > { %7552 = vpow2.f32 %v2832_v19 }
 0xcb1   : > { %v7551_v20 = vpop.eup %7550 }
 0xcb2   : > { %v2840_v21 = vsel %vm1585_vm7, %v7551_v20, 0.0 }
 0xcb3   : > { %2841 = vadd.xlane.f32.xlu0 %v2840_v21 }
 0xcb5   : > { %v7553_v24 = vpop.eup %7552 }
 0xcb6   : > { %v2843_v25 = vsel %vm1585_vm7, %v7553_v24, 0.0 }
 0xcb7   : > { %2844 = vadd.xlane.f32.xlu1 %v2843_v25 }
 0xcc8   : > { %2854 = vrot.lane.b32.xlu1 %v8564_v49, %s9541_s30 }
 0xcc9   : > { %2856 = vrot.lane.b32.xlu0 %v8562_v47, %s9541_s30 }
 0xccc   : > { %2943 = vrot.lane.b32.xlu1 %v8572_v52, %s9541_s30 }
 0xccd   : > { %3032 = vrot.lane.b32.xlu0 %v8716_v15, %s9559_s27 }
 0xcd0   : > { %2941 = vrot.lane.b32.xlu1 %v8574_v53, %s9541_s30  ;;  %s9622_s30 = smov 120  }
 0xcd1   : > { %3048 = vrot.lane.b32.xlu0 %v2524_v35, %s8128_s29 }
 0xcd4   : > { %3034 = vrot.lane.b32.xlu1 %v8714_v14, %s9559_s27 }
 0xcd8   : > { %3050 = vrot.lane.b32.xlu1 %v7034_v34, %s8128_s29 }
 0xd20   : > { %v2839_v52 = vpop.xlane.xlu1 %2838 }
 0xd22   : > { %v2836_v49 = vpop.xlane.xlu0 %2835 }
 0xd23   : > { %7554 = vrcp.f32 %v2836_v49 }
 0xd24   : > { %7556 = vrcp.f32 %v2839_v52 }
 0xd30   : > { %v7555_v47 = vpop.eup %7554 }
 0xd31   : > { %v2850_v28 = vmul.f32 %v7555_v47, %v7549_v6  ;;  %v7557_v30 = vpop.eup %7556 }
 0xd32   : > { %v2851_v14 = vmul.f32 %v7557_v30, %v7547_v4 }
 0xd33   : > { %7060 = vmatprep.mubr.msk.f32.mxu1 %vm1585_vm7, %v2850_v28 }
 0xd3c   : > { %v2842_v15 = vpop.xlane.xlu0 %2841 }
 0xd3d   : > { %7558 = vrcp.f32 %v2842_v15 }
 0xd40   : > { %v2845_v29 = vpop.xlane.xlu1 %2844  ;;  %v2857_v53 = vpop.permute.xlu0 %2856 }
 0xd41   : > { %7560 = vrcp.f32 %v2845_v29  ;;  %7056 = vmatprep.subr.mxu1 %v2857_v53 }
 0xd42   : > { %7057 = vmatpush3.msra.mxu1 %v2857_v53 }
 0xd44   : > { %v2855_v31 = vpop.permute.xlu1 %2854  ;;  %v3033_v57 = vpop.permute.xlu0 %3032 }
 0xd45   : > { %7058 = vmatprep.subr.mxu1 %v2855_v31 }
 0xd46   : > { %7059 = vmatpush3.msra.mxu1 %v2855_v31 }
 0xd47   : > { %7061 = vmatmul.mubr.msk.f32.vlgmr.msra.gmra.mxu1 %vm1585_vm7, %v2851_v14  ;;  %7070 = vmatprep.subr.mxu1 %v3092_v40 }
 0xd48   : > { %v2944_v32 = vpop.permute.xlu1 %2943  ;;  %7071 = vmatpush3.msra.mxu1 %v3092_v40  ;;  %v3049_v59 = vpop.permute.xlu0 %3048 }
 0xd49   : > { %7063 = vmatprep.subr.mxu0 %v2944_v32  ;;  %7072 = vmatprep.subr.mxu1 %v3091_v41 }
 0xd4a   : > { %v7559_v33 = vpop.eup %7558  ;;  %7064 = vmatpush3.msra.mxu0 %v2944_v32  ;;  %7073 = vmatpush3.msra.mxu1 %v3091_v41 }
 0xd4b   : > { %v2852_v34 = vmul.f32 %v7559_v33, %v7551_v20  ;;  %7074 = vmatprep.subr.mxu1 %v3090_v42 }
 0xd4c   : > { %v2942_v35 = vpop.permute.xlu1 %2941  ;;  %7075 = vmatpush3.msra.mxu1 %v3090_v42 }
 0xd4d   : > { %7065 = vmatprep.subr.mxu0 %v2942_v35  ;;  %7067 = vmatprep.mubr.msk.f32.mxu0 %vm1585_vm7, %v2852_v34 }
 0xd4e   : > { %v7561_v37 = vpop.eup %7560  ;;  %7066 = vmatpush3.msra.mxu0 %v2942_v35  ;;  %7076 = vmatprep.subr.mxu1 %v3089_v43 }
 0xd4f   : > { %v2853_v38 = vmul.f32 %v7561_v37, %v7553_v24  ;;  %7077 = vmatpush3.msra.mxu1 %v3089_v43 }
 0xd50   : > { %v3035_v56 = vpop.permute.xlu1 %3034 }
 0xd51   : > { %7068 = vmatmul.mubr.msk.f32.vlgmr.msra.gmra.mxu0 %vm1585_vm7, %v2853_v38  ;;  %v3077_v60 = vsel %vm1400_vm6, %v8656_v8, %v3035_v56  ;;  %v3277_v56 = vld [vmem:[#allocation16 + $0x10] sm:$0xff] }
 0xd54   : > { %v3051_v58 = vpop.permute.xlu1 %3050 }
 0xd55   : > { %v3081_v61 = vsel %vm1585_vm7, %v3077_v60, %v3051_v58  ;;  %v3275_v58 = vld [vmem:[#allocation16] sm:$0xff] }
 0xe07   : > { %v7062_v45 = vpop.f32.mrf.mxu1 }
 0xe08   : > { %3066 = vrot.lane.b32.xlu1 %v7062_v45, %s9557_s6 }
 0xe09   : > { %v2932_v48 = vpop.f32.mrf.mxu1 }
 0xe0a   : > { %3064 = vrot.lane.b32.xlu0 %v2932_v48, %s9557_s6 }
 0xe0c   : > { %3038 = vrot.lane.b32.xlu1 %v8724_v26, %s9559_s27 }
 0xe0e   : > { %3036 = vrot.lane.b32.xlu0 %v8726_v27, %s9559_s27  ;;  %v3076_v27 = vsel %vm1400_vm6, %v8658_v9, %v3033_v57  ;;  %v3276_v57 = vld [vmem:[#allocation16 + $0x8] sm:$0xff] }
 0xe10   : > { %3054 = vrot.lane.b32.xlu1 %v8784_v50, %s8128_s29  ;;  %v3080_v50 = vsel %vm1585_vm7, %v3076_v27, %v3049_v59 }
 0xe11   : > { %v7069_v54 = vpop.f32.mrf.mxu0 }
 0xe12   : > { %3052 = vrot.lane.b32.xlu0 %v8786_v51, %s8128_s29 }
 0xe13   : > { %v3019_v55 = vpop.f32.mrf.mxu0 }
 0xe14   : > { %3070 = vrot.lane.b32.xlu1 %v7069_v54, %s9557_s6 }
 0xe16   : > { %3068 = vrot.lane.b32.xlu0 %v3019_v55, %s9557_s6  ;;  %v3278_v55 = vld [vmem:[#allocation16 + $0x18] sm:$0xff]  ;;  %s9621_s6 = smov 88  }
 0xe17   : > { %7084 = vmatprep.subr.mxu0 %v3278_v55 }
 0xe18   : > { %7085 = vmatpush3.msra.mxu0 %v3278_v55 }
 0xe19   : > { %7086 = vmatprep.subr.mxu0 %v3277_v56 }
 0xe1a   : > { %7087 = vmatpush3.msra.mxu0 %v3277_v56 }
 0xe1b   : > { %7088 = vmatprep.subr.mxu0 %v3276_v57 }
 0xe1c   : > { %7089 = vmatpush3.msra.mxu0 %v3276_v57 }
 0xe1d   : > { %7090 = vmatprep.subr.mxu0 %v3275_v58 }
 0xe1e   : > { %7091 = vmatpush3.msra.mxu0 %v3275_v58 }
 0xe7a   : > { %v3067_v26 = vpop.permute.xlu1 %3066 }
 0xe7b   : > { %v3086_v63 = vsel %vm3084_vm8, %v3081_v61, %v3067_v26 }
 0xe7c   : > { %v3065_v51 = vpop.permute.xlu0 %3064 }
 0xe7d   : > { %v3085_v62 = vsel %vm3084_vm8, %v3080_v50, %v3065_v51 }
 0xe7e   : > { %v3039_v0 = vpop.permute.xlu1 %3038  ;;  %7078 = vmatprep.mubr.msk.f32.mxu1 %vm1086_vm2, %v3085_v62 }
 0xe7f   : > { %7079 = vmatmul.mubr.msk.f32.vlgmr.msra.gmra.mxu1 %vm1086_vm2, %v3086_v63  ;;  %v3079_v8 = vsel %vm1400_vm6, %v8660_v10, %v3039_v0 }
 0xe80   : > { %v3037_v1 = vpop.permute.xlu0 %3036 }
 0xe81   : > { %v3078_v3 = vsel %vm1400_vm6, %v8662_v11, %v3037_v1 }
 0xe82   : > { %v3055_v9 = vpop.permute.xlu1 %3054 }
 0xe83   : > { %v3083_v7 = vsel %vm1585_vm7, %v3079_v8, %v3055_v9 }
 0xe84   : > { %v3053_v2 = vpop.permute.xlu0 %3052 }
 0xe85   : > { %v3082_v5 = vsel %vm1585_vm7, %v3078_v3, %v3053_v2  ;;  %v6580_v2 = vld [vmem:[#allocation13] ss:$0 sm:$0xff] }
 0xe86   : > { %v3071_v4 = vpop.permute.xlu1 %3070 }
 0xe87   : > { %v3088_v13 = vsel %vm3084_vm8, %v3083_v7, %v3071_v4  ;;  %v6581_v7 = vld [vmem:[#allocation14] ss:$0 sm:$0xff] }
 0xe88   : > { %v3069_v6 = vpop.permute.xlu0 %3068 }
 0xe89   : > { %v3087_v12 = vsel %vm3084_vm8, %v3082_v5, %v3069_v6 }
 0xe8a   : > { %7081 = vmatprep.mubr.msk.f32.mxu1 %vm1086_vm2, %v3087_v12 }
 0xe8b   : > { %7082 = vmatmul.mubr.msk.f32.gmra.mxu1 %vm1086_vm2, %v3088_v13 }
 0xf3f   : > { %v7080_v17 = vpop.f32.mrf.mxu1 }
 0xf40   : > { %v3184_v11 = vadd.f32 %v7080_v17, %v6575_v16 }
 0xf41   : > { %v3178_v18 = vpop.f32.mrf.mxu1 }
 0xf42   : > { %v8861_v19 = vadd.f32 %v3184_v11, %v8521_v39  ;;  %v3179_v10 = vadd.f32 %v6575_v16, %v3178_v18 }
 0xf44   : > { %v8864_v20 = vadd.f32 %v3179_v10, %v8519_v36  ;;  %v3206_v21 = vsel %vm1086_vm2, %v8861_v19, 0.0 }
 0xf45   : > { %3207 = vadd.xlane.f32.xlu1 %v3206_v21 }
 0xf46   : > { %v3203_v24 = vsel %vm1086_vm2, %v8864_v20, 0.0 }
 0xf47   : > { %3204 = vadd.xlane.f32.xlu0 %v3203_v24 }
 0xf4b   : > { %v7083_v25 = vpop.f32.mrf.mxu1 }
 0xf4c   : > { %v3194_v47 = vadd.f32 %v7083_v25, %v6575_v16 }
 0xf4d   : > { %v3188_v49 = vpop.f32.mrf.mxu1 }
 0xf4e   : > { %v3189_v28 = vadd.f32 %v6575_v16, %v3188_v49  ;;  %v8874_v39 = vadd.f32 %v3194_v47, %v8529_v46  ;;  %v3498_v47 = vld [vmem:[%s9506_s17 + $0x38] sm:$0xff] }
 0xf4f   : > { %7098 = vmatprep.subr.mxu1 %v3498_v47 }
 0xf50   : > { %v8871_v52 = vadd.f32 %v3189_v28, %v8525_v44  ;;  %v3212_v15 = vsel %vm1086_vm2, %v8874_v39, 0.0  ;;  %7099 = vmatpush3.msra.mxu1 %v3498_v47  ;;  %v3497_v28 = vld [vmem:[%s9506_s17 + $0x30] sm:$0xff] }
 0xf51   : > { %7100 = vmatprep.subr.mxu1 %v3497_v28 }
 0xf52   : > { %v3209_v36 = vsel %vm1086_vm2, %v8871_v52, 0.0  ;;  %7101 = vmatpush3.msra.mxu1 %v3497_v28 }
 0xf53   : > { %3210 = vadd.xlane.f32.xlu0 %v3209_v36  ;;  %v3496_v36 = vld [vmem:[%s9506_s17 + $0x28] sm:$0xff] }
 0xf54   : > { %7102 = vmatprep.subr.mxu1 %v3496_v36 }
 0xf55   : > { %7103 = vmatpush3.msra.mxu1 %v3496_v36 }
 0xf57   : > { %3213 = vadd.xlane.f32.xlu0 %v3212_v15  ;;  %v3495_v15 = vld [vmem:[%s9506_s17 + $0x20] sm:$0xff] }
 0xf58   : > { %7104 = vmatprep.subr.mxu1 %v3495_v15 }
 0xf59   : > { %7105 = vmatpush3.msra.mxu1 %v3495_v15 }
 0xfce   : > { %v3208_v29 = vpop.xlane.xlu1 %3207 }
 0xfcf   : > { %v3216_v53 = vmul.f32 0.03125, %v3208_v29  ;;  %v3494_v29 = vld [vmem:[%s9506_s17 + $0x18] sm:$0xff] }
 0xfd0   : > { %v3205_v30 = vpop.xlane.xlu0 %3204  ;;  %7106 = vmatprep.subr.mxu1 %v3494_v29 }
 0xfd1   : > { %v3220_v31 = vsub.f32 %v8861_v19, %v3216_v53  ;;  %v3215_v14 = vmul.f32 0.03125, %v3205_v30  ;;  %7107 = vmatpush3.msra.mxu1 %v3494_v29  ;;  %v3493_v53 = vld [vmem:[%s9506_s17 + $0x10] sm:$0xff]  ;;  %v3492_v30 = vld [vmem:[%s9506_s17 + $0x8] sm:$0xff] }
 0xfd2   : > { %7108 = vmatprep.subr.mxu1 %v3493_v53 }
 0xfd3   : > { %v3219_v44 = vsub.f32 %v8864_v20, %v3215_v14  ;;  %v3224_v32 = vmul.f32 %v3220_v31, %v3220_v31  ;;  %7109 = vmatpush3.msra.mxu1 %v3493_v53  ;;  %v6582_v14 = vld [vmem:[#allocation17] ss:$0 sm:$0xff] }
 0xfd4   : > { %7110 = vmatprep.subr.mxu1 %v3492_v30 }
 0xfd5   : > { %v3230_v46 = vsel %vm1086_vm2, %v3224_v32, 0.0  ;;  %v3223_v33 = vmul.f32 %v3219_v44, %v3219_v44  ;;  %7111 = vmatpush3.msra.mxu1 %v3492_v30 }
 0xfd6   : > { %3231 = vadd.xlane.f32.xlu1 %v3230_v46 }
 0xfd7   : > { %v3227_v34 = vsel %vm1086_vm2, %v3223_v33, 0.0 }
 0xfd8   : > { %3228 = vadd.xlane.f32.xlu0 %v3227_v34 }
 0xfdc   : > { %v3211_v35 = vpop.xlane.xlu0 %3210 }
 0xfdd   : > { %v3217_v37 = vmul.f32 0.03125, %v3211_v35 }
 0xfdf   : > { %v3221_v38 = vsub.f32 %v8871_v52, %v3217_v37 }
 0xfe0   : > { %v3214_v40 = vpop.xlane.xlu0 %3213 }
 0xfe1   : > { %v3218_v41 = vmul.f32 0.03125, %v3214_v40  ;;  %v3225_v42 = vmul.f32 %v3221_v38, %v3221_v38 }
 0xfe3   : > { %v3222_v43 = vsub.f32 %v8874_v39, %v3218_v41  ;;  %v3233_v45 = vsel %vm1086_vm2, %v3225_v42, 0.0 }
 0xfe4   : > { %3234 = vadd.xlane.f32.xlu0 %v3233_v45 }
 0xfe5   : > { %v3226_v48 = vmul.f32 %v3222_v43, %v3222_v43 }
 0xfe7   : > { %v3236_v54 = vsel %vm1086_vm2, %v3226_v48, 0.0 }
 0xfe8   : > { %3237 = vadd.xlane.f32.xlu1 %v3236_v54 }
0x105f   : > { %v3232_v59 = vpop.xlane.xlu1 %3231 }
0x1060   : > { %v3240_v26 = vmul.f32 0.03125, %v3232_v59 }
0x1061   : > { %v3229_v27 = vpop.xlane.xlu0 %3228 }
0x1062   : > { %v3244_v50 = vadd.f32 1e-05, %v3240_v26  ;;  %v3239_v60 = vmul.f32 0.03125, %v3229_v27 }
0x1064   : > { %7562 = vrsqrt.f32 %v3244_v50  ;;  %v3243_v51 = vadd.f32 1e-05, %v3239_v60 }
0x1066   : > { %7564 = vrsqrt.f32 %v3243_v51 }
0x106d   : > { %v3235_v61 = vpop.xlane.xlu0 %3234 }
0x106e   : > { %v3241_v62 = vmul.f32 0.03125, %v3235_v61 }
0x1070   : > { %v3245_v63 = vadd.f32 1e-05, %v3241_v62 }
0x1071   : > { %v7563_v0 = vpop.eup %7562  ;;  %v3238_v1 = vpop.xlane.xlu1 %3237 }
0x1072   : > { %7566 = vrsqrt.f32 %v3245_v63  ;;  %v3242_v9 = vmul.f32 0.03125, %v3238_v1  ;;  %v3252_v3 = vmul.f32 %v7563_v0, %v3220_v31  ;;  %v3491_v31 = vld [vmem:[%s9506_s17] sm:$0xff] }
0x1073   : > { %v7565_v4 = vpop.eup %7564  ;;  %7112 = vmatprep.subr.mxu1 %v3491_v31 }
0x1074   : > { %v3246_v8 = vadd.f32 1e-05, %v3242_v9  ;;  %v3251_v5 = vmul.f32 %v7565_v4, %v3219_v44  ;;  %v3262_v6 = vmul.f32 %v6580_v2, %v3252_v3  ;;  %7113 = vmatpush3.msra.mxu1 %v3491_v31 }
0x1076   : > { %7568 = vrsqrt.f32 %v3246_v8  ;;  %v3261_v12 = vmul.f32 %v6580_v2, %v3251_v5  ;;  %v3272_v16 = vadd.f32 %v6581_v7, %v3262_v6 }
0x1078   : > { %v3271_v13 = vadd.f32 %v6581_v7, %v3261_v12 }
0x107a   : > { %7092 = vmatprep.mubr.msk.f32.mxu0 %vm1086_vm2, %v3271_v13 }
0x107b   : > { %7093 = vmatmul.mubr.msk.f32.vlgmr.msra.gmra.mxu0 %vm1086_vm2, %v3272_v16 }
0x107f   : > { %v7567_v17 = vpop.eup %7566 }
0x1080   : > { %v3253_v11 = vmul.f32 %v7567_v17, %v3221_v38 }
0x1082   : > { %v3263_v18 = vmul.f32 %v6580_v2, %v3253_v11 }
0x1083   : > { %v7569_v10 = vpop.eup %7568 }
0x1084   : > { %v3273_v21 = vadd.f32 %v6581_v7, %v3263_v18  ;;  %v3254_v24 = vmul.f32 %v7569_v10, %v3222_v43 }
0x1086   : > { %7095 = vmatprep.mubr.msk.f32.mxu0 %vm1086_vm2, %v3273_v21  ;;  %v3264_v25 = vmul.f32 %v6580_v2, %v3254_v24 }
0x1088   : > { %v3274_v49 = vadd.f32 %v6581_v7, %v3264_v25 }
0x108a   : > { %7096 = vmatmul.mubr.msk.f32.gmra.mxu0 %vm1086_vm2, %v3274_v49 }
0x113b   : > { %v7094_v44 = vpop.f32.mrf.mxu0 }
0x113c   : > { %v8916_v32 = vadd.f32 %v7094_v44, %v6582_v14 }
0x113d   : > { %v3364_v46 = vpop.f32.mrf.mxu0 }
0x113e   : > { %v8919_v33 = vmul.f32 0.70710677, %v8916_v32  ;;  %v8921_v34 = vadd.f32 %v6582_v14, %v3364_v46 }
0x1140   : > { %v3400_v35 = vand.u32 2147483647, %v8919_v33  ;;  %v8925_v37 = vmul.f32 0.70710677, %v8921_v34  ;;  %vm3392_vm9 = vcmp.ge.f32.partialorder %v8919_v33, 0.0 }
0x1142   : > { %v3404_v38 = vmul.f32 0.3275911, %v3400_v35  ;;  %v3399_v40 = vand.u32 2147483647, %v8925_v37  ;;  %v3456_v48 = vsub.f32 0.0, %v3400_v35  ;;  %vm3391_vm10 = vcmp.ge.f32.partialorder %v8925_v37, 0.0 }
0x1143   : > { %v3384_v37 = vmul.f32 0.5, %v8916_v32 }
0x1144   : > { %v3408_v41 = vadd.f32 1.0, %v3404_v38  ;;  %v3403_v42 = vmul.f32 0.3275911, %v3399_v40  ;;  %v3460_v58 = vmul.f32 %v3456_v48, %v3400_v35  ;;  %v3455_v59 = vsub.f32 0.0, %v3399_v40 }
0x1145   : > { %v8130_v48 = vmov -1.0  }
0x1146   : > { %7570 = vrcp.f32 %v3408_v41  ;;  %v3407_v43 = vadd.f32 1.0, %v3403_v42  ;;  %v3465_v61 = vmul.f32 1.442695, %v3460_v58  ;;  %v3459_v62 = vmul.f32 %v3455_v59, %v3399_v40 }
0x1148   : > { %7572 = vrcp.f32 %v3407_v43  ;;  %v3463_v8 = vmul.f32 1.442695, %v3459_v62 }
0x114a   : > { %v7097_v45 = vpop.f32.mrf.mxu0 }
0x114b   : > { %v8928_v54 = vadd.f32 %v7097_v45, %v6582_v14 }
0x114c   : > { %v3374_v55 = vpop.f32.mrf.mxu0 }
0x114d   : > { %v8931_v56 = vmul.f32 0.70710677, %v8928_v54  ;;  %v8933_v57 = vadd.f32 %v6582_v14, %v3374_v55  ;;  %v3396_v55 = vsel %vm3392_vm9, 1.0, %v8130_v48 }
0x114f   : > { %v3402_v26 = vand.u32 2147483647, %v8931_v56  ;;  %v8937_v27 = vmul.f32 0.70710677, %v8933_v57  ;;  %vm3394_vm12 = vcmp.ge.f32.partialorder %v8931_v56, 0.0  ;;  %v3386_v56 = vmul.f32 0.5, %v8928_v54 }
0x1150   : > { %v3398_v32 = vsel %vm3394_vm12, 1.0, %v8130_v48 }
0x1151   : > { %v3406_v50 = vmul.f32 0.3275911, %v3402_v26  ;;  %v3401_v60 = vand.u32 2147483647, %v8937_v27  ;;  %v3458_v13 = vsub.f32 0.0, %v3402_v26  ;;  %vm3393_vm13 = vcmp.ge.f32.partialorder %v8937_v27, 0.0 }
0x1152   : > { %v6587_v27 = vld [vmem:[%s9507_s18] ss:$0 sm:$0xff] }
0x1153   : > { %v7571_v51 = vpop.eup %7570  ;;  %v3410_v63 = vadd.f32 1.0, %v3406_v50  ;;  %v3405_v0 = vmul.f32 0.3275911, %v3401_v60  ;;  %v3457_v18 = vsub.f32 0.0, %v3401_v60  ;;  %v3462_v21 = vmul.f32 %v3458_v13, %v3402_v26 }
0x1154   : > { %v3420_v1 = vmul.f32 1.0614054, %v7571_v51 }
0x1155   : > { %7574 = vrcp.f32 %v3410_v63  ;;  %v3409_v9 = vadd.f32 1.0, %v3405_v0  ;;  %v7573_v2 = vpop.eup %7572  ;;  %v3461_v28 = vmul.f32 %v3457_v18, %v3401_v60  ;;  %v3469_v29 = vmul.f32 1.442695, %v3462_v21 }
0x1156   : > { %v3424_v3 = vadd.f32 -1.4531521, %v3420_v1  ;;  %7576 = vpow2.f32 %v3465_v61  ;;  %v3419_v4 = vmul.f32 1.0614054, %v7573_v2 }
0x1157   : > { %7578 = vrcp.f32 %v3409_v9  ;;  %v3467_v38 = vmul.f32 1.442695, %v3461_v28  ;;  %v3383_v9 = vmul.f32 0.5, %v8921_v34  ;;  %v3385_v28 = vmul.f32 0.5, %v8933_v57 }
0x1158   : > { %v3428_v5 = vmul.f32 %v7571_v51, %v3424_v3  ;;  %v3423_v6 = vadd.f32 -1.4531521, %v3419_v4  ;;  %7580 = vpow2.f32 %v3463_v8 }
0x1159   : > { %7582 = vpow2.f32 %v3469_v29 }
0x115a   : > { %v3432_v7 = vadd.f32 1.4214138, %v3428_v5  ;;  %v3427_v12 = vmul.f32 %v7573_v2, %v3423_v6  ;;  %7584 = vpow2.f32 %v3467_v38 }
0x115c   : > { %v3436_v16 = vmul.f32 %v7571_v51, %v3432_v7  ;;  %v3431_v17 = vadd.f32 1.4214138, %v3427_v12 }
0x115e   : > { %v3440_v11 = vadd.f32 -0.28449672, %v3436_v16  ;;  %v3435_v10 = vmul.f32 %v7573_v2, %v3431_v17 }
0x1160   : > { %v3444_v24 = vmul.f32 %v7571_v51, %v3440_v11  ;;  %v3439_v25 = vadd.f32 -0.28449672, %v3435_v10 }
0x1162   : > { %v7575_v49 = vpop.eup %7574  ;;  %v3448_v47 = vadd.f32 0.2548296, %v3444_v24  ;;  %v3443_v36 = vmul.f32 %v7573_v2, %v3439_v25  ;;  %v3397_v25 = vsel %vm3393_vm13, 1.0, %v8130_v48 }
0x1163   : > { %v3422_v15 = vmul.f32 1.0614054, %v7575_v49  ;;  %v7577_v53 = vpop.eup %7576 }
0x1164   : > { %v3452_v30 = vmul.f32 %v7571_v51, %v3448_v47  ;;  %v7579_v31 = vpop.eup %7578  ;;  %v3447_v14 = vadd.f32 0.2548296, %v3443_v36  ;;  %v3395_v51 = vsel %vm3391_vm10, 1.0, %v8130_v48 }
0x1165   : > { %v3426_v44 = vadd.f32 -1.4531521, %v3422_v15  ;;  %v3421_v35 = vmul.f32 1.0614054, %v7579_v31  ;;  %v7581_v42 = vpop.eup %7580 }
0x1166   : > { %v3472_v46 = vmul.f32 %v7577_v53, %v3452_v30  ;;  %v3451_v40 = vmul.f32 %v7573_v2, %v3447_v14  ;;  %v7583_v13 = vpop.eup %7582 }
0x1167   : > { %v3430_v41 = vmul.f32 %v7575_v49, %v3426_v44  ;;  %v3425_v45 = vadd.f32 -1.4531521, %v3421_v35  ;;  %v7585_v11 = vpop.eup %7584 }
0x1168   : > { %v3476_v43 = vsub.f32 1.0, %v3472_v46  ;;  %v3471_v58 = vmul.f32 %v7581_v42, %v3451_v40 }
0x1169   : > { %v3434_v59 = vadd.f32 1.4214138, %v3430_v41  ;;  %v3429_v50 = vmul.f32 %v7579_v31, %v3425_v45 }
0x116a   : > { %v3480_v26 = vmul.f32 %v3476_v43, %v3396_v55  ;;  %v3475_v33 = vsub.f32 1.0, %v3471_v58 }
0x116b   : > { %v3438_v60 = vmul.f32 %v7575_v49, %v3434_v59  ;;  %v3433_v61 = vadd.f32 1.4214138, %v3429_v50 }
0x116c   : > { %v3479_v62 = vmul.f32 %v3475_v33, %v3395_v51  ;;  %v3484_v0 = vadd.f32 1.0, %v3480_v26 }
0x116d   : > { %v3442_v63 = vadd.f32 -0.28449672, %v3438_v60  ;;  %v3437_v1 = vmul.f32 %v7579_v31, %v3433_v61 }
0x116e   : > { %v3483_v2 = vadd.f32 1.0, %v3479_v62  ;;  %v3488_v6 = vmul.f32 %v3484_v0, %v3384_v37 }
0x116f   : > { %v3446_v3 = vmul.f32 %v7575_v49, %v3442_v63  ;;  %v3441_v4 = vadd.f32 -0.28449672, %v3437_v1 }
0x1170   : > { %v3487_v8 = vmul.f32 %v3483_v2, %v3383_v9 }
0x1171   : > { %v3450_v5 = vadd.f32 0.2548296, %v3446_v3  ;;  %v3445_v7 = vmul.f32 %v7579_v31, %v3441_v4  ;;  %v6598_v4 = vld [vmem:[%s9617_s28 + $0x38] sm:$0xff] }
0x1172   : > { %7114 = vmatprep.mubr.msk.f32.mxu1 %vm3506_vm11, %v3487_v8  ;;  %7120 = vmatprep.subr.mxu0 %v6598_v4  ;;  %v6597_v8 = vld [vmem:[%s9617_s28 + $0x30] sm:$0xff] }
0x1173   : > { %v3454_v12 = vmul.f32 %v7575_v49, %v3450_v5  ;;  %v3449_v16 = vadd.f32 0.2548296, %v3445_v7  ;;  %7115 = vmatmul.mubr.msk.f32.vlgmr.msra.gmra.mxu1 %vm3506_vm11, %v3488_v6  ;;  %7121 = vmatpush3.msra.mxu0 %v6598_v4  ;;  %v6596_v5 = vld [vmem:[%s9617_s28 + $0x28] sm:$0xff]  ;;  %v6595_v6 = vld [vmem:[%s9617_s28 + $0x20] sm:$0xff] }
0x1174   : > { %7122 = vmatprep.subr.mxu0 %v6597_v8 }
0x1175   : > { %v3474_v34 = vmul.f32 %v7583_v13, %v3454_v12  ;;  %v3453_v17 = vmul.f32 %v7579_v31, %v3449_v16  ;;  %7123 = vmatpush3.msra.mxu0 %v6597_v8 }
0x1176   : > { %7124 = vmatprep.subr.mxu0 %v6596_v5 }
0x1177   : > { %v3478_v18 = vsub.f32 1.0, %v3474_v34  ;;  %v3473_v10 = vmul.f32 %v7585_v11, %v3453_v17  ;;  %7125 = vmatpush3.msra.mxu0 %v6596_v5 }
0x1178   : > { %7126 = vmatprep.subr.mxu0 %v6595_v6 }
0x1179   : > { %v3482_v21 = vmul.f32 %v3478_v18, %v3398_v32  ;;  %v3477_v24 = vsub.f32 1.0, %v3473_v10  ;;  %7127 = vmatpush3.msra.mxu0 %v6595_v6 }
0x117b   : > { %v3481_v49 = vmul.f32 %v3477_v24, %v3397_v25  ;;  %v3486_v47 = vadd.f32 1.0, %v3482_v21 }
0x117d   : > { %v3485_v36 = vadd.f32 1.0, %v3481_v49  ;;  %v3490_v29 = vmul.f32 %v3486_v47, %v3386_v56  ;;  %v6593_v49 = vld [vmem:[%s9618_s1 + $0x1] ss:$0 sm:$0xff] }
0x117f   : > { %v3489_v15 = vmul.f32 %v3485_v36, %v3385_v28 }
0x1181   : > { %7117 = vmatprep.mubr.msk.f32.mxu1 %vm3506_vm11, %v3489_v15  ;;  %v6594_v15 = vld [vmem:[#allocation8 + $0x1] ss:$0 sm:$0xff] }
0x1182   : > { %7118 = vmatmul.mubr.msk.f32.gmra.mxu1 %vm3506_vm11, %v3490_v29 }
0x1233   : > { %v7116_v53 = vpop.f32.mrf.mxu1 }
0x1234   : > { %v3591_v30 = vadd.f32 %v7116_v53, %v6587_v27 }
0x1235   : > { %v3585_v31 = vpop.f32.mrf.mxu1 }
0x1236   : > { %v8960_v14 = vadd.f32 %v3591_v30, %v8861_v19  ;;  %v3586_v57 = vadd.f32 %v6587_v27, %v3585_v31 }
0x1238   : > { %v8963_v44 = vadd.f32 %v3586_v57, %v8864_v20  ;;  %v3615_v54 = vsel %vm1086_vm2, %v8960_v14, 0.0 }
0x1239   : > { %3616 = vadd.xlane.f32.xlu1 %v3615_v54 }
0x123a   : > { %v3612_v46 = vsel %vm1086_vm2, %v8963_v44, 0.0 }
0x123b   : > { %3613 = vadd.xlane.f32.xlu0 %v3612_v46 }
0x1242   : > { %v7119_v35 = vpop.f32.mrf.mxu1 }
0x1243   : > { %v3601_v38 = vadd.f32 %v7119_v35, %v6587_v27 }
0x1244   : > { %v3595_v40 = vpop.f32.mrf.mxu1 }
0x1245   : > { %v8970_v41 = vadd.f32 %v3601_v38, %v8874_v39  ;;  %v3596_v19 = vadd.f32 %v6587_v27, %v3595_v40 }
0x1247   : > { %v8973_v42 = vadd.f32 %v3596_v19, %v8871_v52  ;;  %v3621_v20 = vsel %vm1086_vm2, %v8970_v41, 0.0  ;;  %v6599_v19 = vld [vmem:[#allocation10 + $0x1] ss:$0 sm:$0xff] }
0x1248   : > { %3622 = vadd.xlane.f32.xlu1 %v3621_v20 }
0x1249   : > { %v3618_v43 = vsel %vm1086_vm2, %v8973_v42, 0.0 }
0x124a   : > { %3619 = vadd.xlane.f32.xlu0 %v3618_v43 }
0x12c2   : > { %v3617_v45 = vpop.xlane.xlu1 %3616 }
0x12c3   : > { %v3625_v55 = vmul.f32 0.03125, %v3617_v45 }
0x12c4   : > { %v3614_v58 = vpop.xlane.xlu0 %3613 }
0x12c5   : > { %v3629_v59 = vsub.f32 %v8960_v14, %v3625_v55  ;;  %v3624_v26 = vmul.f32 0.03125, %v3614_v58 }
0x12c7   : > { %v3628_v39 = vsub.f32 %v8963_v44, %v3624_v26  ;;  %v3633_v50 = vmul.f32 %v3629_v59, %v3629_v59 }
0x12c9   : > { %v3639_v52 = vsel %vm1086_vm2, %v3633_v50, 0.0  ;;  %v3632_v33 = vmul.f32 %v3628_v39, %v3628_v39 }
0x12ca   : > { %3640 = vadd.xlane.f32.xlu1 %v3639_v52 }
0x12cb   : > { %v3636_v60 = vsel %vm1086_vm2, %v3632_v33, 0.0 }
0x12cc   : > { %3637 = vadd.xlane.f32.xlu0 %v3636_v60 }
0x12d1   : > { %v3623_v51 = vpop.xlane.xlu1 %3622 }
0x12d2   : > { %v3627_v61 = vmul.f32 0.03125, %v3623_v51 }
0x12d3   : > { %v3620_v62 = vpop.xlane.xlu0 %3619 }
0x12d4   : > { %v3631_v63 = vsub.f32 %v8970_v41, %v3627_v61  ;;  %v3626_v0 = vmul.f32 0.03125, %v3620_v62 }
0x12d6   : > { %v3630_v1 = vsub.f32 %v8973_v42, %v3626_v0  ;;  %v3635_v9 = vmul.f32 %v3631_v63, %v3631_v63 }
0x12d8   : > { %v3645_v2 = vsel %vm1086_vm2, %v3635_v9, 0.0  ;;  %v3634_v3 = vmul.f32 %v3630_v1, %v3630_v1 }
0x12d9   : > { %3646 = vadd.xlane.f32.xlu1 %v3645_v2 }
0x12da   : > { %v3642_v37 = vsel %vm1086_vm2, %v3634_v3, 0.0 }
0x12db   : > { %3643 = vadd.xlane.f32.xlu0 %v3642_v37 }
0x1353   : > { %v3641_v7 = vpop.xlane.xlu1 %3640 }
0x1354   : > { %v3649_v12 = vmul.f32 0.03125, %v3641_v7 }
0x1355   : > { %v3638_v13 = vpop.xlane.xlu0 %3637 }
0x1356   : > { %v3653_v16 = vadd.f32 1e-05, %v3649_v12  ;;  %v3648_v34 = vmul.f32 0.03125, %v3638_v13 }
0x1358   : > { %7586 = vrsqrt.f32 %v3653_v16  ;;  %v3652_v17 = vadd.f32 1e-05, %v3648_v34 }
0x135a   : > { %7588 = vrsqrt.f32 %v3652_v17 }
0x1362   : > { %v3647_v11 = vpop.xlane.xlu1 %3646 }
0x1363   : > { %v3651_v18 = vmul.f32 0.03125, %v3647_v11 }
0x1364   : > { %v3644_v32 = vpop.xlane.xlu0 %3643 }
0x1365   : > { %v7587_v10 = vpop.eup %7586  ;;  %v3655_v21 = vadd.f32 1e-05, %v3651_v18  ;;  %v3650_v24 = vmul.f32 0.03125, %v3644_v32 }
0x1366   : > { %v3661_v25 = vmul.f32 %v7587_v10, %v3629_v59 }
0x1367   : > { %v7589_v47 = vpop.eup %7588  ;;  %7590 = vrsqrt.f32 %v3655_v21  ;;  %v3654_v28 = vadd.f32 1e-05, %v3650_v24 }
0x1368   : > { %v3660_v36 = vmul.f32 %v7589_v47, %v3628_v39  ;;  %v3671_v56 = vmul.f32 %v6593_v49, %v3661_v25 }
0x1369   : > { %7592 = vrsqrt.f32 %v3654_v28 }
0x136a   : > { %v3670_v29 = vmul.f32 %v6593_v49, %v3660_v36  ;;  %v3681_v53 = vadd.f32 %v6594_v15, %v3671_v56 }
0x136c   : > { %v3680_v27 = vadd.f32 %v6594_v15, %v3670_v29 }
0x136e   : > { %7128 = vmatprep.mubr.msk.f32.mxu0 %vm1086_vm2, %v3680_v27 }
0x136f   : > { %7129 = vmatmul.mubr.msk.f32.vlgmr.msra.gmra.mxu0 %vm1086_vm2, %v3681_v53 }
0x1374   : > { %v7591_v30 = vpop.eup %7590 }
0x1375   : > { %v3663_v31 = vmul.f32 %v7591_v30, %v3631_v63 }
0x1376   : > { %v7593_v57 = vpop.eup %7592 }
0x1377   : > { %v3662_v54 = vmul.f32 %v7593_v57, %v3630_v1  ;;  %v3673_v46 = vmul.f32 %v6593_v49, %v3663_v31 }
0x1379   : > { %v3672_v35 = vmul.f32 %v6593_v49, %v3662_v54  ;;  %v3683_v40 = vadd.f32 %v6594_v15, %v3673_v46 }
0x137b   : > { %v3682_v38 = vadd.f32 %v6594_v15, %v3672_v35 }
0x137d   : > { %7131 = vmatprep.mubr.msk.f32.mxu0 %vm1086_vm2, %v3682_v38 }
0x137e   : > { %7132 = vmatmul.mubr.msk.f32.gmra.mxu0 %vm1086_vm2, %v3683_v40 }
0x142f   : > { %v7130_v20 = vpop.f32.mrf.mxu0 }
0x1430   : > { %v9006_v43 = vadd.f32 %v7130_v20, %v6599_v19 }
0x1431   : > { %v3775_v45 = vpop.f32.mrf.mxu0 }
0x1432   : > { %v9008_v55 = vadd.f32 %v6599_v19, %v3775_v45  ;;  %3798 = vrot.lane.b32.xlu0 %v9006_v43, %s9619_s25 }
0x1434   : > { %3796 = vrot.lane.b32.xlu1 %v9008_v55, %s9619_s25  ;;  %7138 = vmatprep.mubr.msk.f32.mxu0 %vm1400_vm6, %v9008_v55 }
0x143e   : > { %v7133_v58 = vpop.f32.mrf.mxu0 }
0x143f   : > { %v9016_v59 = vadd.f32 %v7133_v58, %v6599_v19 }
0x1440   : > { %v3785_v26 = vpop.f32.mrf.mxu0 }
0x1441   : > { %v9018_v39 = vadd.f32 %v6599_v19, %v3785_v26  ;;  %3887 = vrot.lane.b32.xlu1 %v9016_v59, %s9619_s25 }
0x1443   : > { %7145 = vmatprep.mubr.msk.f32.mxu1 %vm1400_vm6, %v9018_v39 }
0x1445   : > { %3885 = vrot.lane.b32.xlu1 %v9018_v39, %s9619_s25  ;;  %s9627_s25 = smov 72  }
0x14a4   : > { %v3799_v50 = vpop.permute.xlu0 %3798 }
0x14a5   : > { %7134 = vmatprep.subr.msk.mxu0 %vm1400_vm6, %v3799_v50 }
0x14a6   : > { %v3797_v52 = vpop.permute.xlu1 %3796  ;;  %7135 = vmatpush3.xpose.msk.msra.mxu0 %vm1400_vm6, %v3799_v50 }
0x14a7   : > { %7136 = vmatprep.subr.msk.mxu0 %vm1400_vm6, %v3797_v52 }
0x14aa   : > { %7137 = vmatpush3.xpose.msk.msra.mxu0 %vm1400_vm6, %v3797_v52 }
0x14ad   : > { %7139 = vmatmul.mubr.msk.f32.vlgmr.msra.gmra.mxu0 %vm1400_vm6, %v9006_v43 }
0x14b3   : > { %v3888_v33 = vpop.permute.xlu1 %3887 }
0x14b4   : > { %7141 = vmatprep.subr.msk.mxu1 %vm1400_vm6, %v3888_v33 }
0x14b5   : > { %7142 = vmatpush3.xpose.msk.msra.mxu1 %vm1400_vm6, %v3888_v33 }
0x14b7   : > { %v3886_v60 = vpop.permute.xlu1 %3885 }
0x14b8   : > { %7143 = vmatprep.subr.msk.mxu1 %vm1400_vm6, %v3886_v60 }
0x14b9   : > { %7144 = vmatpush3.xpose.msk.msra.mxu1 %vm1400_vm6, %v3886_v60 }
0x14bc   : > { %7146 = vmatmul.mubr.msk.f32.vlgmr.msra.gmra.mxu1 %vm1400_vm6, %v9016_v59 }
0x156d   : > { %v7140_v51 = vpop.f32.mrf.mxu0 }
0x156e   : > { %v3973_v61 = vmul.f32 0.35355338, %v7140_v51 }
0x156f   : > { %v3874_v62 = vpop.f32.mrf.mxu0 }
0x1570   : > { %v3977_v63 = vsel %vm8504_vm4, %v3973_v61, -1e+30  ;;  %v3972_v0 = vmul.f32 0.35355338, %v3874_v62 }
0x1571   : > { %v3983_v1 = vsel %vm1585_vm7, %v3977_v63, -inf }
0x1572   : > { %v3976_v9 = vsel %vm8500_vm3, %v3972_v0, -1e+30  ;;  %3984 = vmax.xlane.f32.xlu1 %v3983_v1 }
0x1573   : > { %v3980_v2 = vsel %vm1585_vm7, %v3976_v9, -inf }
0x1574   : > { %3981 = vmax.xlane.f32.xlu0 %v3980_v2 }
0x157c   : > { %v7147_v3 = vpop.f32.mrf.mxu1 }
0x157d   : > { %v3975_v4 = vmul.f32 0.35355338, %v7147_v3 }
0x157e   : > { %v3963_v37 = vpop.f32.mrf.mxu1 }
0x157f   : > { %v3974_v8 = vmul.f32 0.35355338, %v3963_v37  ;;  %v3979_v7 = vsel %vm8504_vm4, %v3975_v4, -1e+30 }
0x1580   : > { %v3989_v12 = vsel %vm1585_vm7, %v3979_v7, -inf }
0x1581   : > { %v3978_v5 = vsel %vm8500_vm3, %v3974_v8, -1e+30 }
0x1582   : > { %v3986_v6 = vsel %vm1585_vm7, %v3978_v5, -inf }
0x1583   : > { %3987 = vmax.xlane.f32.xlu0 %v3986_v6 }
0x1587   : > { %3990 = vmax.xlane.f32.xlu0 %v3989_v12 }
0x15fb   : > { %v3985_v13 = vpop.xlane.xlu1 %3984 }
0x15fc   : > { %v3993_v16 = vsub.f32 %v3977_v63, %v3985_v13 }
0x15fd   : > { %v3982_v34 = vpop.xlane.xlu0 %3981 }
0x15fe   : > { %v3998_v17 = vmul.f32 1.442695, %v3993_v16  ;;  %v3992_v11 = vsub.f32 %v3976_v9, %v3982_v34 }
0x1600   : > { %7594 = vpow2.f32 %v3998_v17  ;;  %v3996_v18 = vmul.f32 1.442695, %v3992_v11 }
0x1602   : > { %7596 = vpow2.f32 %v3996_v18 }
0x160c   : > { %v3988_v25 = vpop.xlane.xlu0 %3987 }
0x160d   : > { %v7595_v32 = vpop.eup %7594  ;;  %v3994_v49 = vsub.f32 %v3978_v5, %v3988_v25 }
0x160e   : > { %v4007_v10 = vsel %vm1585_vm7, %v7595_v32, 0.0 }
0x160f   : > { %v7597_v21 = vpop.eup %7596  ;;  %4008 = vadd.xlane.f32.xlu1 %v4007_v10  ;;  %v4000_v28 = vmul.f32 1.442695, %v3994_v49 }
0x1610   : > { %v4004_v24 = vsel %vm1585_vm7, %v7597_v21, 0.0  ;;  %v3991_v47 = vpop.xlane.xlu0 %3990 }
0x1611   : > { %4005 = vadd.xlane.f32.xlu0 %v4004_v24  ;;  %v3995_v36 = vsub.f32 %v3979_v7, %v3991_v47  ;;  %7598 = vpow2.f32 %v4000_v28 }
0x1613   : > { %v4002_v56 = vmul.f32 1.442695, %v3995_v36 }
0x1615   : > { %7600 = vpow2.f32 %v4002_v56 }
0x161e   : > { %v7599_v15 = vpop.eup %7598 }
0x161f   : > { %v4010_v29 = vsel %vm1585_vm7, %v7599_v15, 0.0 }
0x1620   : > { %4024 = vrot.lane.b32.xlu1 %v9008_v55, %s9620_s0 }
0x1622   : > { %v7601_v27 = vpop.eup %7600 }
0x1623   : > { %v4013_v53 = vsel %vm1585_vm7, %v7601_v27, 0.0 }
0x1624   : > { %4113 = vrot.lane.b32.xlu1 %v9016_v59, %s9620_s0 }
0x1627   : > { %4026 = vrot.lane.b32.xlu0 %v9006_v43, %s9620_s0 }
0x1628   : > { %4204 = vrot.lane.b32.xlu1 %v9006_v43, %s9621_s6 }
0x162b   : > { %4111 = vrot.lane.b32.xlu0 %v9018_v39, %s9620_s0  ;;  %s9628_s0 = smov 104  }
0x162c   : > { %4202 = vrot.lane.b32.xlu1 %v9008_v55, %s9621_s6 }
0x162f   : > { %4295 = vrot.lane.b32.xlu0 %v9016_v59, %s9621_s6 }
0x1630   : > { %4198 = vrot.lane.b32.xlu1 %v9008_v55, %s9622_s30 }
0x164e   : > { %4011 = vadd.xlane.f32.xlu0 %v4010_v29 }
0x1654   : > { %4014 = vadd.xlane.f32.xlu1 %v4013_v53 }
0x1664   : > { %4200 = vrot.lane.b32.xlu0 %v9006_v43, %s9622_s30 }
0x1665   : > { %4293 = vrot.lane.b32.xlu1 %v9018_v39, %s9621_s6  ;;  %s9629_s6 = smov 40  }
0x1668   : > { %4289 = vrot.lane.b32.xlu0 %v9018_v39, %s9622_s30 }
0x1669   : > { %4291 = vrot.lane.b32.xlu1 %v9016_v59, %s9622_s30  ;;  %s9630_s30 = smov 24  }
0x1698   : > { %v4009_v30 = vpop.xlane.xlu1 %4008 }
0x1699   : > { %7602 = vrcp.f32 %v4009_v30 }
0x169a   : > { %v4006_v31 = vpop.xlane.xlu0 %4005 }
0x169b   : > { %7604 = vrcp.f32 %v4006_v31 }
0x169c   : > { %v4025_v57 = vpop.permute.xlu1 %4024 }
0x169e   : > { %v4027_v54 = vpop.permute.xlu0 %4026 }
0x169f   : > { %7148 = vmatprep.subr.mxu0 %v4027_v54 }
0x16a0   : > { %v4114_v46 = vpop.permute.xlu1 %4113  ;;  %7149 = vmatpush3.msra.mxu0 %v4027_v54 }
0x16a1   : > { %7150 = vmatprep.subr.mxu0 %v4025_v57 }
0x16a2   : > { %7151 = vmatpush3.msra.mxu0 %v4025_v57  ;;  %v4112_v20 = vpop.permute.xlu0 %4111 }
0x16a3   : > { %7155 = vmatprep.subr.mxu0 %v4114_v46 }
0x16a4   : > { %v4205_v35 = vpop.permute.xlu1 %4204 }
0x16a5   : > { %7162 = vmatprep.subr.msk.mxu1 %vm1400_vm6, %v4205_v35 }
0x16a6   : > { %7163 = vmatpush3.xpose.msk.msra.mxu1 %vm1400_vm6, %v4205_v35  ;;  %v7603_v38 = vpop.eup %7602  ;;  %v4296_v50 = vpop.permute.xlu0 %4295 }
0x16a7   : > { %v4021_v58 = vmul.f32 %v7603_v38, %v7595_v32 }
0x16a8   : > { %v7605_v40 = vpop.eup %7604  ;;  %v4203_v19 = vpop.permute.xlu1 %4202 }
0x16a9   : > { %7164 = vmatprep.subr.msk.mxu1 %vm1400_vm6, %v4203_v19  ;;  %v4020_v45 = vmul.f32 %v7605_v40, %v7597_v21 }
0x16aa   : > { %7165 = vmatpush3.xpose.msk.msra.mxu1 %vm1400_vm6, %v4203_v19 }
0x16ab   : > { %7152 = vmatprep.mubr.msk.f32.mxu0 %vm1585_vm7, %v4020_v45 }
0x16ac   : > { %v4199_v26 = vpop.permute.xlu1 %4198  ;;  %7153 = vmatmul.mubr.msk.f32.vlgmr.msra.gmra.mxu0 %vm1585_vm7, %v4021_v58 }
0x16ad   : > { %7156 = vmatpush3.msra.mxu0 %v4114_v46  ;;  %7166 = vmatprep.mubr.msk.f32.mxu1 %vm1400_vm6, %v4199_v26 }
0x16ae   : > { %7157 = vmatprep.subr.mxu0 %v4112_v20 }
0x16af   : > { %7158 = vmatpush3.msra.mxu0 %v4112_v20 }
0x16b0   : > { %7169 = vmatprep.subr.msk.mxu0 %vm1400_vm6, %v4296_v50 }
0x16d7   : > { %v4012_v52 = vpop.xlane.xlu0 %4011 }
0x16d8   : > { %7606 = vrcp.f32 %v4012_v52 }
0x16db   : > { %v4201_v33 = vpop.permute.xlu0 %4200 }
0x16dc   : > { %7167 = vmatmul.mubr.msk.f32.vlgmr.msra.gmra.mxu1 %vm1400_vm6, %v4201_v33 }
0x16dd   : > { %v4015_v60 = vpop.xlane.xlu1 %4014 }
0x16de   : > { %7608 = vrcp.f32 %v4015_v60 }
0x16df   : > { %v4290_v0 = vpop.permute.xlu0 %4289 }
0x16e1   : > { %v4294_v1 = vpop.permute.xlu1 %4293 }
0x16e5   : > { %v7607_v51 = vpop.eup %7606  ;;  %v4292_v9 = vpop.permute.xlu1 %4291 }
0x16e6   : > { %v4022_v61 = vmul.f32 %v7607_v51, %v7599_v15 }
0x16e8   : > { %7159 = vmatprep.mubr.msk.f32.mxu0 %vm1585_vm7, %v4022_v61 }
0x16eb   : > { %v7609_v62 = vpop.eup %7608 }
0x16ec   : > { %v4023_v63 = vmul.f32 %v7609_v62, %v7601_v27 }
0x16ee   : > { %7160 = vmatmul.mubr.msk.f32.vlgmr.msra.gmra.mxu0 %vm1585_vm7, %v4023_v63 }
0x16ef   : > { %7170 = vmatpush3.xpose.msk.msra.mxu0 %vm1400_vm6, %v4296_v50  ;;  %7173 = vmatprep.mubr.msk.f32.mxu0 %vm1400_vm6, %v4290_v0 }
0x16f0   : > { %7171 = vmatprep.subr.msk.mxu0 %vm1400_vm6, %v4294_v1 }
0x16f3   : > { %7172 = vmatpush3.xpose.msk.msra.mxu0 %vm1400_vm6, %v4294_v1 }
0x16f6   : > { %7174 = vmatmul.mubr.msk.f32.vlgmr.msra.gmra.mxu0 %vm1400_vm6, %v4292_v9 }
0x176c   : > { %v9100_v12 = vpop.f32.mrf.mxu0 }
0x176e   : > { %v9102_v13 = vpop.f32.mrf.mxu0 }
0x179c   : > { %v7168_v2 = vpop.f32.mrf.mxu1 }
0x179d   : > { %v4381_v3 = vmul.f32 0.35355338, %v7168_v2 }
0x179e   : > { %v4280_v37 = vpop.f32.mrf.mxu1 }
0x179f   : > { %v4385_v4 = vsel %vm8504_vm4, %v4381_v3, -1e+30  ;;  %v4380_v8 = vmul.f32 0.35355338, %v4280_v37 }
0x17a0   : > { %v4391_v5 = vsel %vm1585_vm7, %v4385_v4, -inf }
0x17a1   : > { %v4384_v6 = vsel %vm8500_vm3, %v4380_v8, -1e+30  ;;  %4392 = vmax.xlane.f32.xlu1 %v4391_v5 }
0x17a2   : > { %v4388_v7 = vsel %vm1585_vm7, %v4384_v6, -inf }
0x17a3   : > { %4389 = vmax.xlane.f32.xlu0 %v4388_v7 }
0x17ae   : > { %v9104_v16 = vpop.f32.mrf.mxu0 }
0x17b0   : > { %v9106_v34 = vpop.f32.mrf.mxu0 }
0x17b6   : > { %v7175_v17 = vpop.f32.mrf.mxu0 }
0x17b7   : > { %v4383_v18 = vmul.f32 0.35355338, %v7175_v17 }
0x17b8   : > { %v4371_v11 = vpop.f32.mrf.mxu0 }
0x17b9   : > { %v4382_v32 = vmul.f32 0.35355338, %v4371_v11  ;;  %v4387_v24 = vsel %vm8504_vm4, %v4383_v18, -1e+30 }
0x17ba   : > { %v4397_v25 = vsel %vm1585_vm7, %v4387_v24, -inf }
0x17bb   : > { %v4386_v10 = vsel %vm8500_vm3, %v4382_v32, -1e+30 }
0x17bc   : > { %v4394_v21 = vsel %vm1585_vm7, %v4386_v10, -inf }
0x17bd   : > { %4395 = vmax.xlane.f32.xlu0 %v4394_v21 }
0x17c1   : > { %4398 = vmax.xlane.f32.xlu0 %v4397_v25 }
0x182a   : > { %v4393_v49 = vpop.xlane.xlu1 %4392 }
0x182b   : > { %v4401_v47 = vsub.f32 %v4385_v4, %v4393_v49 }
0x182c   : > { %v4390_v28 = vpop.xlane.xlu0 %4389 }
0x182d   : > { %v4406_v36 = vmul.f32 1.442695, %v4401_v47  ;;  %v4400_v56 = vsub.f32 %v4384_v6, %v4390_v28 }
0x182f   : > { %7610 = vpow2.f32 %v4406_v36  ;;  %v4404_v15 = vmul.f32 1.442695, %v4400_v56 }
0x1831   : > { %7612 = vpow2.f32 %v4404_v15 }
0x183c   : > { %v7611_v29 = vpop.eup %7610 }
0x183d   : > { %v4415_v27 = vsel %vm1585_vm7, %v7611_v29, 0.0 }
0x183e   : > { %v7613_v53 = vpop.eup %7612  ;;  %4416 = vadd.xlane.f32.xlu1 %v4415_v27 }
0x183f   : > { %v4412_v30 = vsel %vm1585_vm7, %v7613_v53, 0.0 }
0x1840   : > { %4413 = vadd.xlane.f32.xlu0 %v4412_v30 }
0x1846   : > { %v4396_v31 = vpop.xlane.xlu0 %4395 }
0x1847   : > { %v4402_v57 = vsub.f32 %v4386_v10, %v4396_v31 }
0x1849   : > { %v4408_v46 = vmul.f32 1.442695, %v4402_v57 }
0x184a   : > { %v4399_v54 = vpop.xlane.xlu0 %4398 }
0x184b   : > { %v4403_v35 = vsub.f32 %v4387_v24, %v4399_v54  ;;  %7614 = vpow2.f32 %v4408_v46 }
0x184d   : > { %v4410_v38 = vmul.f32 1.442695, %v4403_v35 }
0x184f   : > { %4432 = vrot.lane.b32.xlu1 %v9008_v55, %s9623_s26  ;;  %7616 = vpow2.f32 %v4410_v38 }
0x1853   : > { %4521 = vrot.lane.b32.xlu1 %v9016_v59, %s9623_s26 }
0x1856   : > { %4434 = vrot.lane.b32.xlu0 %v9006_v43, %s9623_s26 }
0x1857   : > { %4612 = vrot.lane.b32.xlu1 %v9006_v43, %s9624_s9 }
0x1858   : > { %v7615_v40 = vpop.eup %7614 }
0x1859   : > { %v4418_v19 = vsel %vm1585_vm7, %v7615_v40, 0.0 }
0x185a   : > { %4519 = vrot.lane.b32.xlu0 %v9018_v39, %s9623_s26 }
0x185b   : > { %4610 = vrot.lane.b32.xlu1 %v9008_v55, %s9624_s9 }
0x185c   : > { %v7617_v20 = vpop.eup %7616 }
0x185d   : > { %v4421_v45 = vsel %vm1585_vm7, %v7617_v20, 0.0 }
0x185e   : > { %4703 = vrot.lane.b32.xlu0 %v9016_v59, %s9624_s9 }
0x185f   : > { %4606 = vrot.lane.b32.xlu1 %v9008_v55, %s9625_s8 }
0x187d   : > { %4419 = vadd.xlane.f32.xlu0 %v4418_v19 }
0x1883   : > { %4422 = vadd.xlane.f32.xlu1 %v4421_v45 }
0x1893   : > { %4608 = vrot.lane.b32.xlu0 %v9006_v43, %s9625_s8 }
0x1894   : > { %4701 = vrot.lane.b32.xlu1 %v9018_v39, %s9624_s9  ;;  %s9631_s9 = sld [smem:[#allocation36_spill]] }
0x1897   : > { %4697 = vrot.lane.b32.xlu0 %v9018_v39, %s9625_s8 }
0x1898   : > { %4699 = vrot.lane.b32.xlu1 %v9016_v59, %s9625_s8 }
0x189a   : > { %p9634_p10 = scmp.ne.s32.totalorder %s9631_s9, 0 }
0x18c7   : > { %v4417_v58 = vpop.xlane.xlu1 %4416 }
0x18c8   : > { %7618 = vrcp.f32 %v4417_v58 }
0x18c9   : > { %v4414_v26 = vpop.xlane.xlu0 %4413 }
0x18ca   : > { %7620 = vrcp.f32 %v4414_v26 }
0x18cb   : > { %v4433_v50 = vpop.permute.xlu1 %4432 }
0x18cd   : > { %v4435_v52 = vpop.permute.xlu0 %4434 }
0x18ce   : > { %7176 = vmatprep.subr.mxu1 %v4435_v52 }
0x18cf   : > { %v4522_v33 = vpop.permute.xlu1 %4521  ;;  %7177 = vmatpush3.msra.mxu1 %v4435_v52 }
0x18d0   : > { %7178 = vmatprep.subr.mxu1 %v4433_v50  ;;  %7183 = vmatprep.subr.mxu0 %v4522_v33 }
0x18d1   : > { %7179 = vmatpush3.msra.mxu1 %v4433_v50  ;;  %7184 = vmatpush3.msra.mxu0 %v4522_v33  ;;  %v4520_v60 = vpop.permute.xlu0 %4519 }
0x18d2   : > { %7185 = vmatprep.subr.mxu0 %v4520_v60 }
0x18d3   : > { %v4613_v51 = vpop.permute.xlu1 %4612  ;;  %7186 = vmatpush3.msra.mxu0 %v4520_v60 }
0x18d4   : > { %7190 = vmatprep.subr.msk.mxu1 %vm1400_vm6, %v4613_v51 }
0x18d5   : > { %v4704_v61 = vpop.permute.xlu0 %4703  ;;  %v7619_v62 = vpop.eup %7618 }
0x18d6   : > { %7197 = vmatprep.subr.msk.mxu0 %vm1400_vm6, %v4704_v61  ;;  %v4429_v9 = vmul.f32 %v7619_v62, %v7611_v29 }
0x18d7   : > { %v7621_v63 = vpop.eup %7620  ;;  %v4611_v0 = vpop.permute.xlu1 %4610 }
0x18d8   : > { %v4428_v1 = vmul.f32 %v7621_v63, %v7613_v53 }
0x18da   : > { %7180 = vmatprep.mubr.msk.f32.mxu1 %vm1585_vm7, %v4428_v1 }
0x18db   : > { %v4607_v2 = vpop.permute.xlu1 %4606  ;;  %7181 = vmatmul.mubr.msk.f32.vlgmr.msra.gmra.mxu1 %vm1585_vm7, %v4429_v9 }
0x18dc   : > { %7191 = vmatpush3.xpose.msk.msra.mxu1 %vm1400_vm6, %v4613_v51  ;;  %7194 = vmatprep.mubr.msk.f32.mxu1 %vm1400_vm6, %v4607_v2 }
0x18dd   : > { %7192 = vmatprep.subr.msk.mxu1 %vm1400_vm6, %v4611_v0 }
0x18e0   : > { %7193 = vmatpush3.xpose.msk.msra.mxu1 %vm1400_vm6, %v4611_v0 }
0x1906   : > { %v4420_v3 = vpop.xlane.xlu0 %4419 }
0x1907   : > { %7622 = vrcp.f32 %v4420_v3 }
0x190a   : > { %v4609_v37 = vpop.permute.xlu0 %4608 }
0x190b   : > { %7195 = vmatmul.mubr.msk.f32.vlgmr.msra.gmra.mxu1 %vm1400_vm6, %v4609_v37 }
0x190c   : > { %v4423_v4 = vpop.xlane.xlu1 %4422 }
0x190d   : > { %7624 = vrcp.f32 %v4423_v4 }
0x190e   : > { %v4698_v17 = vpop.permute.xlu0 %4697 }
0x1910   : > { %v4702_v11 = vpop.permute.xlu1 %4701 }
0x1914   : > { %v7623_v8 = vpop.eup %7622  ;;  %v4700_v18 = vpop.permute.xlu1 %4699 }
0x1915   : > { %v4430_v5 = vmul.f32 %v7623_v8, %v7615_v40 }
0x1917   : > { %7187 = vmatprep.mubr.msk.f32.mxu0 %vm1585_vm7, %v4430_v5 }
0x191a   : > { %v7625_v6 = vpop.eup %7624 }
0x191b   : > { %v4431_v7 = vmul.f32 %v7625_v6, %v7617_v20 }
0x191d   : > { %7188 = vmatmul.mubr.msk.f32.vlgmr.msra.gmra.mxu0 %vm1585_vm7, %v4431_v7 }
0x191e   : > { %7198 = vmatpush3.xpose.msk.msra.mxu0 %vm1400_vm6, %v4704_v61  ;;  %7201 = vmatprep.mubr.msk.f32.mxu0 %vm1400_vm6, %v4698_v17 }
0x191f   : > { %7199 = vmatprep.subr.msk.mxu0 %vm1400_vm6, %v4702_v11 }
0x1922   : > { %7200 = vmatpush3.xpose.msk.msra.mxu0 %vm1400_vm6, %v4702_v11 }
0x1925   : > { %7202 = vmatmul.mubr.msk.f32.vlgmr.msra.gmra.mxu0 %vm1400_vm6, %v4700_v18 }
0x199b   : > { %v9158_v32 = vpop.f32.mrf.mxu1 }
0x199d   : > { %v9160_v10 = vpop.f32.mrf.mxu1 }
0x19cb   : > { %v7196_v21 = vpop.f32.mrf.mxu1 }
0x19cc   : > { %v4789_v24 = vmul.f32 0.35355338, %v7196_v21 }
0x19cd   : > { %v4688_v25 = vpop.f32.mrf.mxu1 }
0x19ce   : > { %v4793_v49 = vsel %vm8504_vm4, %v4789_v24, -1e+30  ;;  %v4788_v47 = vmul.f32 0.35355338, %v4688_v25 }
0x19cf   : > { %v4799_v28 = vsel %vm1585_vm7, %v4793_v49, -inf }
0x19d0   : > { %v4792_v36 = vsel %vm8500_vm3, %v4788_v47, -1e+30  ;;  %4800 = vmax.xlane.f32.xlu1 %v4799_v28 }
0x19d1   : > { %v4796_v56 = vsel %vm1585_vm7, %v4792_v36, -inf }
0x19d2   : > { %4797 = vmax.xlane.f32.xlu0 %v4796_v56 }
0x19dd   : > { %v9168_v15 = vpop.f32.mrf.mxu0 }
0x19df   : > { %v9170_v29 = vpop.f32.mrf.mxu0 }
0x19e5   : > { %v7203_v27 = vpop.f32.mrf.mxu0 }
0x19e6   : > { %v4791_v30 = vmul.f32 0.35355338, %v7203_v27 }
0x19e7   : > { %v4779_v53 = vpop.f32.mrf.mxu0 }
0x19e8   : > { %v4790_v31 = vmul.f32 0.35355338, %v4779_v53  ;;  %v4795_v46 = vsel %vm8504_vm4, %v4791_v30, -1e+30 }
0x19e9   : > { %v4805_v35 = vsel %vm1585_vm7, %v4795_v46, -inf }
0x19ea   : > { %v4794_v57 = vsel %vm8500_vm3, %v4790_v31, -1e+30 }
0x19eb   : > { %v4802_v54 = vsel %vm1585_vm7, %v4794_v57, -inf }
0x19ec   : > { %4803 = vmax.xlane.f32.xlu0 %v4802_v54 }
0x19f0   : > { %4806 = vmax.xlane.f32.xlu0 %v4805_v35 }
0x1a59   : > { %v4801_v38 = vpop.xlane.xlu1 %4800 }
0x1a5a   : > { %v4809_v40 = vsub.f32 %v4793_v49, %v4801_v38 }
0x1a5b   : > { %v4798_v19 = vpop.xlane.xlu0 %4797 }
0x1a5c   : > { %v4814_v20 = vmul.f32 1.442695, %v4809_v40  ;;  %v4808_v45 = vsub.f32 %v4792_v36, %v4798_v19 }
0x1a5e   : > { %7626 = vpow2.f32 %v4814_v20  ;;  %v4812_v58 = vmul.f32 1.442695, %v4808_v45 }
0x1a60   : > { %7628 = vpow2.f32 %v4812_v58 }
0x1a6b   : > { %v7627_v26 = vpop.eup %7626 }
0x1a6c   : > { %v4823_v50 = vsel %vm1585_vm7, %v7627_v26, 0.0 }
0x1a6d   : > { %v7629_v52 = vpop.eup %7628  ;;  %4824 = vadd.xlane.f32.xlu1 %v4823_v50 }
0x1a6e   : > { %v4820_v33 = vsel %vm1585_vm7, %v7629_v52, 0.0 }
0x1a6f   : > { %4821 = vadd.xlane.f32.xlu0 %v4820_v33 }
0x1a75   : > { %v4804_v60 = vpop.xlane.xlu0 %4803 }
0x1a76   : > { %v4810_v51 = vsub.f32 %v4794_v57, %v4804_v60 }
0x1a78   : > { %v4816_v62 = vmul.f32 1.442695, %v4810_v51 }
0x1a79   : > { %v4807_v61 = vpop.xlane.xlu0 %4806 }
0x1a7a   : > { %v4811_v63 = vsub.f32 %v4795_v46, %v4807_v61  ;;  %7630 = vpow2.f32 %v4816_v62 }
0x1a7c   : > { %v4818_v0 = vmul.f32 1.442695, %v4811_v63 }
0x1a7e   : > { %4840 = vrot.lane.b32.xlu1 %v9008_v55, %s9626_s5  ;;  %7632 = vpow2.f32 %v4818_v0 }
0x1a82   : > { %4929 = vrot.lane.b32.xlu1 %v9016_v59, %s9626_s5 }
0x1a85   : > { %4842 = vrot.lane.b32.xlu0 %v9006_v43, %s9626_s5 }
0x1a86   : > { %5020 = vrot.lane.b32.xlu1 %v9006_v43, %s9627_s25 }
0x1a87   : > { %v7631_v1 = vpop.eup %7630 }
0x1a88   : > { %v4826_v9 = vsel %vm1585_vm7, %v7631_v1, 0.0 }
0x1a89   : > { %4927 = vrot.lane.b32.xlu0 %v9018_v39, %s9626_s5  ;;  %s6700_s5 = sshll.u32 %s8284_s7, 9  ;;  %s8131_s7 = smov [#allocation22]  }
0x1a8a   : > { %5018 = vrot.lane.b32.xlu1 %v9008_v55, %s9627_s25  ;;  %s8014_s4 = sshll.u32 %s8131_s7, 4  ;;  %s8015_s4 = int_to_ptr.vmem [resolvable:$false] %s8014_s4 }
0x1a8b   : > { %v7633_v2 = vpop.eup %7632  ;;  %s8016_s10 = scalar_lea.vmem %s8015_s4, 1024 }
0x1a8c   : > { %v4829_v3 = vsel %vm1585_vm7, %v7633_v2, 0.0 }
0x1a8d   : > { %5111 = vrot.lane.b32.xlu0 %v9016_v59, %s9627_s25 }
0x1a8e   : > { %5014 = vrot.lane.b32.xlu1 %v9008_v55, %s9628_s0 }
0x1aac   : > { %4827 = vadd.xlane.f32.xlu0 %v4826_v9 }
0x1ab2   : > { %4830 = vadd.xlane.f32.xlu1 %v4829_v3 }
0x1ac2   : > { %5016 = vrot.lane.b32.xlu0 %v9006_v43, %s9628_s0 }
0x1ac3   : > { %5109 = vrot.lane.b32.xlu1 %v9018_v39, %s9627_s25 }
0x1ac6   : > { %5105 = vrot.lane.b32.xlu0 %v9018_v39, %s9628_s0 }
0x1ac7   : > { %5107 = vrot.lane.b32.xlu1 %v9016_v59, %s9628_s0  ;;  %s943_s0 = sand.u32 1, %s8090_s2  }
0x1ac8   : > { %s9448_s1 = scalar_lea.sflag [#allocation4], %s943_s0 }
0x1af6   : > { %v4825_v37 = vpop.xlane.xlu1 %4824 }
0x1af7   : > { %7634 = vrcp.f32 %v4825_v37 }
0x1af8   : > { %v4822_v4 = vpop.xlane.xlu0 %4821 }
0x1af9   : > { %7636 = vrcp.f32 %v4822_v4 }
0x1afa   : > { %v4841_v8 = vpop.permute.xlu1 %4840 }
0x1afc   : > { %v4843_v5 = vpop.permute.xlu0 %4842 }
0x1afd   : > { %7204 = vmatprep.subr.mxu1 %v4843_v5 }
0x1afe   : > { %v4930_v6 = vpop.permute.xlu1 %4929  ;;  %7205 = vmatpush3.msra.mxu1 %v4843_v5 }
0x1aff   : > { %7206 = vmatprep.subr.mxu1 %v4841_v8  ;;  %7211 = vmatprep.subr.mxu0 %v4930_v6 }
0x1b00   : > { %7207 = vmatpush3.msra.mxu1 %v4841_v8  ;;  %7212 = vmatpush3.msra.mxu0 %v4930_v6  ;;  %v4928_v7 = vpop.permute.xlu0 %4927 }
0x1b01   : > { %7213 = vmatprep.subr.mxu0 %v4928_v7 }
0x1b02   : > { %v5021_v17 = vpop.permute.xlu1 %5020  ;;  %7214 = vmatpush3.msra.mxu0 %v4928_v7 }
0x1b03   : > { %7218 = vmatprep.subr.msk.mxu1 %vm1400_vm6, %v5021_v17 }
0x1b04   : > { %v5112_v11 = vpop.permute.xlu0 %5111  ;;  %v7635_v18 = vpop.eup %7634 }
0x1b05   : > { %7225 = vmatprep.subr.msk.mxu0 %vm1400_vm6, %v5112_v11  ;;  %v4837_v49 = vmul.f32 %v7635_v18, %v7627_v26 }
0x1b06   : > { %v7637_v21 = vpop.eup %7636  ;;  %v5019_v24 = vpop.permute.xlu1 %5018 }
0x1b07   : > { %v4836_v25 = vmul.f32 %v7637_v21, %v7629_v52 }
0x1b09   : > { %7208 = vmatprep.mubr.msk.f32.mxu1 %vm1585_vm7, %v4836_v25 }
0x1b0a   : > { %v5015_v47 = vpop.permute.xlu1 %5014  ;;  %7209 = vmatmul.mubr.msk.f32.vlgmr.msra.gmra.mxu1 %vm1585_vm7, %v4837_v49 }
0x1b0b   : > { %7219 = vmatpush3.xpose.msk.msra.mxu1 %vm1400_vm6, %v5021_v17  ;;  %7222 = vmatprep.mubr.msk.f32.mxu1 %vm1400_vm6, %v5015_v47 }
0x1b0c   : > { %7220 = vmatprep.subr.msk.mxu1 %vm1400_vm6, %v5019_v24 }
0x1b0f   : > { %7221 = vmatpush3.xpose.msk.msra.mxu1 %vm1400_vm6, %v5019_v24 }
0x1b35   : > { %v4828_v28 = vpop.xlane.xlu0 %4827 }
0x1b36   : > { %7638 = vrcp.f32 %v4828_v28 }
0x1b39   : > { %v5017_v36 = vpop.permute.xlu0 %5016 }
0x1b3a   : > { %7223 = vmatmul.mubr.msk.f32.vlgmr.msra.gmra.mxu1 %vm1400_vm6, %v5017_v36 }
0x1b3b   : > { %v4831_v56 = vpop.xlane.xlu1 %4830 }
0x1b3c   : > { %7640 = vrcp.f32 %v4831_v56 }
0x1b3d   : > { %v5106_v57 = vpop.permute.xlu0 %5105 }
0x1b3f   : > { %v5110_v54 = vpop.permute.xlu1 %5109 }
0x1b43   : > { %v7639_v27 = vpop.eup %7638  ;;  %v5108_v46 = vpop.permute.xlu1 %5107 }
0x1b44   : > { %v4838_v53 = vmul.f32 %v7639_v27, %v7631_v1 }
0x1b46   : > { %7215 = vmatprep.mubr.msk.f32.mxu0 %vm1585_vm7, %v4838_v53 }
0x1b49   : > { %v7641_v30 = vpop.eup %7640 }
0x1b4a   : > { %v4839_v31 = vmul.f32 %v7641_v30, %v7633_v2 }
0x1b4c   : > { %7216 = vmatmul.mubr.msk.f32.vlgmr.msra.gmra.mxu0 %vm1585_vm7, %v4839_v31 }
0x1b4d   : > { %7226 = vmatpush3.xpose.msk.msra.mxu0 %vm1400_vm6, %v5112_v11  ;;  %7229 = vmatprep.mubr.msk.f32.mxu0 %vm1400_vm6, %v5106_v57 }
0x1b4e   : > { %7227 = vmatprep.subr.msk.mxu0 %vm1400_vm6, %v5110_v54 }
0x1b51   : > { %7228 = vmatpush3.xpose.msk.msra.mxu0 %vm1400_vm6, %v5110_v54 }
0x1b54   : > { %7230 = vmatmul.mubr.msk.f32.vlgmr.msra.gmra.mxu0 %vm1400_vm6, %v5108_v46 }
0x1bca   : > { %v7210_v35 = vpop.f32.mrf.mxu1 }
0x1bcc   : > { %v4918_v38 = vpop.f32.mrf.mxu1 }
0x1bfa   : > { %v7224_v40 = vpop.f32.mrf.mxu1 }
0x1bfb   : > { %v5197_v19 = vmul.f32 0.35355338, %v7224_v40 }
0x1bfc   : > { %v5096_v20 = vpop.f32.mrf.mxu1 }
0x1bfd   : > { %v5201_v45 = vsel %vm8504_vm4, %v5197_v19, -1e+30  ;;  %v5196_v58 = vmul.f32 0.35355338, %v5096_v20  ;;  %v6655_v19 = vld [vmem:[%s9500_s11 + $0x38] sm:$0xff]  ;;  %v6654_v20 = vld [vmem:[%s9500_s11 + $0x30] sm:$0xff] }
0x1bfe   : > { %v5207_v26 = vsel %vm1585_vm7, %v5201_v45, -inf }
0x1bff   : > { %v5200_v50 = vsel %vm8500_vm3, %v5196_v58, -1e+30  ;;  %5208 = vmax.xlane.f32.xlu1 %v5207_v26  ;;  %v6652_v58 = vld [vmem:[%s9500_s11 + $0x20] sm:$0xff] }
0x1c00   : > { %v5204_v52 = vsel %vm1585_vm7, %v5200_v50, -inf }
0x1c01   : > { %5205 = vmax.xlane.f32.xlu0 %v5204_v52 }
0x1c0c   : > { %v9228_v33 = vpop.f32.mrf.mxu0 }
0x1c0e   : > { %v9230_v60 = vpop.f32.mrf.mxu0 }
0x1c14   : > { %v7231_v51 = vpop.f32.mrf.mxu0 }
0x1c15   : > { %v5199_v62 = vmul.f32 0.35355338, %v7231_v51 }
0x1c16   : > { %v5187_v61 = vpop.f32.mrf.mxu0 }
0x1c17   : > { %v5198_v63 = vmul.f32 0.35355338, %v5187_v61  ;;  %v5203_v9 = vsel %vm8504_vm4, %v5199_v62, -1e+30 }
0x1c18   : > { %v5213_v2 = vsel %vm1585_vm7, %v5203_v9, -inf }
0x1c19   : > { %v5202_v0 = vsel %vm8500_vm3, %v5198_v63, -1e+30 }
0x1c1a   : > { %v5210_v1 = vsel %vm1585_vm7, %v5202_v0, -inf }
0x1c1b   : > { %5211 = vmax.xlane.f32.xlu0 %v5210_v1 }
0x1c1f   : > { %5214 = vmax.xlane.f32.xlu0 %v5213_v2 }
0x1c88   : > { %v5209_v3 = vpop.xlane.xlu1 %5208 }
0x1c89   : > { %v5217_v37 = vsub.f32 %v5201_v45, %v5209_v3  ;;  %v6653_v45 = vld [vmem:[%s9500_s11 + $0x28] sm:$0xff] }
0x1c8a   : > { %v5206_v4 = vpop.xlane.xlu0 %5205 }
0x1c8b   : > { %v5222_v8 = vmul.f32 1.442695, %v5217_v37  ;;  %v5216_v5 = vsub.f32 %v5200_v50, %v5206_v4 }
0x1c8d   : > { %7642 = vpow2.f32 %v5222_v8  ;;  %v5220_v6 = vmul.f32 1.442695, %v5216_v5 }
0x1c8f   : > { %7644 = vpow2.f32 %v5220_v6 }
0x1c9a   : > { %v7643_v7 = vpop.eup %7642 }
0x1c9b   : > { %v5231_v22 = vsel %vm1585_vm7, %v7643_v7, 0.0 }
0x1c9c   : > { %v7645_v17 = vpop.eup %7644  ;;  %5232 = vadd.xlane.f32.xlu1 %v5231_v22 }
0x1c9d   : > { %v5228_v23 = vsel %vm1585_vm7, %v7645_v17, 0.0 }
0x1c9e   : > { %5229 = vadd.xlane.f32.xlu0 %v5228_v23 }
0x1ca4   : > { %v5212_v11 = vpop.xlane.xlu0 %5211 }
0x1ca5   : > { %v5218_v18 = vsub.f32 %v5202_v0, %v5212_v11 }
0x1ca7   : > { %v5224_v21 = vmul.f32 1.442695, %v5218_v18  ;;  %v6656_v18 = vld [vmem:[#allocation11 + $0x1] ss:$0 sm:$0xff] }
0x1ca8   : > { %v5215_v24 = vpop.xlane.xlu0 %5214 }
0x1ca9   : > { %7646 = vpow2.f32 %v5224_v21  ;;  %v5219_v25 = vsub.f32 %v5203_v9, %v5215_v24 }
0x1cab   : > { %v5226_v49 = vmul.f32 1.442695, %v5219_v25 }
0x1cad   : > { %7648 = vpow2.f32 %v5226_v49 }
0x1cb6   : > { %v7647_v47 = vpop.eup %7646 }
0x1cb7   : > { %v5234_v28 = vsel %vm1585_vm7, %v7647_v47, 0.0 }
0x1cb8   : > { %5235 = vadd.xlane.f32.xlu0 %v5234_v28 }
0x1cba   : > { %v7649_v36 = vpop.eup %7648 }
0x1cbb   : > { %v5237_v56 = vsel %vm1585_vm7, %v7649_v36, 0.0 }
0x1cbc   : > { %5238 = vadd.xlane.f32.xlu1 %v5237_v56 }
0x1ccd   : > { %5248 = vrot.lane.b32.xlu1 %v9008_v55, %s9629_s6 }
0x1cce   : > { %5250 = vrot.lane.b32.xlu0 %v9006_v43, %s9629_s6 }
0x1cd1   : > { %5337 = vrot.lane.b32.xlu1 %v9016_v59, %s9629_s6 }
0x1cd2   : > { %5426 = vrot.lane.b32.xlu0 %v9160_v10, %s9559_s27 }
0x1cd5   : > { %5335 = vrot.lane.b32.xlu1 %v9018_v39, %s9629_s6  ;;  %s6502_s6 = sshll.u32 %s943_s0, 5 }
0x1cd6   : > { %5442 = vrot.lane.b32.xlu0 %v4918_v38, %s8128_s29  ;;  %s945_s26 = scalar_lea.vmem [#allocation22], %s6502_s6 }
0x1cd7   : > { %s6283_s8 = sshll.u32 %s945_s26, 4  ;;  %s9441_s8 = int_to_ptr.vmem [resolvable:$true] %s6283_s8 }
0x1cd8   : > { %s8010_s3 = scalar_lea.vmem %s9441_s8, 512  ;;  %p8017_p12 = scmp.lt.s32.totalorder %s9441_s8, %s8015_s4 }
0x1cd9   : > { %5428 = vrot.lane.b32.xlu1 %v9158_v32, %s9559_s27  ;;  %p8011_p4 = scmp.ne.s32.totalorder %s9441_s8, %s8010_s3  ;;  %p8018_p6 = scmp.lt.s32.totalorder %s8016_s10, %s8010_s3 }
0x1cdb   : > { %p8012_p9 = pnand %p8011_p4, %p9634_p10  ;;  %p8019_p7 = por %p8018_p6, %p8017_p12 }
0x1cdd   : > { %5444 = vrot.lane.b32.xlu1 %v7210_v35, %s8128_s29  ;;  %p8013_p5 = pneg %p8012_p9 }
0x1cdf   : > { %p8020_p8 = pnand %p8019_p7, %p8013_p5 }
0x1d25   : > { %v5233_v53 = vpop.xlane.xlu1 %5232 }
0x1d27   : > { %v5230_v55 = vpop.xlane.xlu0 %5229 }
0x1d28   : > { %7650 = vrcp.f32 %v5230_v55 }
0x1d29   : > { %7652 = vrcp.f32 %v5233_v53 }
0x1d35   : > { %v7651_v27 = vpop.eup %7650 }
0x1d36   : > { %v5244_v43 = vmul.f32 %v7651_v27, %v7645_v17  ;;  %v7653_v39 = vpop.eup %7652 }
0x1d37   : > { %v5245_v32 = vmul.f32 %v7653_v39, %v7643_v7 }
0x1d38   : > { %7236 = vmatprep.mubr.msk.f32.mxu1 %vm1585_vm7, %v5244_v43 }
0x1d41   : > { %v5236_v59 = vpop.xlane.xlu0 %5235 }
0x1d42   : > { %7654 = vrcp.f32 %v5236_v59 }
0x1d45   : > { %v5239_v10 = vpop.xlane.xlu1 %5238  ;;  %v5251_v30 = vpop.permute.xlu0 %5250 }
0x1d46   : > { %7656 = vrcp.f32 %v5239_v10  ;;  %7232 = vmatprep.subr.mxu1 %v5251_v30 }
0x1d47   : > { %7233 = vmatpush3.msra.mxu1 %v5251_v30 }
0x1d49   : > { %v5249_v31 = vpop.permute.xlu1 %5248  ;;  %v5427_v62 = vpop.permute.xlu0 %5426 }
0x1d4a   : > { %7234 = vmatprep.subr.mxu1 %v5249_v31 }
0x1d4b   : > { %7235 = vmatpush3.msra.mxu1 %v5249_v31 }
0x1d4c   : > { %7237 = vmatmul.mubr.msk.f32.vlgmr.msra.gmra.mxu1 %vm1585_vm7, %v5245_v32  ;;  %7246 = vmatprep.subr.mxu1 %v6655_v19 }
0x1d4d   : > { %v5338_v57 = vpop.permute.xlu1 %5337  ;;  %7247 = vmatpush3.msra.mxu1 %v6655_v19  ;;  %v5443_v0 = vpop.permute.xlu0 %5442 }
0x1d4e   : > { %7239 = vmatprep.subr.mxu0 %v5338_v57  ;;  %7248 = vmatprep.subr.mxu1 %v6654_v20 }
0x1d4f   : > { %v7655_v54 = vpop.eup %7654  ;;  %7240 = vmatpush3.msra.mxu0 %v5338_v57  ;;  %7249 = vmatpush3.msra.mxu1 %v6654_v20 }
0x1d50   : > { %v5246_v46 = vmul.f32 %v7655_v54, %v7647_v47  ;;  %7250 = vmatprep.subr.mxu1 %v6653_v45 }
0x1d51   : > { %v5336_v35 = vpop.permute.xlu1 %5335  ;;  %7251 = vmatpush3.msra.mxu1 %v6653_v45 }
0x1d52   : > { %7241 = vmatprep.subr.mxu0 %v5336_v35  ;;  %7243 = vmatprep.mubr.msk.f32.mxu0 %vm1585_vm7, %v5246_v46 }
0x1d53   : > { %v7657_v38 = vpop.eup %7656  ;;  %7242 = vmatpush3.msra.mxu0 %v5336_v35  ;;  %7252 = vmatprep.subr.mxu1 %v6652_v58 }
0x1d54   : > { %v5247_v40 = vmul.f32 %v7657_v38, %v7649_v36  ;;  %7253 = vmatpush3.msra.mxu1 %v6652_v58 }
0x1d55   : > { %v5429_v61 = vpop.permute.xlu1 %5428 }
0x1d56   : > { %7244 = vmatmul.mubr.msk.f32.vlgmr.msra.gmra.mxu0 %vm1585_vm7, %v5247_v40 }
0x1d59   : > { %v5445_v63 = vpop.permute.xlu1 %5444 }
0x1e0c   : > { %v7238_v26 = vpop.f32.mrf.mxu1 }
0x1e0d   : > { %5460 = vrot.lane.b32.xlu1 %v7238_v26, %s9630_s30 }
0x1e0e   : > { %v5326_v50 = vpop.f32.mrf.mxu1 }
0x1e0f   : > { %5458 = vrot.lane.b32.xlu0 %v5326_v50, %s9630_s30 }
0x1e11   : > { %5432 = vrot.lane.b32.xlu1 %v9168_v15, %s9559_s27 }
0x1e13   : > { %5430 = vrot.lane.b32.xlu0 %v9170_v29, %s9559_s27  ;;  %v5470_v29 = vsel %vm1400_vm6, %v9102_v13, %v5427_v62  ;;  %v5673_v62 = vld [vmem:[#allocation16 + $0x20] sm:$0xff] }
0x1e14   : > { %v5474_v1 = vsel %vm1585_vm7, %v5470_v29, %v5443_v0 }
0x1e15   : > { %5448 = vrot.lane.b32.xlu1 %v9228_v33, %s8128_s29  ;;  %v5471_v33 = vsel %vm1400_vm6, %v9100_v12, %v5429_v61  ;;  %v5674_v61 = vld [vmem:[#allocation16 + $0x28] sm:$0xff] }
0x1e16   : > { %v7245_v52 = vpop.f32.mrf.mxu0 }
0x1e17   : > { %5446 = vrot.lane.b32.xlu0 %v9230_v60, %s8128_s29  ;;  %v5475_v60 = vsel %vm1585_vm7, %v5471_v33, %v5445_v63  ;;  %s9632_s29 = sld [smem:[#allocation49_spill]] }
0x1e18   : > { %v5413_v51 = vpop.f32.mrf.mxu0 }
0x1e19   : > { %5464 = vrot.lane.b32.xlu1 %v7245_v52, %s9630_s30  ;;  %v5676_v52 = vld [vmem:[#allocation16 + $0x38] sm:$0xff] }
0x1e1a   : > { %7260 = vmatprep.subr.mxu0 %v5676_v52 }
0x1e1b   : > { %5462 = vrot.lane.b32.xlu0 %v5413_v51, %s9630_s30  ;;  %7261 = vmatpush3.msra.mxu0 %v5676_v52  ;;  %v5675_v51 = vld [vmem:[#allocation16 + $0x30] sm:$0xff] }
0x1e1c   : > { %7262 = vmatprep.subr.mxu0 %v5675_v51 }
0x1e1d   : > { %7263 = vmatpush3.msra.mxu0 %v5675_v51  ;;  %s9633_s27 = smov %s9632_s29  ;;  %s9446_s6 = scalar_lea.hbm %s9632_s29, %s6700_s5 }
0x1e1e   : > { %7264 = vmatprep.subr.mxu0 %v5674_v61 }
0x1e1f   : > { %7265 = vmatpush3.msra.mxu0 %v5674_v61 }
0x1e20   : > { %7266 = vmatprep.subr.mxu0 %v5673_v62 }
0x1e21   : > { %7267 = vmatpush3.msra.mxu0 %v5673_v62 }
0x1e7f   : > { %v5461_v15 = vpop.permute.xlu1 %5460 }
0x1e80   : > { %v5479_v3 = vsel %vm3084_vm8, %v5475_v60, %v5461_v15 }
0x1e81   : > { %v5459_v9 = vpop.permute.xlu0 %5458 }
0x1e82   : > { %v5478_v2 = vsel %vm3084_vm8, %v5474_v1, %v5459_v9 }
0x1e83   : > { %v5433_v37 = vpop.permute.xlu1 %5432  ;;  %7254 = vmatprep.mubr.msk.f32.mxu1 %vm1086_vm2, %v5478_v2 }
0x1e84   : > { %7255 = vmatmul.mubr.msk.f32.vlgmr.msra.gmra.mxu1 %vm1086_vm2, %v5479_v3  ;;  %v5473_v12 = vsel %vm1400_vm6, %v9104_v16, %v5433_v37 }
0x1e85   : > { %v5431_v4 = vpop.permute.xlu0 %5430 }
0x1e86   : > { %v5472_v5 = vsel %vm1400_vm6, %v9106_v34, %v5431_v4 }
0x1e87   : > { %v5449_v8 = vpop.permute.xlu1 %5448 }
0x1e88   : > { %v5477_v17 = vsel %vm1585_vm7, %v5473_v12, %v5449_v8 }
0x1e89   : > { %v5447_v13 = vpop.permute.xlu0 %5446 }
0x1e8a   : > { %v5476_v7 = vsel %vm1585_vm7, %v5472_v5, %v5447_v13  ;;  %v6661_v13 = vld [vmem:[#allocation13 + $0x1] ss:$0 sm:$0xff] }
0x1e8b   : > { %v5465_v6 = vpop.permute.xlu1 %5464 }
0x1e8c   : > { %v5481_v11 = vsel %vm3084_vm8, %v5477_v17, %v5465_v6 }
0x1e8d   : > { %v5463_v22 = vpop.permute.xlu0 %5462 }
0x1e8e   : > { %v5480_v23 = vsel %vm3084_vm8, %v5476_v7, %v5463_v22  ;;  %v6662_v22 = vld [vmem:[#allocation14 + $0x1] ss:$0 sm:$0xff] }
0x1e8f   : > { %7257 = vmatprep.mubr.msk.f32.mxu1 %vm1086_vm2, %v5480_v23 }
0x1e90   : > { %7258 = vmatmul.mubr.msk.f32.gmra.mxu1 %vm1086_vm2, %v5481_v11 }
0x1f44   : > { %v7256_v21 = vpop.f32.mrf.mxu1 }
0x1f45   : > { %v5579_v34 = vadd.f32 %v7256_v21, %v6656_v18 }
0x1f46   : > { %v5573_v24 = vpop.f32.mrf.mxu1 }
0x1f47   : > { %v9305_v25 = vadd.f32 %v5579_v34, %v8960_v14  ;;  %v5574_v16 = vadd.f32 %v6656_v18, %v5573_v24 }
0x1f49   : > { %v9308_v49 = vadd.f32 %v5574_v16, %v8963_v44  ;;  %v5603_v47 = vsel %vm1086_vm2, %v9305_v25, 0.0 }
0x1f4a   : > { %5604 = vadd.xlane.f32.xlu1 %v5603_v47 }
0x1f4b   : > { %v5600_v28 = vsel %vm1086_vm2, %v9308_v49, 0.0 }
0x1f4c   : > { %5601 = vadd.xlane.f32.xlu0 %v5600_v28 }
0x1f50   : > { %v7259_v36 = vpop.f32.mrf.mxu1 }
0x1f51   : > { %v5589_v55 = vadd.f32 %v7259_v36, %v6656_v18 }
0x1f52   : > { %v5583_v56 = vpop.f32.mrf.mxu1 }
0x1f53   : > { %v5584_v27 = vadd.f32 %v6656_v18, %v5583_v56  ;;  %v9318_v14 = vadd.f32 %v5589_v55, %v8970_v41  ;;  %v6675_v56 = vld [vmem:[%s9506_s17 + $0x78] sm:$0xff]  ;;  %v6674_v55 = vld [vmem:[%s9506_s17 + $0x70] sm:$0xff] }
0x1f54   : > { %7274 = vmatprep.subr.mxu1 %v6675_v56 }
0x1f55   : > { %v9315_v43 = vadd.f32 %v5584_v27, %v8973_v42  ;;  %v5609_v53 = vsel %vm1086_vm2, %v9318_v14, 0.0  ;;  %7275 = vmatpush3.msra.mxu1 %v6675_v56  ;;  %v6673_v27 = vld [vmem:[%s9506_s17 + $0x68] sm:$0xff] }
0x1f56   : > { %7276 = vmatprep.subr.mxu1 %v6674_v55 }
0x1f57   : > { %v5606_v44 = vsel %vm1086_vm2, %v9315_v43, 0.0  ;;  %7277 = vmatpush3.msra.mxu1 %v6674_v55 }
0x1f58   : > { %5607 = vadd.xlane.f32.xlu0 %v5606_v44  ;;  %7278 = vmatprep.subr.mxu1 %v6673_v27  ;;  %v6672_v44 = vld [vmem:[%s9506_s17 + $0x60] sm:$0xff] }
0x1f59   : > { %7279 = vmatpush3.msra.mxu1 %v6673_v27 }
0x1f5a   : > { %7280 = vmatprep.subr.mxu1 %v6672_v44 }
0x1f5b   : > { %7281 = vmatpush3.msra.mxu1 %v6672_v44 }
0x1f5c   : > { %5610 = vadd.xlane.f32.xlu0 %v5609_v53  ;;  %v6671_v53 = vld [vmem:[%s9506_s17 + $0x58] sm:$0xff] }
0x1f5d   : > { %7282 = vmatprep.subr.mxu1 %v6671_v53 }
0x1f5e   : > { %7283 = vmatpush3.msra.mxu1 %v6671_v53 }
0x1fd3   : > { %v5605_v59 = vpop.xlane.xlu1 %5604 }
0x1fd4   : > { %v5613_v10 = vmul.f32 0.03125, %v5605_v59  ;;  %v6670_v59 = vld [vmem:[%s9506_s17 + $0x50] sm:$0xff] }
0x1fd5   : > { %v5602_v30 = vpop.xlane.xlu0 %5601  ;;  %7284 = vmatprep.subr.mxu1 %v6670_v59 }
0x1fd6   : > { %v5617_v39 = vsub.f32 %v9305_v25, %v5613_v10  ;;  %v5612_v31 = vmul.f32 0.03125, %v5602_v30  ;;  %7285 = vmatpush3.msra.mxu1 %v6670_v59  ;;  %v6669_v10 = vld [vmem:[%s9506_s17 + $0x48] sm:$0xff]  ;;  %v6668_v30 = vld [vmem:[%s9506_s17 + $0x40] sm:$0xff] }
0x1fd7   : > { %7286 = vmatprep.subr.mxu1 %v6669_v10 }
0x1fd8   : > { %v5616_v42 = vsub.f32 %v9308_v49, %v5612_v31  ;;  %v5621_v32 = vmul.f32 %v5617_v39, %v5617_v39  ;;  %7287 = vmatpush3.msra.mxu1 %v6669_v10 }
0x1fd9   : > { %7288 = vmatprep.subr.mxu1 %v6668_v30 }
0x1fda   : > { %v5627_v41 = vsel %vm1086_vm2, %v5621_v32, 0.0  ;;  %v5620_v57 = vmul.f32 %v5616_v42, %v5616_v42  ;;  %7289 = vmatpush3.msra.mxu1 %v6668_v30 }
0x1fdb   : > { %5628 = vadd.xlane.f32.xlu1 %v5627_v41 }
0x1fdc   : > { %v5624_v54 = vsel %vm1086_vm2, %v5620_v57, 0.0 }
0x1fdd   : > { %5625 = vadd.xlane.f32.xlu0 %v5624_v54 }
0x1fe1   : > { %v5608_v46 = vpop.xlane.xlu0 %5607 }
0x1fe2   : > { %v5614_v35 = vmul.f32 0.03125, %v5608_v46 }
0x1fe4   : > { %v5618_v38 = vsub.f32 %v9315_v43, %v5614_v35 }
0x1fe5   : > { %v5611_v40 = vpop.xlane.xlu0 %5610 }
0x1fe6   : > { %v5615_v19 = vmul.f32 0.03125, %v5611_v40  ;;  %v5622_v20 = vmul.f32 %v5618_v38, %v5618_v38 }
0x1fe8   : > { %v5619_v45 = vsub.f32 %v9318_v14, %v5615_v19  ;;  %v5630_v58 = vsel %vm1086_vm2, %v5622_v20, 0.0 }
0x1fe9   : > { %5631 = vadd.xlane.f32.xlu0 %v5630_v58 }
0x1fea   : > { %v5623_v26 = vmul.f32 %v5619_v45, %v5619_v45 }
0x1fec   : > { %v5633_v50 = vsel %vm1086_vm2, %v5623_v26, 0.0 }
0x1fed   : > { %5634 = vadd.xlane.f32.xlu1 %v5633_v50 }
0x2064   : > { %v5629_v63 = vpop.xlane.xlu1 %5628 }
0x2065   : > { %v5637_v0 = vmul.f32 0.03125, %v5629_v63 }
0x2066   : > { %v5626_v15 = vpop.xlane.xlu0 %5625 }
0x2067   : > { %v5641_v29 = vadd.f32 1e-05, %v5637_v0  ;;  %v5636_v1 = vmul.f32 0.03125, %v5626_v15 }
0x2069   : > { %7658 = vrsqrt.f32 %v5641_v29  ;;  %v5640_v33 = vadd.f32 1e-05, %v5636_v1 }
0x206b   : > { %7660 = vrsqrt.f32 %v5640_v33 }
0x2072   : > { %v5632_v9 = vpop.xlane.xlu0 %5631 }
0x2073   : > { %v5638_v60 = vmul.f32 0.03125, %v5632_v9 }
0x2075   : > { %v5642_v2 = vadd.f32 1e-05, %v5638_v60 }
0x2076   : > { %v7659_v3 = vpop.eup %7658  ;;  %v5635_v37 = vpop.xlane.xlu1 %5634 }
0x2077   : > { %v5649_v4 = vmul.f32 %v7659_v3, %v5617_v39  ;;  %7662 = vrsqrt.f32 %v5642_v2  ;;  %v5639_v8 = vmul.f32 0.03125, %v5635_v37  ;;  %v6663_v39 = vld [vmem:[#allocation17 + $0x1] ss:$0 sm:$0xff] }
0x2078   : > { %v7661_v5 = vpop.eup %7660 }
0x2079   : > { %v5643_v6 = vadd.f32 1e-05, %v5639_v8  ;;  %v5648_v12 = vmul.f32 %v7661_v5, %v5616_v42  ;;  %v5659_v7 = vmul.f32 %v6661_v13, %v5649_v4 }
0x207b   : > { %7664 = vrsqrt.f32 %v5643_v6  ;;  %v5658_v17 = vmul.f32 %v6661_v13, %v5648_v12  ;;  %v5669_v11 = vadd.f32 %v6662_v22, %v5659_v7 }
0x207d   : > { %v5668_v23 = vadd.f32 %v6662_v22, %v5658_v17 }
0x207f   : > { %7268 = vmatprep.mubr.msk.f32.mxu0 %vm1086_vm2, %v5668_v23 }
0x2080   : > { %7269 = vmatmul.mubr.msk.f32.vlgmr.msra.gmra.mxu0 %vm1086_vm2, %v5669_v11 }
0x2084   : > { %v7663_v18 = vpop.eup %7662 }
0x2085   : > { %v5650_v21 = vmul.f32 %v7663_v18, %v5618_v38 }
0x2087   : > { %v5660_v34 = vmul.f32 %v6661_v13, %v5650_v21 }
0x2088   : > { %v7665_v24 = vpop.eup %7664 }
0x2089   : > { %v5670_v16 = vadd.f32 %v6662_v22, %v5660_v34  ;;  %v5651_v47 = vmul.f32 %v7665_v24, %v5619_v45 }
0x208b   : > { %7271 = vmatprep.mubr.msk.f32.mxu0 %vm1086_vm2, %v5670_v16  ;;  %v5661_v28 = vmul.f32 %v6661_v13, %v5651_v47 }
0x208d   : > { %v5671_v36 = vadd.f32 %v6662_v22, %v5661_v28 }
0x208f   : > { %7272 = vmatmul.mubr.msk.f32.gmra.mxu0 %vm1086_vm2, %v5671_v36 }
0x2140   : > { %v7270_v31 = vpop.f32.mrf.mxu0 }
0x2141   : > { %v9360_v42 = vadd.f32 %v7270_v31, %v6663_v39 }
0x2142   : > { %v5763_v32 = vpop.f32.mrf.mxu0 }
0x2143   : > { %v9363_v41 = vmul.f32 0.70710677, %v9360_v42  ;;  %v9365_v57 = vadd.f32 %v6663_v39, %v5763_v32 }
0x2145   : > { %v5799_v54 = vand.u32 2147483647, %v9363_v41  ;;  %v9369_v46 = vmul.f32 0.70710677, %v9365_v57  ;;  %vm5791_vm14 = vcmp.ge.f32.partialorder %v9363_v41, 0.0 }
0x2147   : > { %v5803_v35 = vmul.f32 0.3275911, %v5799_v54  ;;  %v5798_v38 = vand.u32 2147483647, %v9369_v46  ;;  %v5855_v58 = vsub.f32 0.0, %v5799_v54  ;;  %vm5790_vm15 = vcmp.ge.f32.partialorder %v9369_v46, 0.0 }
0x2148   : > { %v5783_v46 = vmul.f32 0.5, %v9360_v42 }
0x2149   : > { %v5807_v40 = vadd.f32 1.0, %v5803_v35  ;;  %v5802_v19 = vmul.f32 0.3275911, %v5798_v38  ;;  %v5859_v61 = vmul.f32 %v5855_v58, %v5799_v54  ;;  %v5854_v62 = vsub.f32 0.0, %v5798_v38 }
0x214b   : > { %7666 = vrcp.f32 %v5807_v40  ;;  %v5806_v20 = vadd.f32 1.0, %v5802_v19  ;;  %v5864_v33 = vmul.f32 1.442695, %v5859_v61  ;;  %v5858_v9 = vmul.f32 %v5854_v62, %v5798_v38 }
0x214d   : > { %7668 = vrcp.f32 %v5806_v20  ;;  %v5862_v5 = vmul.f32 1.442695, %v5858_v9 }
0x214f   : > { %v7273_v45 = vpop.f32.mrf.mxu0 }
0x2150   : > { %v9372_v26 = vadd.f32 %v7273_v45, %v6663_v39  ;;  %v5795_v45 = vsel %vm5791_vm14, 1.0, %v8130_v48 }
0x2151   : > { %v5773_v50 = vpop.f32.mrf.mxu0 }
0x2152   : > { %v9375_v52 = vmul.f32 0.70710677, %v9372_v26  ;;  %v9377_v51 = vadd.f32 %v6663_v39, %v5773_v50 }
0x2154   : > { %v5801_v63 = vand.u32 2147483647, %v9375_v52  ;;  %v9381_v0 = vmul.f32 0.70710677, %v9377_v51  ;;  %vm5793_vm0 = vcmp.ge.f32.partialorder %v9375_v52, 0.0  ;;  %v5785_v52 = vmul.f32 0.5, %v9372_v26 }
0x2155   : > { %v5797_v42 = vsel %vm5793_vm0, 1.0, %v8130_v48 }
0x2156   : > { %v5805_v15 = vmul.f32 0.3275911, %v5801_v63  ;;  %v5800_v29 = vand.u32 2147483647, %v9381_v0  ;;  %v5857_v17 = vsub.f32 0.0, %v5801_v63  ;;  %vm5792_vm1 = vcmp.ge.f32.partialorder %v9381_v0, 0.0 }
0x2157   : > { %v6677_v0 = vld [vmem:[%s9507_s18 + $0x1] ss:$0 sm:$0xff] }
0x2158   : > { %v7667_v1 = vpop.eup %7666  ;;  %v5809_v60 = vadd.f32 1.0, %v5805_v15  ;;  %v5804_v2 = vmul.f32 0.3275911, %v5800_v29  ;;  %v5856_v21 = vsub.f32 0.0, %v5800_v29  ;;  %v5861_v24 = vmul.f32 %v5857_v17, %v5801_v63 }
0x2159   : > { %v5819_v3 = vmul.f32 1.0614054, %v7667_v1  ;;  %v5794_v15 = vsel %vm5790_vm15, 1.0, %v8130_v48 }
0x215a   : > { %7670 = vrcp.f32 %v5809_v60  ;;  %v5808_v37 = vadd.f32 1.0, %v5804_v2  ;;  %v7669_v4 = vpop.eup %7668  ;;  %v5860_v56 = vmul.f32 %v5856_v21, %v5800_v29  ;;  %v5868_v44 = vmul.f32 1.442695, %v5861_v24 }
0x215b   : > { %v5823_v8 = vadd.f32 -1.4531521, %v5819_v3  ;;  %7672 = vpow2.f32 %v5864_v33  ;;  %v5818_v13 = vmul.f32 1.0614054, %v7669_v4  ;;  %v5782_v2 = vmul.f32 0.5, %v9365_v57 }
0x215c   : > { %7674 = vrcp.f32 %v5808_v37  ;;  %v5866_v54 = vmul.f32 1.442695, %v5860_v56  ;;  %v5796_v24 = vsel %vm5792_vm1, 1.0, %v8130_v48 }
0x215d   : > { %v5827_v6 = vmul.f32 %v7667_v1, %v5823_v8  ;;  %v5822_v12 = vadd.f32 -1.4531521, %v5818_v13  ;;  %7676 = vpow2.f32 %v5862_v5 }
0x215e   : > { %7678 = vpow2.f32 %v5868_v44 }
0x215f   : > { %v5831_v7 = vadd.f32 1.4214138, %v5827_v6  ;;  %v5826_v22 = vmul.f32 %v7669_v4, %v5822_v12  ;;  %7680 = vpow2.f32 %v5866_v54 }
0x2161   : > { %v5835_v23 = vmul.f32 %v7667_v1, %v5831_v7  ;;  %v5830_v11 = vadd.f32 1.4214138, %v5826_v22 }
0x2163   : > { %v5839_v18 = vadd.f32 -0.28449672, %v5835_v23  ;;  %v5834_v34 = vmul.f32 %v7669_v4, %v5830_v11 }
0x2165   : > { %v5843_v16 = vmul.f32 %v7667_v1, %v5839_v18  ;;  %v5838_v47 = vadd.f32 -0.28449672, %v5834_v34 }
0x2167   : > { %v7671_v28 = vpop.eup %7670  ;;  %v5847_v36 = vadd.f32 0.2548296, %v5843_v16  ;;  %v5842_v55 = vmul.f32 %v7669_v4, %v5838_v47 }
0x2168   : > { %v5821_v27 = vmul.f32 1.0614054, %v7671_v28  ;;  %v7673_v53 = vpop.eup %7672 }
0x2169   : > { %v5851_v59 = vmul.f32 %v7667_v1, %v5847_v36  ;;  %v7675_v10 = vpop.eup %7674  ;;  %v5846_v30 = vadd.f32 0.2548296, %v5842_v55 }
0x216a   : > { %v5825_v39 = vadd.f32 -1.4531521, %v5821_v27  ;;  %v5820_v32 = vmul.f32 1.0614054, %v7675_v10  ;;  %v7677_v40 = vpop.eup %7676 }
0x216b   : > { %v5871_v31 = vmul.f32 %v7673_v53, %v5851_v59  ;;  %v5850_v35 = vmul.f32 %v7669_v4, %v5846_v30  ;;  %v7679_v7 = vpop.eup %7678 }
0x216c   : > { %v5829_v38 = vmul.f32 %v7671_v28, %v5825_v39  ;;  %v5824_v20 = vadd.f32 -1.4531521, %v5820_v32  ;;  %v7681_v23 = vpop.eup %7680 }
0x216d   : > { %v5875_v19 = vsub.f32 1.0, %v5871_v31  ;;  %v5870_v58 = vmul.f32 %v7677_v40, %v5850_v35 }
0x216e   : > { %v5833_v50 = vadd.f32 1.4214138, %v5829_v38  ;;  %v5828_v62 = vmul.f32 %v7675_v10, %v5824_v20 }
0x216f   : > { %v5879_v61 = vmul.f32 %v5875_v19, %v5795_v45  ;;  %v5874_v63 = vsub.f32 1.0, %v5870_v58 }
0x2170   : > { %v5837_v41 = vmul.f32 %v7671_v28, %v5833_v50  ;;  %v5832_v29 = vadd.f32 1.4214138, %v5828_v62 }
0x2171   : > { %v5878_v1 = vmul.f32 %v5874_v63, %v5794_v15  ;;  %v5883_v9 = vadd.f32 1.0, %v5879_v61 }
0x2172   : > { %v5841_v33 = vadd.f32 -0.28449672, %v5837_v41  ;;  %v5836_v60 = vmul.f32 %v7675_v10, %v5832_v29 }
0x2173   : > { %v5882_v3 = vadd.f32 1.0, %v5878_v1  ;;  %v5887_v5 = vmul.f32 %v5883_v9, %v5783_v46 }
0x2174   : > { %v5845_v37 = vmul.f32 %v7671_v28, %v5841_v33  ;;  %v5840_v4 = vadd.f32 -0.28449672, %v5836_v60 }
0x2175   : > { %v5886_v8 = vmul.f32 %v5882_v3, %v5782_v2 }
0x2176   : > { %v5849_v13 = vadd.f32 0.2548296, %v5845_v37  ;;  %v5844_v6 = vmul.f32 %v7675_v10, %v5840_v4 }
0x2177   : > { %7290 = vmatprep.mubr.msk.f32.mxu1 %vm3506_vm11, %v5886_v8 }
0x2178   : > { %v5853_v12 = vmul.f32 %v7671_v28, %v5849_v13  ;;  %v5848_v22 = vadd.f32 0.2548296, %v5844_v6  ;;  %7291 = vmatmul.mubr.msk.f32.vlgmr.msra.gmra.mxu1 %vm3506_vm11, %v5887_v5  ;;  %v5784_v28 = vmul.f32 0.5, %v9377_v51 }
0x217a   : > { %v5873_v17 = vmul.f32 %v7679_v7, %v5853_v12  ;;  %v5852_v57 = vmul.f32 %v7675_v10, %v5848_v22 }
0x217c   : > { %v5877_v11 = vsub.f32 1.0, %v5873_v17  ;;  %v5872_v18 = vmul.f32 %v7681_v23, %v5852_v57  ;;  %v6682_v57 = vld [vmem:[#allocation19] ss:$0 sm:$0xff] }
0x217e   : > { %v5881_v21 = vmul.f32 %v5877_v11, %v5797_v42  ;;  %v5876_v34 = vsub.f32 1.0, %v5872_v18  ;;  %v6683_v18 = vld [vmem:[%s9509_s20] ss:$0 sm:$0xff] }
0x2180   : > { %v5880_v16 = vmul.f32 %v5876_v34, %v5796_v24  ;;  %v5885_v47 = vadd.f32 1.0, %v5881_v21 }
0x2182   : > { %v5884_v36 = vadd.f32 1.0, %v5880_v16  ;;  %v5889_v55 = vmul.f32 %v5885_v47, %v5785_v52 }
0x2184   : > { %v5888_v56 = vmul.f32 %v5884_v36, %v5784_v28 }
0x2186   : > { %7293 = vmatprep.mubr.msk.f32.mxu1 %vm3506_vm11, %v5888_v56 }
0x2187   : > { %7294 = vmatmul.mubr.msk.f32.gmra.mxu1 %vm3506_vm11, %v5889_v55 }
0x2238   : > { %v7292_v27 = vpop.f32.mrf.mxu1 }
0x2239   : > { %v5991_v44 = vadd.f32 %v7292_v27, %v6677_v0 }
0x223a   : > { %v5985_v48 = vpop.f32.mrf.mxu1 }
0x223b   : > { %v6005_v53 = vadd.f32 %v5991_v44, %v9305_v25  ;;  %v5986_v59 = vadd.f32 %v6677_v0, %v5985_v48 }
0x223d   : > { %v6004_v51 = vadd.f32 %v5986_v59, %v9308_v49  ;;  %v6013_v26 = vsel %vm1086_vm2, %v6005_v53, 0.0 }
0x223e   : > { %6014 = vadd.xlane.f32.xlu1 %v6013_v26 }
0x223f   : > { %v6010_v10 = vsel %vm1086_vm2, %v6004_v51, 0.0 }
0x2240   : > { %6011 = vadd.xlane.f32.xlu0 %v6010_v10 }
0x2247   : > { %v7295_v30 = vpop.f32.mrf.mxu1 }
0x2248   : > { %v6001_v39 = vadd.f32 %v7295_v30, %v6677_v0 }
0x2249   : > { %v5995_v31 = vpop.f32.mrf.mxu1 }
0x224a   : > { %v6007_v32 = vadd.f32 %v6001_v39, %v9318_v14  ;;  %v5996_v54 = vadd.f32 %v6677_v0, %v5995_v31 }
0x224c   : > { %v6006_v35 = vadd.f32 %v5996_v54, %v9315_v43  ;;  %v6019_v38 = vsel %vm1086_vm2, %v6007_v32, 0.0 }
0x224d   : > { %6020 = vadd.xlane.f32.xlu1 %v6019_v38 }
0x224e   : > { %v6016_v25 = vsel %vm1086_vm2, %v6006_v35, 0.0 }
0x224f   : > { %6017 = vadd.xlane.f32.xlu0 %v6016_v25 }
0x22c7   : > { %v6015_v49 = vpop.xlane.xlu1 %6014 }
0x22c8   : > { %v6023_v40 = vmul.f32 0.03125, %v6015_v49 }
0x22c9   : > { %v6012_v19 = vpop.xlane.xlu0 %6011 }
0x22ca   : > { %v6027_v20 = vsub.f32 %v6005_v53, %v6023_v40  ;;  %v6022_v45 = vmul.f32 0.03125, %v6012_v19 }
0x22cc   : > { %v6026_v58 = vsub.f32 %v6004_v51, %v6022_v45  ;;  %v6031_v50 = vmul.f32 %v6027_v20, %v6027_v20 }
0x22ce   : > { %v6037_v61 = vsel %vm1086_vm2, %v6031_v50, 0.0  ;;  %v6030_v62 = vmul.f32 %v6026_v58, %v6026_v58 }
0x22cf   : > { %6038 = vadd.xlane.f32.xlu1 %v6037_v61 }
0x22d0   : > { %v6034_v14 = vsel %vm1086_vm2, %v6030_v62, 0.0 }
0x22d1   : > { %6035 = vadd.xlane.f32.xlu0 %v6034_v14 }
0x22d6   : > { %v6021_v43 = vpop.xlane.xlu1 %6020 }
0x22d7   : > { %v6025_v63 = vmul.f32 0.03125, %v6021_v43  ;;  %v6159_v43 = vld [vmem:[#allocation20 + $0x18] sm:$0xff] }
0x22d8   : > { %v6018_v41 = vpop.xlane.xlu0 %6017  ;;  %7296 = vmatprep.subr.mxu0 %v6159_v43 }
0x22d9   : > { %v6029_v15 = vsub.f32 %v6007_v32, %v6025_v63  ;;  %v6024_v29 = vmul.f32 0.03125, %v6018_v41  ;;  %7297 = vmatpush3.msra.mxu0 %v6159_v43  ;;  %v6158_v63 = vld [vmem:[#allocation20 + $0x10] sm:$0xff]  ;;  %v6157_v41 = vld [vmem:[#allocation20 + $0x8] sm:$0xff] }
0x22da   : > { %7298 = vmatprep.subr.mxu0 %v6158_v63 }
0x22db   : > { %v6028_v1 = vsub.f32 %v6006_v35, %v6024_v29  ;;  %v6033_v33 = vmul.f32 %v6029_v15, %v6029_v15  ;;  %7299 = vmatpush3.msra.mxu0 %v6158_v63 }
0x22dc   : > { %7300 = vmatprep.subr.mxu0 %v6157_v41 }
0x22dd   : > { %v6043_v9 = vsel %vm1086_vm2, %v6033_v33, 0.0  ;;  %v6032_v60 = vmul.f32 %v6028_v1, %v6028_v1  ;;  %7301 = vmatpush3.msra.mxu0 %v6157_v41 }
0x22de   : > { %6044 = vadd.xlane.f32.xlu1 %v6043_v9 }
0x22df   : > { %v6040_v2 = vsel %vm1086_vm2, %v6032_v60, 0.0 }
0x22e0   : > { %6041 = vadd.xlane.f32.xlu0 %v6040_v2 }
0x2358   : > { %v6039_v3 = vpop.xlane.xlu1 %6038 }
0x2359   : > { %v6047_v37 = vmul.f32 0.03125, %v6039_v3 }
0x235a   : > { %v6036_v46 = vpop.xlane.xlu0 %6035 }
0x235b   : > { %v6051_v4 = vadd.f32 1e-05, %v6047_v37  ;;  %v6046_v8 = vmul.f32 0.03125, %v6036_v46 }
0x235d   : > { %7682 = vrsqrt.f32 %v6051_v4  ;;  %v6050_v13 = vadd.f32 1e-05, %v6046_v8 }
0x235f   : > { %7684 = vrsqrt.f32 %v6050_v13 }
0x2367   : > { %v6045_v5 = vpop.xlane.xlu1 %6044 }
0x2368   : > { %v6049_v6 = vmul.f32 0.03125, %v6045_v5 }
0x2369   : > { %v6042_v12 = vpop.xlane.xlu0 %6041 }
0x236a   : > { %v7683_v7 = vpop.eup %7682  ;;  %v6053_v22 = vadd.f32 1e-05, %v6049_v6  ;;  %v6048_v17 = vmul.f32 0.03125, %v6042_v12  ;;  %v6684_v6 = vld [vmem:[%s9510_s21] ss:$0 sm:$0xff] }
0x236b   : > { %v6059_v23 = vmul.f32 %v7683_v7, %v6027_v20 }
0x236c   : > { %v7685_v11 = vpop.eup %7684  ;;  %7686 = vrsqrt.f32 %v6053_v22  ;;  %v6052_v42 = vadd.f32 1e-05, %v6048_v17 }
0x236d   : > { %v6069_v21 = vmul.f32 %v6682_v57, %v6059_v23  ;;  %v6058_v34 = vmul.f32 %v7685_v11, %v6026_v58 }
0x236e   : > { %7688 = vrsqrt.f32 %v6052_v42 }
0x236f   : > { %v6079_v24 = vadd.f32 %v6683_v18, %v6069_v21  ;;  %v6068_v16 = vmul.f32 %v6682_v57, %v6058_v34 }
0x2371   : > { %v6087_v47 = vsel %vm1086_vm2, %v6079_v24, 0.0  ;;  %v6078_v28 = vadd.f32 %v6683_v18, %v6068_v16 }
0x2372   : > { %6088 = vadd.xlane.f32.xlu1 %v6087_v47 }
0x2373   : > { %v6084_v36 = vsel %vm1086_vm2, %v6078_v28, 0.0 }
0x2374   : > { %6085 = vadd.xlane.f32.xlu0 %v6084_v36 }
0x2379   : > { %v7687_v52 = vpop.eup %7686 }
0x237a   : > { %v6061_v56 = vmul.f32 %v7687_v52, %v6029_v15  ;;  %v6156_v15 = vld [vmem:[#allocation20] sm:$0xff] }
0x237b   : > { %v7689_v55 = vpop.eup %7688  ;;  %7302 = vmatprep.subr.mxu0 %v6156_v15  ;;  %v6686_v52 = vld [vmem:[%s9513_s24] ss:$0 sm:$0xff] }
0x237c   : > { %v6071_v0 = vmul.f32 %v6682_v57, %v6061_v56  ;;  %v6060_v27 = vmul.f32 %v7689_v55, %v6028_v1  ;;  %7303 = vmatpush3.msra.mxu0 %v6156_v15 }
0x237e   : > { %v6081_v44 = vadd.f32 %v6683_v18, %v6071_v0  ;;  %v6070_v48 = vmul.f32 %v6682_v57, %v6060_v27  ;;  %v6685_v57 = vld [vmem:[%s9511_s22] ss:$0 sm:$0xff] }
0x2380   : > { %v6093_v53 = vsel %vm1086_vm2, %v6081_v44, 0.0  ;;  %v6080_v59 = vadd.f32 %v6683_v18, %v6070_v48 }
0x2381   : > { %6094 = vadd.xlane.f32.xlu1 %v6093_v53 }
0x2382   : > { %v6090_v51 = vsel %vm1086_vm2, %v6080_v59, 0.0 }
0x2383   : > { %6091 = vadd.xlane.f32.xlu0 %v6090_v51 }
0x23fb   : > { %v6089_v26 = vpop.xlane.xlu1 %6088 }
0x23fc   : > { %v6097_v10 = vmul.f32 0.03125, %v6089_v26 }
0x23fd   : > { %v6086_v30 = vpop.xlane.xlu0 %6085 }
0x23fe   : > { %v6101_v39 = vsub.f32 %v6079_v24, %v6097_v10  ;;  %v6096_v31 = vmul.f32 0.03125, %v6086_v30 }
0x2400   : > { %v6100_v32 = vsub.f32 %v6078_v28, %v6096_v31  ;;  %v6105_v54 = vmul.f32 %v6101_v39, %v6101_v39 }
0x2402   : > { %v6111_v35 = vsel %vm1086_vm2, %v6105_v54, 0.0  ;;  %v6104_v38 = vmul.f32 %v6100_v32, %v6100_v32 }
0x2403   : > { %6112 = vadd.xlane.f32.xlu1 %v6111_v35 }
0x2404   : > { %v6108_v25 = vsel %vm1086_vm2, %v6104_v38, 0.0 }
0x2405   : > { %6109 = vadd.xlane.f32.xlu0 %v6108_v25 }
0x240a   : > { %v6095_v49 = vpop.xlane.xlu1 %6094 }
0x240b   : > { %v6099_v40 = vmul.f32 0.03125, %v6095_v49 }
0x240c   : > { %v6092_v19 = vpop.xlane.xlu0 %6091 }
0x240d   : > { %v6103_v20 = vsub.f32 %v6081_v44, %v6099_v40  ;;  %v6098_v45 = vmul.f32 0.03125, %v6092_v19 }
0x240f   : > { %v6102_v58 = vsub.f32 %v6080_v59, %v6098_v45  ;;  %v6107_v50 = vmul.f32 %v6103_v20, %v6103_v20 }
0x2411   : > { %v6117_v61 = vsel %vm1086_vm2, %v6107_v50, 0.0  ;;  %v6106_v62 = vmul.f32 %v6102_v58, %v6102_v58 }
0x2412   : > { %6118 = vadd.xlane.f32.xlu1 %v6117_v61 }
0x2413   : > { %v6114_v14 = vsel %vm1086_vm2, %v6106_v62, 0.0 }
0x2414   : > { %6115 = vadd.xlane.f32.xlu0 %v6114_v14 }
0x248c   : > { %v6113_v29 = vpop.xlane.xlu1 %6112 }
0x248d   : > { %v6121_v1 = vmul.f32 0.03125, %v6113_v29 }
0x248e   : > { %v6110_v33 = vpop.xlane.xlu0 %6109 }
0x248f   : > { %v6125_v9 = vadd.f32 1e-05, %v6121_v1  ;;  %v6120_v60 = vmul.f32 0.03125, %v6110_v33 }
0x2491   : > { %7690 = vrsqrt.f32 %v6125_v9  ;;  %v6124_v2 = vadd.f32 1e-05, %v6120_v60 }
0x2493   : > { %7692 = vrsqrt.f32 %v6124_v2 }
0x249b   : > { %v6119_v3 = vpop.xlane.xlu1 %6118 }
0x249c   : > { %v6123_v37 = vmul.f32 0.03125, %v6119_v3 }
0x249d   : > { %v6116_v46 = vpop.xlane.xlu0 %6115 }
0x249e   : > { %v7691_v4 = vpop.eup %7690  ;;  %v6127_v8 = vadd.f32 1e-05, %v6123_v37  ;;  %v6122_v13 = vmul.f32 0.03125, %v6116_v46 }
0x249f   : > { %v6133_v5 = vmul.f32 %v7691_v4, %v6101_v39 }
0x24a0   : > { %v7693_v12 = vpop.eup %7692  ;;  %7694 = vrsqrt.f32 %v6127_v8  ;;  %v6126_v7 = vadd.f32 1e-05, %v6122_v13 }
0x24a1   : > { %v6132_v22 = vmul.f32 %v7693_v12, %v6100_v32  ;;  %v6143_v17 = vmul.f32 %v6684_v6, %v6133_v5 }
0x24a2   : > { %7696 = vrsqrt.f32 %v6126_v7 }
0x24a3   : > { %v6142_v23 = vmul.f32 %v6684_v6, %v6132_v22  ;;  %v6153_v42 = vadd.f32 %v6685_v57, %v6143_v17 }
0x24a5   : > { %v6152_v11 = vadd.f32 %v6685_v57, %v6142_v23 }
0x24a7   : > { %7304 = vmatprep.mubr.msk.f32.mxu0 %vm1086_vm2, %v6152_v11 }
0x24a8   : > { %7305 = vmatmul.mubr.msk.f32.vlgmr.msra.gmra.mxu0 %vm1086_vm2, %v6153_v42 }
0x24ad   : > { %v7695_v18 = vpop.eup %7694 }
0x24ae   : > { %v6135_v21 = vmul.f32 %v7695_v18, %v6103_v20 }
0x24af   : > { %v7697_v34 = vpop.eup %7696 }
0x24b0   : > { %v6134_v24 = vmul.f32 %v7697_v34, %v6102_v58  ;;  %v6145_v16 = vmul.f32 %v6684_v6, %v6135_v21 }
0x24b2   : > { %v6144_v47 = vmul.f32 %v6684_v6, %v6134_v24  ;;  %v6155_v36 = vadd.f32 %v6685_v57, %v6145_v16 }
0x24b4   : > { %v6154_v28 = vadd.f32 %v6685_v57, %v6144_v47 }
0x24b6   : > { %7307 = vmatprep.mubr.msk.f32.mxu0 %vm1086_vm2, %v6154_v28 }
0x24b7   : > { %7308 = vmatmul.mubr.msk.f32.gmra.mxu0 %vm1086_vm2, %v6155_v36 }
0x2568   : > { %v7306_v56 = vpop.f32.mrf.mxu0 }
0x2569   : > { %v6251_v55 = vadd.f32 %v7306_v56, %v6686_v52 }
0x256a   : > { %v6245_v0 = vpop.f32.mrf.mxu0 }
0x256b   : > { %6265 = vst [vmem:[%s945_s26 + $0x8] sm:$0xff] %v6251_v55  ;;  %v6246_v27 = vadd.f32 %v6686_v52, %v6245_v0 }
0x256d   : > { %6264 = vst [vmem:[%s945_s26] sm:$0xff] %v6246_v27 }
0x2577   : > { %v7309_v44 = vpop.f32.mrf.mxu0 }
0x2578   : > { %v6261_v48 = vadd.f32 %v7309_v44, %v6686_v52 }
0x2579   : > { %v6255_v53 = vpop.f32.mrf.mxu0 }
0x257a   : > { %6267 = vst [vmem:[%s945_s26 + $0x18] sm:$0xff] %v6261_v48  ;;  %v6256_v59 = vadd.f32 %v6686_v52, %v6255_v53 }
0x257c   : > { %6266 = vst [vmem:[%s945_s26 + $0x10] sm:$0xff] %v6256_v59 }
0x257d   : > { %8023 = shalt.err (!%p8020_p8)
}
0x257e   : > { %s8024_s0 = scalar_lea.hbm %s9446_s6, 512  ;;  %s8028_s25 = scalar_lea.hbm %s9633_s27, 1024 }
0x257f   : > { %p8025_p11 = scmp.ne.s32.totalorder %s9446_s6, %s8024_s0  ;;  %p8029_p1 = scmp.lt.s32.totalorder %s9446_s6, %s9633_s27 }
0x2580   : > { %p8030_p2 = scmp.lt.s32.totalorder %s8028_s25, %s8024_s0 }
0x2581   : > { %p8026_p0 = pnand %p8025_p11, %p9634_p10 }
0x2582   : > { %p8031_p13 = por %p8030_p2, %p8029_p1 }
0x2583   : > { %p8027_p3 = pneg %p8026_p0 }
0x2585   : > { %p8032_p4 = pnand %p8031_p13, %p8027_p3 }
0x2587   : > { %8035 = shalt.err (!%p8032_p4)
}
0x2588   : > { %s8132_s10 = smov 128   ;;  %s9635_s4 = smov 8  }
0x2589   : > { %7358 = dma.vmem_to_hbm [thread:$0]  (%p9634_p10), %s9441_s8, 512, %s9446_s6, %s9448_s1, %s8132_s10, %s8132_s10, %s9635_s4  }
0x258a PF: > { %s9636_s3 = sld [smem:[#allocation33_spill]] }
0x258b   : > { %s9637_s7 = sld [smem:[#allocation31_spill]] }
0x258c   : > { %s9638_s26 = sld [smem:[#allocation37_spill]] }
0x2590   : > { %p7425_p9 = scmp.ge.s32.totalorder %s9636_s3, 2 }
0x2591   : > { %s6298_s5 = sand.u32 1, %s9637_s7  }
0x2592   : > { %p9639_p5 = scmp.ne.s32.totalorder %s9638_s26, 0  ;;  %s6299_s0 = scalar_lea.sflag [#allocation4], %s6298_s5 }
0x2594   : > { %p7398_p12 = pnand %p7425_p9, %p9639_p5 }
0x2596   : > { %p7399_p6 = pneg %p7398_p12 }
0x2598   : > { %8081 = dma.done.wait (%p7399_p6), %s6299_s0, 512  }
0x2599   : > { %8083 = vsyncadd (%p7399_p6), %s6299_s0, 4294966784  ;;  %s9640_s30 = sld [smem:[#allocation34_spill]]  ;;  %s9643_s29 = smov %s8090_s2 }
0x259a   : > { %s9641_s9 = sld [smem:[#allocation32_spill]] }
0x259b   : > { %s9642_s6 = sld [smem:[#allocation35_spill]] }
0x259f   : > { %p42_p7 = scmp.ge.s32.totalorder %s9640_s30, 4  }
0x25a0   : > { %s9644_s2 = smov %s9641_s9 }
0x25a1   :  { %44 = sbr.rel (!%p42_p7) target bundleno = 23 (0x17), region = 219 }
0x25a6   :  { %6304 = vsyncpa [#allocation3], 1 }
0x25a7   :  { %6306 = vsyncpa [#allocation3 + $0x1], 1 }
0x25a8   :  { %6307 = vsyncpa [#allocation6], 1 }
0x25a9   :  { %6308 = vsyncpa [#allocation9], 1 }
0x25aa   :  { %6309 = vsyncpa [#allocation12], 1 }
0x25ab   :  { %6310 = vsyncpa [#allocation15], 1 }
0x25ac   :  { %6311 = vsyncpa [#allocation18], 1 }
0x25ad   :  { %6312 = vsyncpa [#allocation21], 1 }
0x25ae   :  { %6313 = vsyncpa [#allocation4], 1 }
0x25af   :  { %6315 = vsyncpa [#allocation4 + $0x1], 1 }

</bundles_post_ra>
